<compile_context>
chip_gen: v7x
topology: tpu7x:2x2x1
jax: 0.10.0
libtpu: 0.0.40
codegen_flags: <defaults>
</compile_context>

<pallas_src>
import math
import jax
import jax.numpy as jnp
from jax.experimental import pallas as pl
from jax.experimental.pallas import tpu as pltpu

NUM_HEADS = 4
LN_EPS = 1e-5
NEG_INF = -1e9


# --------------------------------------------------------------------------
# Parameter construction / packing (host side, free).
# --------------------------------------------------------------------------
def init_sublayer_params(key, d_model, d_ffn):
    keys = jax.random.split(key, 6)

    def lin(k, din, dout):
        w = jax.random.normal(k, (din, dout), jnp.float32) * 0.02
        b = jnp.zeros((1, dout), jnp.float32)
        return w, b

    wq, bq = lin(keys[0], d_model, d_model)
    wk, bk = lin(keys[1], d_model, d_model)
    wv, bv = lin(keys[2], d_model, d_model)
    wo, bo = lin(keys[3], d_model, d_model)
    w1, b1 = lin(keys[4], d_model, d_ffn)
    w2, b2 = lin(keys[5], d_ffn, d_model)
    return dict(
        wq=wq, bq=bq, wk=wk, bk=bk, wv=wv, bv=bv, wo=wo, bo=bo,
        g1=jnp.ones((1, d_model), jnp.float32),
        be1=jnp.zeros((1, d_model), jnp.float32),
        w1=w1, b1=b1, w2=w2, b2=b2,
        g2=jnp.ones((1, d_model), jnp.float32),
        be2=jnp.zeros((1, d_model), jnp.float32),
    )


def pack_layer_params(layer_params_list, d_model, num_heads):
    """Stack per-layer params into a few arrays with a leading layer axis.

    Packed input projection applied to stream s contains, column-wise:
      [ Wq(of s, pre-scaled) | Wk(used by the OTHER stream) | Wv(other stream) ]
    so a single matmul per stream produces both its own queries and the
    keys/values consumed by the other stream's cross-attention.
    Big weight slabs are stored in bf16 (streamed each layer); small bias /
    LayerNorm vectors stay f32.
    """
    scale = 1.0 / math.sqrt(d_model // num_heads)
    w_in1, w_in2, b_in1, b_in2 = [], [], [], []
    wo, w1, w2, b1, vecs = [], [], [], [], []

    def vpack(p):  # (6, D): bo, g1, be1, b2, g2, be2
        return jnp.concatenate(
            [p["bo"], p["g1"], p["be1"], p["b2"], p["g2"], p["be2"]], axis=0)

    for (pa, pb) in layer_params_list:
        w_in1.append(jnp.concatenate([pa["wq"] * scale, pb["wk"], pb["wv"]], axis=1))
        w_in2.append(jnp.concatenate([pb["wq"] * scale, pa["wk"], pa["wv"]], axis=1))
        b_in1.append(jnp.concatenate([pa["bq"] * scale, pb["bk"], pb["bv"]], axis=1))
        b_in2.append(jnp.concatenate([pb["bq"] * scale, pa["bk"], pa["bv"]], axis=1))
        wo.append(jnp.stack([pa["wo"], pb["wo"]]))
        w1.append(jnp.stack([pa["w1"], pb["w1"]]))
        w2.append(jnp.stack([pa["w2"], pb["w2"]]))
        b1.append(jnp.stack([pa["b1"], pb["b1"]]))
        vecs.append(jnp.stack([vpack(pa), vpack(pb)]))

    bf16 = jnp.bfloat16
    return dict(
        w_in1=jnp.stack(w_in1).astype(bf16), w_in2=jnp.stack(w_in2).astype(bf16),
        b_in1=jnp.stack(b_in1), b_in2=jnp.stack(b_in2),
        wo=jnp.stack(wo).astype(bf16),
        w1=jnp.stack(w1).astype(bf16), w2=jnp.stack(w2).astype(bf16),
        b1=jnp.stack(b1), vecs=jnp.stack(vecs),
    )


# --------------------------------------------------------------------------
# Fused kernel: all layers x both streams x one batch tile per grid column.
# --------------------------------------------------------------------------
def make_fused_kernel(B_t, L1, L2, D, F, num_heads):
    hd = D // num_heads
    rows1 = B_t * L1
    rows2 = B_t * L2

    def layernorm(x, gamma, beta):
        mean = jnp.mean(x, axis=-1, keepdims=True)
        var = jnp.mean(jnp.square(x - mean), axis=-1, keepdims=True)
        return (x - mean) * jax.lax.rsqrt(var + LN_EPS) * gamma + beta

    def kernel(s1_hbm, s2_hbm, m1_ref, m2_ref,
               w_in1_ref, w_in2_ref, b_in1_ref, b_in2_ref,
               wo_ref, w1_ref, w2_ref, b1_ref, vecs_ref,
               out1_ref, out2_ref,
               s1_scr, s2_scr, ctx_scr, dma_sems):
        bt = pl.program_id(0)       # batch tile
        layer = pl.program_id(1)    # layer

        # Layer 0: one-shot DMA of this batch tile's activations from HBM into
        # resident VMEM scratch (no pipelined input buffering of activations).
        @pl.when(layer == 0)
        def _():
            c1 = pltpu.make_async_copy(
                s1_hbm.at[pl.ds(bt * rows1, rows1), :], s1_scr, dma_sems.at[0])
            c2 = pltpu.make_async_copy(
                s2_hbm.at[pl.ds(bt * rows2, rows2), :], s2_scr, dma_sems.at[1])
            c1.start()
            c2.start()
            c1.wait()
            c2.wait()

        x1 = s1_scr[...]                      # (rows1, D) f32
        x2 = s2_scr[...]                      # (rows2, D) f32
        m1 = m1_ref[...]                      # (B_t, 1, L1) additive mask
        m2 = m2_ref[...]                      # (B_t, 1, L2)

        # Packed input projections (bf16 weights, f32 accumulation):
        # p1 = [ q1 | k consumed by stream2 | v consumed by stream2 ]
        # p2 = [ q2 | k consumed by stream1 | v consumed by stream1 ]
        p1 = jnp.dot(x1.astype(jnp.bfloat16), w_in1_ref[0],
                     preferred_element_type=jnp.float32) + b_in1_ref[0]
        p2 = jnp.dot(x2.astype(jnp.bfloat16), w_in2_ref[0],
                     preferred_element_type=jnp.float32) + b_in2_ref[0]

        q1 = p1[:, 0 * D:1 * D].reshape(B_t, L1, D)
        k2 = p1[:, 1 * D:2 * D].reshape(B_t, L1, D)
        v2 = p1[:, 2 * D:3 * D].reshape(B_t, L1, D)
        q2 = p2[:, 0 * D:1 * D].reshape(B_t, L2, D)
        k1 = p2[:, 1 * D:2 * D].reshape(B_t, L2, D)
        v1 = p2[:, 2 * D:3 * D].reshape(B_t, L2, D)

        def mha(q, k, v, mask, Lq, Lk, rows, sidx):
            """q: (B_t,Lq,D); k,v: (B_t,Lk,D); mask: (B_t,1,Lk). Returns (rows, D)."""
            q_b = q.astype(jnp.bfloat16)
            k_b = k.astype(jnp.bfloat16)
            v_b = v.astype(jnp.bfloat16)
            # Hoist the mask broadcast out of the head loop (JAX does not CSE it).
            mask_b = jnp.broadcast_to(mask, (B_t, Lq, Lk))
            for h in range(num_heads):
                lo = h * hd
                qh = q_b[:, :, lo:lo + hd]
                kh = k_b[:, :, lo:lo + hd]
                vh = v_b[:, :, lo:lo + hd]
                s = jnp.einsum('bqd,bkd->bqk', qh, kh,
                               preferred_element_type=jnp.float32) + mask_b
                s = s - jnp.max(s, axis=-1, keepdims=True)
                p = jnp.exp(s)
                # Exact reciprocal (approx=False) for parity with the reference.
                p = p * pl.reciprocal(jnp.sum(p, axis=-1, keepdims=True))
                ch = jnp.einsum('bqk,bkd->bqd', p.astype(jnp.bfloat16), vh,
                                preferred_element_type=jnp.float32)   # (B_t,Lq,hd)
                # Assemble the full-width context in VMEM so the output
                # projection runs as ONE K=D matmul (fills the MXU K dim)
                # instead of num_heads K=head_dim matmuls + VPU accumulation.
                ctx_scr[0:rows, lo:lo + hd] = ch.reshape(rows, hd)
            ctx = ctx_scr[0:rows, :].astype(jnp.bfloat16)
            return jnp.dot(ctx, wo_ref[0, sidx],
                           preferred_element_type=jnp.float32)         # (rows, D)

        def sublayer(x, q, k, v, mask, Lq, Lk, rows, sidx):
            vecs = vecs_ref[0, sidx]          # (6, D): bo, g1, be1, b2, g2, be2
            bo, g1, be1 = vecs[0:1], vecs[1:2], vecs[2:3]
            b2, g2, be2 = vecs[3:4], vecs[4:5], vecs[5:6]

            attn = mha(q, k, v, mask, Lq, Lk, rows, sidx) + bo
            y = layernorm(x + attn, g1, be1)

            h = jnp.dot(y.astype(jnp.bfloat16), w1_ref[0, sidx],
                        preferred_element_type=jnp.float32) + b1_ref[0, sidx]
            h = jnp.maximum(h, 0.0)
            h = jnp.dot(h.astype(jnp.bfloat16), w2_ref[0, sidx],
                        preferred_element_type=jnp.float32) + b2
            return layernorm(y + h, g2, be2)

        # Stream1 attends to stream2 (keys masked by padding_mask2) and vice versa.
        new1 = sublayer(x1, q1, k1, v1, m2, L1, L2, rows1, 0)
        new2 = sublayer(x2, q2, k2, v2, m1, L2, L1, rows2, 1)

        s1_scr[...] = new1
        s2_scr[...] = new2

        @pl.when(layer == pl.num_programs(1) - 1)
        def _():
            out1_ref[...] = new1.astype(out1_ref.dtype)
            out2_ref[...] = new2.astype(out2_ref.dtype)

    return kernel


# --------------------------------------------------------------------------
# Wrapper.
# --------------------------------------------------------------------------
def _pick_num_batch_tiles(B, L1, L2, D, F, inter_budget_bytes=8 << 20):
    """Choose the batch-tile count: >= 2 when possible (v7x has 2 TensorCores)
    and enough tiles that the large per-tile f32 intermediates (packed QKV slab,
    FFN hidden) stay bounded.  Tiles must keep row blocks sublane-aligned."""
    best = 1
    for n in range(2, B + 1):
        if B % n:
            continue
        bt = B // n
        if (bt * L1) % 8 or (bt * L2) % 8:
            continue
        best = n
        if 4 * bt * (L1 + L2) * max(3 * D, F) <= inter_budget_bytes:
            break
    return best


def co_transformer_forward(seqs1, seqs2, padding_mask1, padding_mask2,
                           layer_params_list, num_heads=NUM_HEADS):
    """seqs*: (L, B, D); padding_mask*: (B, L) bool (True == pad). Returns same layout."""
    L1, B, D = seqs1.shape
    L2 = seqs2.shape[0]
    out_dtype = seqs1.dtype
    packed = pack_layer_params(layer_params_list, D, num_heads)
    num_layers = packed["w_in1"].shape[0]
    F = packed["w1"].shape[-1]

    n_btiles = _pick_num_batch_tiles(B, L1, L2, D, F)
    B_t = B // n_btiles
    rows1, rows2 = B_t * L1, B_t * L2

    # (L, B, D) -> (B*L, D) batch-major; activations kept f32 inside the kernel.
    s1 = jnp.transpose(seqs1, (1, 0, 2)).reshape(B * L1, D).astype(jnp.float32)
    s2 = jnp.transpose(seqs2, (1, 0, 2)).reshape(B * L2, D).astype(jnp.float32)
    m1 = jnp.where(padding_mask1, NEG_INF, 0.0).astype(jnp.float32)[:, None, :]  # (B,1,L1)
    m2 = jnp.where(padding_mask2, NEG_INF, 0.0).astype(jnp.float32)[:, None, :]  # (B,1,L2)

    kernel = make_fused_kernel(B_t, L1, L2, D, F, num_heads)

    # --- Explicit VMEM budget: double-buffered bf16 weight slabs + resident
    #     activation scratch + output blocks + context scratch + intermediates.
    w_slab = (2 * D * 3 * D + 2 * D * D + 2 * D * F + 2 * F * D) * 2      # bf16 bytes
    w_small = (2 * 3 * D + 2 * F + 2 * 6 * D) * 4                         # f32 bias/LN
    resident = (rows1 + rows2) * D * 4 * 3          # s1/s2 scratch + 2x output bufs
    ctx_bytes = max(rows1, rows2) * D * 4
    inter = (rows1 + rows2) * (3 * D + F) * 4 + 4 * B_t * L1 * L2 * 4
    vmem_limit = int(min(128 << 20,
                         max(32 << 20,
                             2 * (2 * (w_slab + w_small) + resident + ctx_bytes + inter))))

    # --- Advisory cost estimate for XLA's scheduler around the custom call.
    flops_layer = 0
    for Lq, Lk in ((L1, L2), (L2, L1)):
        rows = B * Lq
        flops_layer += 2 * rows * D * 3 * D          # packed qkv projection
        flops_layer += 4 * B * Lq * Lk * D           # scores + context
        flops_layer += 2 * rows * D * D              # output projection
        flops_layer += 4 * rows * D * F              # FFN (two matmuls)
    cost = pl.CostEstimate(
        flops=int(num_layers * flops_layer),
        transcendentals=int(num_layers * 2 * B * L1 * L2),
        bytes_accessed=int(2 * (s1.size + s2.size) * 4
                           + (m1.size + m2.size) * 4
                           + num_layers * n_btiles * (w_slab + w_small)),
    )

    # NOTE: on v5e (low HBM BW, large VMEM) pipeline_mode=pl.Buffered(3) on the
    # big weight specs is a cheap extra knob if the weight DMA shows up exposed.
    grid_spec = pltpu.PrefetchScalarGridSpec(
        num_scalar_prefetch=0,
        grid=(n_btiles, num_layers),
        in_specs=[
            pl.BlockSpec(memory_space=pl.ANY),                        # s1 (HBM)
            pl.BlockSpec(memory_space=pl.ANY),                        # s2 (HBM)
            pl.BlockSpec((B_t, 1, L1), lambda b, l: (b, 0, 0)),       # mask1
            pl.BlockSpec((B_t, 1, L2), lambda b, l: (b, 0, 0)),       # mask2
            pl.BlockSpec((1, D, 3 * D), lambda b, l: (l, 0, 0)),      # w_in1 (bf16)
            pl.BlockSpec((1, D, 3 * D), lambda b, l: (l, 0, 0)),      # w_in2 (bf16)
            pl.BlockSpec((1, 1, 3 * D), lambda b, l: (l, 0, 0)),      # b_in1
            pl.BlockSpec((1, 1, 3 * D), lambda b, l: (l, 0, 0)),      # b_in2
            pl.BlockSpec((1, 2, D, D), lambda b, l: (l, 0, 0, 0)),    # wo (bf16)
            pl.BlockSpec((1, 2, D, F), lambda b, l: (l, 0, 0, 0)),    # w1 (bf16)
            pl.BlockSpec((1, 2, F, D), lambda b, l: (l, 0, 0, 0)),    # w2 (bf16)
            pl.BlockSpec((1, 2, 1, F), lambda b, l: (l, 0, 0, 0)),    # b1
            pl.BlockSpec((1, 2, 6, D), lambda b, l: (l, 0, 0, 0)),    # vecs
        ],
        out_specs=[
            pl.BlockSpec((rows1, D), lambda b, l: (b, 0)),
            pl.BlockSpec((rows2, D), lambda b, l: (b, 0)),
        ],
        scratch_shapes=[
            pltpu.VMEM((rows1, D), jnp.float32),               # resident stream1
            pltpu.VMEM((rows2, D), jnp.float32),               # resident stream2
            pltpu.VMEM((max(rows1, rows2), D), jnp.float32),   # attn context
            pltpu.SemaphoreType.DMA((2,)),
        ],
    )

    out1, out2 = pl.pallas_call(
        kernel,
        out_shape=(jax.ShapeDtypeStruct((B * L1, D), jnp.float32),
                   jax.ShapeDtypeStruct((B * L2, D), jnp.float32)),
        grid_spec=grid_spec,
        compiler_params=pltpu.CompilerParams(
            dimension_semantics=("parallel", "arbitrary"),
            vmem_limit_bytes=vmem_limit),
        cost_estimate=cost,
    )(s1, s2, m1, m2,
      packed["w_in1"], packed["w_in2"], packed["b_in1"], packed["b_in2"],
      packed["wo"], packed["w1"], packed["w2"], packed["b1"], packed["vecs"])

    out1 = jnp.transpose(out1.reshape(B, L1, D), (1, 0, 2)).astype(out_dtype)
    out2 = jnp.transpose(out2.reshape(B, L2, D), (1, 0, 2)).astype(out_dtype)
    return out1, out2


# --------------------------------------------------------------------------
# Demo.
# --------------------------------------------------------------------------
if __name__ == "__main__":
    # D=128 keeps the activation slices / stores lane-dense (128-wide).
    L1, L2, B, D, F = 8, 16, 2, 128, 256
    NUM_LAYERS = 2
    assert D % NUM_HEADS == 0

    key = jax.random.PRNGKey(0)
    k_s1, k_s2, k_p = jax.random.split(key, 3)

    seqs1 = jax.random.normal(k_s1, (L1, B, D), jnp.float32)
    seqs2 = jax.random.normal(k_s2, (L2, B, D), jnp.float32)
    # key_padding_mask convention: True == padded position (ignored by attention).
    padding_mask1 = jnp.zeros((B, L1), jnp.bool_).at[:, -2:].set(True)
    padding_mask2 = jnp.zeros((B, L2), jnp.bool_).at[:, -4:].set(True)

    # CoTransformer deep-copies the same layer, so every layer holds identical
    # parameter values; each layer has separate parameter sets per stream.
    params_a = init_sublayer_params(k_p, D, F)
    params_b = init_sublayer_params(jax.random.fold_in(k_p, 1), D, F)
    layer_params_list = [(params_a, params_b) for _ in range(NUM_LAYERS)]

    out1, out2 = co_transformer_forward(
        seqs1, seqs2, padding_mask1, padding_mask2, layer_params_list)
    out1 = jax.block_until_ready(out1)
    out2 = jax.block_until_ready(out2)

    assert out1.shape == (L1, B, D) and out2.shape == (L2, B, D)
    assert bool(jnp.all(jnp.isfinite(out1))) and bool(jnp.all(jnp.isfinite(out2)))
    print("KERNEL_OK")
</pallas_src>

<mosaic_0001>
module attributes {stable_mosaic.version = 11 : i64} {
  func.func @kernel(%arg0: i32, %arg1: i32, %arg2: memref<16x128xf32, #tpu.memory_space<any>>, %arg3: memref<32x128xf32, #tpu.memory_space<any>>, %arg4: memref<1x1x8xf32, #tpu.memory_space<vmem>>, %arg5: memref<1x1x16xf32, #tpu.memory_space<vmem>>, %arg6: memref<1x128x384xbf16, #tpu.memory_space<vmem>>, %arg7: memref<1x128x384xbf16, #tpu.memory_space<vmem>>, %arg8: memref<1x1x384xf32, #tpu.memory_space<vmem>>, %arg9: memref<1x1x384xf32, #tpu.memory_space<vmem>>, %arg10: memref<1x2x128x128xbf16, #tpu.memory_space<vmem>>, %arg11: memref<1x2x128x256xbf16, #tpu.memory_space<vmem>>, %arg12: memref<1x2x256x128xbf16, #tpu.memory_space<vmem>>, %arg13: memref<1x2x1x256xf32, #tpu.memory_space<vmem>>, %arg14: memref<1x2x6x128xf32, #tpu.memory_space<vmem>>, %arg15: memref<8x128xf32, #tpu.memory_space<vmem>>, %arg16: memref<16x128xf32, #tpu.memory_space<vmem>>, %arg17: memref<8x128xf32, #tpu.memory_space<vmem>>, %arg18: memref<16x128xf32, #tpu.memory_space<vmem>>, %arg19: memref<16x128xf32, #tpu.memory_space<vmem>>, %arg20: memref<2x!tpu.dma_semaphore, #tpu.memory_space<semaphore_mem>>) attributes {dimension_semantics = [#tpu.dimension_semantics<parallel>, #tpu.dimension_semantics<arbitrary>], iteration_bounds = array<i64: 2, 2>, scalar_prefetch = 0 : i64, scratch_operands = 4 : i64, tpu.core_type = #tpu.core_type<tc>, window_params = [{}, {}, {transform_indices = @transform_2, window_bounds = array<i64: 1, 1, 8>}, {transform_indices = @transform_3, window_bounds = array<i64: 1, 1, 16>}, {transform_indices = @transform_4, window_bounds = array<i64: 1, 128, 384>}, {transform_indices = @transform_5, window_bounds = array<i64: 1, 128, 384>}, {transform_indices = @transform_6, window_bounds = array<i64: 1, 1, 384>}, {transform_indices = @transform_7, window_bounds = array<i64: 1, 1, 384>}, {transform_indices = @transform_8, window_bounds = array<i64: 1, 2, 128, 128>}, {transform_indices = @transform_9, window_bounds = array<i64: 1, 2, 128, 256>}, {transform_indices = @transform_10, window_bounds = array<i64: 1, 2, 256, 128>}, {transform_indices = @transform_11, window_bounds = array<i64: 1, 2, 1, 256>}, {transform_indices = @transform_12, window_bounds = array<i64: 1, 2, 6, 128>}, {transform_indices = @transform_13, window_bounds = array<i64: 8, 128>}, {transform_indices = @transform_14, window_bounds = array<i64: 16, 128>}]} {
    %c0_i32 = arith.constant 0 : i32
    %0 = arith.cmpi eq, %arg1, %c0_i32 : i32
    %1 = arith.extui %0 : i1 to i32
    %c0_i32_0 = arith.constant 0 : i32
    %2 = arith.cmpi ne, %1, %c0_i32_0 : i32
    scf.if %2 {
      %c8_i32 = arith.constant 8 : i32
      %356 = arith.muli %arg0, %c8_i32 : i32
      %c16_i32 = arith.constant 16 : i32
      %357 = arith.muli %arg0, %c16_i32 : i32
      %c0_i32_144 = arith.constant 0 : i32
      %c0_i32_145 = arith.constant 0 : i32
      %358 = tpu.memref_slice %arg2[%356, %c0_i32_145] : memref<16x128xf32, #tpu.memory_space<any>> -> memref<8x128xf32, #tpu.memory_space<any>>
      %359 = tpu.memref_slice %arg20[%c0_i32_144] : memref<2x!tpu.dma_semaphore, #tpu.memory_space<semaphore_mem>> -> memref<1x!tpu.dma_semaphore, #tpu.memory_space<semaphore_mem>>
      %360 = tpu.memref_squeeze %359 : memref<1x!tpu.dma_semaphore, #tpu.memory_space<semaphore_mem>> -> memref<!tpu.dma_semaphore, #tpu.memory_space<semaphore_mem>>
      tpu.enqueue_dma source(%358 : memref<8x128xf32, #tpu.memory_space<any>>) target(%arg17 : memref<8x128xf32, #tpu.memory_space<vmem>>) target_semaphore(%360 : memref<!tpu.dma_semaphore, #tpu.memory_space<semaphore_mem>>)
      %c1_i32_146 = arith.constant 1 : i32
      %c0_i32_147 = arith.constant 0 : i32
      %361 = tpu.memref_slice %arg3[%357, %c0_i32_147] : memref<32x128xf32, #tpu.memory_space<any>> -> memref<16x128xf32, #tpu.memory_space<any>>
      %362 = tpu.memref_slice %arg20[%c1_i32_146] : memref<2x!tpu.dma_semaphore, #tpu.memory_space<semaphore_mem>> -> memref<1x!tpu.dma_semaphore, #tpu.memory_space<semaphore_mem>>
      %363 = tpu.memref_squeeze %362 : memref<1x!tpu.dma_semaphore, #tpu.memory_space<semaphore_mem>> -> memref<!tpu.dma_semaphore, #tpu.memory_space<semaphore_mem>>
      tpu.enqueue_dma source(%361 : memref<16x128xf32, #tpu.memory_space<any>>) target(%arg18 : memref<16x128xf32, #tpu.memory_space<vmem>>) target_semaphore(%363 : memref<!tpu.dma_semaphore, #tpu.memory_space<semaphore_mem>>)
      %c0_i32_148 = arith.constant 0 : i32
      %c0_i32_149 = arith.constant 0 : i32
      %364 = tpu.memref_slice %arg2[%356, %c0_i32_149] : memref<16x128xf32, #tpu.memory_space<any>> -> memref<8x128xf32, #tpu.memory_space<any>>
      %365 = tpu.memref_slice %arg20[%c0_i32_148] : memref<2x!tpu.dma_semaphore, #tpu.memory_space<semaphore_mem>> -> memref<1x!tpu.dma_semaphore, #tpu.memory_space<semaphore_mem>>
      %366 = tpu.memref_squeeze %365 : memref<1x!tpu.dma_semaphore, #tpu.memory_space<semaphore_mem>> -> memref<!tpu.dma_semaphore, #tpu.memory_space<semaphore_mem>>
      tpu.wait_dma2 semaphore(%366 : memref<!tpu.dma_semaphore, #tpu.memory_space<semaphore_mem>>) src(%364 : memref<8x128xf32, #tpu.memory_space<any>>) dst(%arg17 : memref<8x128xf32, #tpu.memory_space<vmem>>)
      %c1_i32_150 = arith.constant 1 : i32
      %c0_i32_151 = arith.constant 0 : i32
      %367 = tpu.memref_slice %arg3[%357, %c0_i32_151] : memref<32x128xf32, #tpu.memory_space<any>> -> memref<16x128xf32, #tpu.memory_space<any>>
      %368 = tpu.memref_slice %arg20[%c1_i32_150] : memref<2x!tpu.dma_semaphore, #tpu.memory_space<semaphore_mem>> -> memref<1x!tpu.dma_semaphore, #tpu.memory_space<semaphore_mem>>
      %369 = tpu.memref_squeeze %368 : memref<1x!tpu.dma_semaphore, #tpu.memory_space<semaphore_mem>> -> memref<!tpu.dma_semaphore, #tpu.memory_space<semaphore_mem>>
      tpu.wait_dma2 semaphore(%369 : memref<!tpu.dma_semaphore, #tpu.memory_space<semaphore_mem>>) src(%367 : memref<16x128xf32, #tpu.memory_space<any>>) dst(%arg18 : memref<16x128xf32, #tpu.memory_space<vmem>>)
    } else {
    }
    %c0 = arith.constant 0 : index
    %c0_1 = arith.constant 0 : index
    %3 = vector.load %arg17[%c0, %c0_1] : memref<8x128xf32, #tpu.memory_space<vmem>>, vector<8x128xf32>
    %c0_2 = arith.constant 0 : index
    %c0_3 = arith.constant 0 : index
    %4 = vector.load %arg18[%c0_2, %c0_3] : memref<16x128xf32, #tpu.memory_space<vmem>>, vector<16x128xf32>
    %c0_4 = arith.constant 0 : index
    %c0_5 = arith.constant 0 : index
    %c0_6 = arith.constant 0 : index
    %5 = vector.load %arg4[%c0_4, %c0_5, %c0_6] : memref<1x1x8xf32, #tpu.memory_space<vmem>>, vector<1x1x8xf32>
    %c0_7 = arith.constant 0 : index
    %c0_8 = arith.constant 0 : index
    %c0_9 = arith.constant 0 : index
    %6 = vector.load %arg5[%c0_7, %c0_8, %c0_9] : memref<1x1x16xf32, #tpu.memory_space<vmem>>, vector<1x1x16xf32>
    %7 = arith.truncf %3 : vector<8x128xf32> to vector<8x128xbf16>
    %c0_10 = arith.constant 0 : index
    %c0_11 = arith.constant 0 : index
    %c0_12 = arith.constant 0 : index
    %8 = vector.load %arg6[%c0_10, %c0_11, %c0_12] : memref<1x128x384xbf16, #tpu.memory_space<vmem>>, vector<1x128x384xbf16>
    %9 = vector.shape_cast %8 : vector<1x128x384xbf16> to vector<128x384xbf16>
    %cst = arith.constant dense<0.000000e+00> : vector<8x384xf32>
    %10 = tpu.matmul %7, %9, %cst {dimension_numbers = #tpu.dot_dimension_numbers<[1], [0], [0], [1], [0, 0, 1, 1], [], []>} : vector<8x128xbf16>, vector<128x384xbf16>, vector<8x384xf32> -> vector<8x384xf32>
    %c0_13 = arith.constant 0 : index
    %c0_14 = arith.constant 0 : index
    %c0_15 = arith.constant 0 : index
    %11 = vector.load %arg8[%c0_13, %c0_14, %c0_15] : memref<1x1x384xf32, #tpu.memory_space<vmem>>, vector<1x1x384xf32>
    %12 = vector.shape_cast %11 : vector<1x1x384xf32> to vector<1x384xf32>
    %13 = vector.broadcast %12 : vector<1x384xf32> to vector<8x384xf32>
    %14 = arith.addf %10, %13 : vector<8x384xf32>
    %15 = arith.truncf %4 : vector<16x128xf32> to vector<16x128xbf16>
    %c0_16 = arith.constant 0 : index
    %c0_17 = arith.constant 0 : index
    %c0_18 = arith.constant 0 : index
    %16 = vector.load %arg7[%c0_16, %c0_17, %c0_18] : memref<1x128x384xbf16, #tpu.memory_space<vmem>>, vector<1x128x384xbf16>
    %17 = vector.shape_cast %16 : vector<1x128x384xbf16> to vector<128x384xbf16>
    %cst_19 = arith.constant dense<0.000000e+00> : vector<16x384xf32>
    %18 = tpu.matmul %15, %17, %cst_19 {dimension_numbers = #tpu.dot_dimension_numbers<[1], [0], [0], [1], [0, 0, 1, 1], [], []>} : vector<16x128xbf16>, vector<128x384xbf16>, vector<16x384xf32> -> vector<16x384xf32>
    %c0_20 = arith.constant 0 : index
    %c0_21 = arith.constant 0 : index
    %c0_22 = arith.constant 0 : index
    %19 = vector.load %arg9[%c0_20, %c0_21, %c0_22] : memref<1x1x384xf32, #tpu.memory_space<vmem>>, vector<1x1x384xf32>
    %20 = vector.shape_cast %19 : vector<1x1x384xf32> to vector<1x384xf32>
    %21 = vector.broadcast %20 : vector<1x384xf32> to vector<16x384xf32>
    %22 = arith.addf %18, %21 : vector<16x384xf32>
    %23 = vector.extract_strided_slice %14 {offsets = [0, 0], sizes = [8, 128], strides = [1, 1]} : vector<8x384xf32> to vector<8x128xf32>
    %24 = vector.shape_cast %23 : vector<8x128xf32> to vector<1x8x128xf32>
    %25 = vector.extract_strided_slice %14 {offsets = [0, 128], sizes = [8, 128], strides = [1, 1]} : vector<8x384xf32> to vector<8x128xf32>
    %26 = vector.shape_cast %25 : vector<8x128xf32> to vector<1x8x128xf32>
    %27 = vector.extract_strided_slice %14 {offsets = [0, 256], sizes = [8, 128], strides = [1, 1]} : vector<8x384xf32> to vector<8x128xf32>
    %28 = vector.shape_cast %27 : vector<8x128xf32> to vector<1x8x128xf32>
    %29 = vector.extract_strided_slice %22 {offsets = [0, 0], sizes = [16, 128], strides = [1, 1]} : vector<16x384xf32> to vector<16x128xf32>
    %30 = vector.shape_cast %29 : vector<16x128xf32> to vector<1x16x128xf32>
    %31 = vector.extract_strided_slice %22 {offsets = [0, 128], sizes = [16, 128], strides = [1, 1]} : vector<16x384xf32> to vector<16x128xf32>
    %32 = vector.shape_cast %31 : vector<16x128xf32> to vector<1x16x128xf32>
    %33 = vector.extract_strided_slice %22 {offsets = [0, 256], sizes = [16, 128], strides = [1, 1]} : vector<16x384xf32> to vector<16x128xf32>
    %34 = vector.shape_cast %33 : vector<16x128xf32> to vector<1x16x128xf32>
    %c0_23 = arith.constant 0 : index
    %c0_24 = arith.constant 0 : index
    %c0_25 = arith.constant 0 : index
    %c0_26 = arith.constant 0 : index
    %35 = vector.load %arg14[%c0_23, %c0_24, %c0_25, %c0_26] : memref<1x2x6x128xf32, #tpu.memory_space<vmem>>, vector<1x1x6x128xf32>
    %36 = vector.shape_cast %35 : vector<1x1x6x128xf32> to vector<6x128xf32>
    %37 = vector.extract_strided_slice %36 {offsets = [0, 0], sizes = [1, 128], strides = [1, 1]} : vector<6x128xf32> to vector<1x128xf32>
    %38 = vector.extract_strided_slice %36 {offsets = [1, 0], sizes = [1, 128], strides = [1, 1]} : vector<6x128xf32> to vector<1x128xf32>
    %39 = vector.extract_strided_slice %36 {offsets = [2, 0], sizes = [1, 128], strides = [1, 1]} : vector<6x128xf32> to vector<1x128xf32>
    %40 = vector.extract_strided_slice %36 {offsets = [3, 0], sizes = [1, 128], strides = [1, 1]} : vector<6x128xf32> to vector<1x128xf32>
    %41 = vector.extract_strided_slice %36 {offsets = [4, 0], sizes = [1, 128], strides = [1, 1]} : vector<6x128xf32> to vector<1x128xf32>
    %42 = vector.extract_strided_slice %36 {offsets = [5, 0], sizes = [1, 128], strides = [1, 1]} : vector<6x128xf32> to vector<1x128xf32>
    %43 = arith.truncf %24 : vector<1x8x128xf32> to vector<1x8x128xbf16>
    %44 = arith.truncf %32 : vector<1x16x128xf32> to vector<1x16x128xbf16>
    %45 = arith.truncf %34 : vector<1x16x128xf32> to vector<1x16x128xbf16>
    %46 = vector.shape_cast %6 : vector<1x1x16xf32> to vector<1x1x16xf32>
    %47 = vector.broadcast %46 : vector<1x1x16xf32> to vector<1x8x16xf32>
    %48 = vector.extract_strided_slice %43 {offsets = [0, 0, 0], sizes = [1, 8, 32], strides = [1, 1, 1]} : vector<1x8x128xbf16> to vector<1x8x32xbf16>
    %49 = vector.extract_strided_slice %44 {offsets = [0, 0, 0], sizes = [1, 16, 32], strides = [1, 1, 1]} : vector<1x16x128xbf16> to vector<1x16x32xbf16>
    %50 = vector.extract_strided_slice %45 {offsets = [0, 0, 0], sizes = [1, 16, 32], strides = [1, 1, 1]} : vector<1x16x128xbf16> to vector<1x16x32xbf16>
    "tpu.trace_start"() <{level = 10 : i32, message = "bqd,bkd->bqk"}> : () -> ()
    %cst_27 = arith.constant dense<0.000000e+00> : vector<1x8x16xf32>
    %51 = tpu.matmul %48, %49, %cst_27 {dimension_numbers = #tpu.dot_dimension_numbers<[2], [2], [1], [1], [0, 0, 0, 1, 1, 1], [0], [0]>} : vector<1x8x32xbf16>, vector<1x16x32xbf16>, vector<1x8x16xf32> -> vector<1x8x16xf32>
    "tpu.trace_stop"() : () -> ()
    %52 = arith.addf %51, %47 : vector<1x8x16xf32>
    %cst_28 = arith.constant dense<0xFF800000> : vector<1x8xf32>
    %53 = vector.multi_reduction <maximumf>, %52, %cst_28 [2] : vector<1x8x16xf32> to vector<1x8xf32>
    %54 = vector.shape_cast %53 : vector<1x8xf32> to vector<1x8x1xf32>
    %55 = vector.broadcast %54 : vector<1x8x1xf32> to vector<1x8x16xf32>
    %56 = arith.subf %52, %55 : vector<1x8x16xf32>
    %57 = math.exp %56 : vector<1x8x16xf32>
    %cst_29 = arith.constant dense<0.000000e+00> : vector<1x8xf32>
    %58 = vector.multi_reduction <add>, %57, %cst_29 [2] : vector<1x8x16xf32> to vector<1x8xf32>
    %59 = vector.shape_cast %58 : vector<1x8xf32> to vector<1x8x1xf32>
    %60 = tpu.reciprocal %59 : vector<1x8x1xf32> -> vector<1x8x1xf32>
    %61 = vector.broadcast %60 : vector<1x8x1xf32> to vector<1x8x16xf32>
    %62 = arith.mulf %57, %61 : vector<1x8x16xf32>
    %63 = arith.truncf %62 : vector<1x8x16xf32> to vector<1x8x16xbf16>
    "tpu.trace_start"() <{level = 10 : i32, message = "bqk,bkd->bqd"}> : () -> ()
    %cst_30 = arith.constant dense<0.000000e+00> : vector<1x8x32xf32>
    %64 = tpu.matmul %63, %50, %cst_30 {dimension_numbers = #tpu.dot_dimension_numbers<[2], [1], [1], [2], [0, 0, 0, 1, 1, 2], [0], [0]>} : vector<1x8x16xbf16>, vector<1x16x32xbf16>, vector<1x8x32xf32> -> vector<1x8x32xf32>
    "tpu.trace_stop"() : () -> ()
    %65 = vector.shape_cast %64 : vector<1x8x32xf32> to vector<8x32xf32>
    %c0_31 = arith.constant 0 : index
    %c0_32 = arith.constant 0 : index
    %66 = vector.load %arg19[%c0_31, %c0_32] : memref<16x128xf32, #tpu.memory_space<vmem>>, vector<8x32xf32>
    tpu.vector_store %arg19[%c0_31, %c0_32], %65 {strides = array<i32>} : memref<16x128xf32, #tpu.memory_space<vmem>>, vector<8x32xf32>,
    %67 = vector.extract_strided_slice %43 {offsets = [0, 0, 32], sizes = [1, 8, 32], strides = [1, 1, 1]} : vector<1x8x128xbf16> to vector<1x8x32xbf16>
    %68 = vector.extract_strided_slice %44 {offsets = [0, 0, 32], sizes = [1, 16, 32], strides = [1, 1, 1]} : vector<1x16x128xbf16> to vector<1x16x32xbf16>
    %69 = vector.extract_strided_slice %45 {offsets = [0, 0, 32], sizes = [1, 16, 32], strides = [1, 1, 1]} : vector<1x16x128xbf16> to vector<1x16x32xbf16>
    "tpu.trace_start"() <{level = 10 : i32, message = "bqd,bkd->bqk"}> : () -> ()
    %cst_33 = arith.constant dense<0.000000e+00> : vector<1x8x16xf32>
    %70 = tpu.matmul %67, %68, %cst_33 {dimension_numbers = #tpu.dot_dimension_numbers<[2], [2], [1], [1], [0, 0, 0, 1, 1, 1], [0], [0]>} : vector<1x8x32xbf16>, vector<1x16x32xbf16>, vector<1x8x16xf32> -> vector<1x8x16xf32>
    "tpu.trace_stop"() : () -> ()
    %71 = arith.addf %70, %47 : vector<1x8x16xf32>
    %cst_34 = arith.constant dense<0xFF800000> : vector<1x8xf32>
    %72 = vector.multi_reduction <maximumf>, %71, %cst_34 [2] : vector<1x8x16xf32> to vector<1x8xf32>
    %73 = vector.shape_cast %72 : vector<1x8xf32> to vector<1x8x1xf32>
    %74 = vector.broadcast %73 : vector<1x8x1xf32> to vector<1x8x16xf32>
    %75 = arith.subf %71, %74 : vector<1x8x16xf32>
    %76 = math.exp %75 : vector<1x8x16xf32>
    %cst_35 = arith.constant dense<0.000000e+00> : vector<1x8xf32>
    %77 = vector.multi_reduction <add>, %76, %cst_35 [2] : vector<1x8x16xf32> to vector<1x8xf32>
    %78 = vector.shape_cast %77 : vector<1x8xf32> to vector<1x8x1xf32>
    %79 = tpu.reciprocal %78 : vector<1x8x1xf32> -> vector<1x8x1xf32>
    %80 = vector.broadcast %79 : vector<1x8x1xf32> to vector<1x8x16xf32>
    %81 = arith.mulf %76, %80 : vector<1x8x16xf32>
    %82 = arith.truncf %81 : vector<1x8x16xf32> to vector<1x8x16xbf16>
    "tpu.trace_start"() <{level = 10 : i32, message = "bqk,bkd->bqd"}> : () -> ()
    %cst_36 = arith.constant dense<0.000000e+00> : vector<1x8x32xf32>
    %83 = tpu.matmul %82, %69, %cst_36 {dimension_numbers = #tpu.dot_dimension_numbers<[2], [1], [1], [2], [0, 0, 0, 1, 1, 2], [0], [0]>} : vector<1x8x16xbf16>, vector<1x16x32xbf16>, vector<1x8x32xf32> -> vector<1x8x32xf32>
    "tpu.trace_stop"() : () -> ()
    %84 = vector.shape_cast %83 : vector<1x8x32xf32> to vector<8x32xf32>
    %c0_37 = arith.constant 0 : index
    %c32 = arith.constant 32 : index
    %85 = vector.load %arg19[%c0_37, %c32] : memref<16x128xf32, #tpu.memory_space<vmem>>, vector<8x32xf32>
    tpu.vector_store %arg19[%c0_37, %c32], %84 {strides = array<i32>} : memref<16x128xf32, #tpu.memory_space<vmem>>, vector<8x32xf32>,
    %86 = vector.extract_strided_slice %43 {offsets = [0, 0, 64], sizes = [1, 8, 32], strides = [1, 1, 1]} : vector<1x8x128xbf16> to vector<1x8x32xbf16>
    %87 = vector.extract_strided_slice %44 {offsets = [0, 0, 64], sizes = [1, 16, 32], strides = [1, 1, 1]} : vector<1x16x128xbf16> to vector<1x16x32xbf16>
    %88 = vector.extract_strided_slice %45 {offsets = [0, 0, 64], sizes = [1, 16, 32], strides = [1, 1, 1]} : vector<1x16x128xbf16> to vector<1x16x32xbf16>
    "tpu.trace_start"() <{level = 10 : i32, message = "bqd,bkd->bqk"}> : () -> ()
    %cst_38 = arith.constant dense<0.000000e+00> : vector<1x8x16xf32>
    %89 = tpu.matmul %86, %87, %cst_38 {dimension_numbers = #tpu.dot_dimension_numbers<[2], [2], [1], [1], [0, 0, 0, 1, 1, 1], [0], [0]>} : vector<1x8x32xbf16>, vector<1x16x32xbf16>, vector<1x8x16xf32> -> vector<1x8x16xf32>
    "tpu.trace_stop"() : () -> ()
    %90 = arith.addf %89, %47 : vector<1x8x16xf32>
    %cst_39 = arith.constant dense<0xFF800000> : vector<1x8xf32>
    %91 = vector.multi_reduction <maximumf>, %90, %cst_39 [2] : vector<1x8x16xf32> to vector<1x8xf32>
    %92 = vector.shape_cast %91 : vector<1x8xf32> to vector<1x8x1xf32>
    %93 = vector.broadcast %92 : vector<1x8x1xf32> to vector<1x8x16xf32>
    %94 = arith.subf %90, %93 : vector<1x8x16xf32>
    %95 = math.exp %94 : vector<1x8x16xf32>
    %cst_40 = arith.constant dense<0.000000e+00> : vector<1x8xf32>
    %96 = vector.multi_reduction <add>, %95, %cst_40 [2] : vector<1x8x16xf32> to vector<1x8xf32>
    %97 = vector.shape_cast %96 : vector<1x8xf32> to vector<1x8x1xf32>
    %98 = tpu.reciprocal %97 : vector<1x8x1xf32> -> vector<1x8x1xf32>
    %99 = vector.broadcast %98 : vector<1x8x1xf32> to vector<1x8x16xf32>
    %100 = arith.mulf %95, %99 : vector<1x8x16xf32>
    %101 = arith.truncf %100 : vector<1x8x16xf32> to vector<1x8x16xbf16>
    "tpu.trace_start"() <{level = 10 : i32, message = "bqk,bkd->bqd"}> : () -> ()
    %cst_41 = arith.constant dense<0.000000e+00> : vector<1x8x32xf32>
    %102 = tpu.matmul %101, %88, %cst_41 {dimension_numbers = #tpu.dot_dimension_numbers<[2], [1], [1], [2], [0, 0, 0, 1, 1, 2], [0], [0]>} : vector<1x8x16xbf16>, vector<1x16x32xbf16>, vector<1x8x32xf32> -> vector<1x8x32xf32>
    "tpu.trace_stop"() : () -> ()
    %103 = vector.shape_cast %102 : vector<1x8x32xf32> to vector<8x32xf32>
    %c0_42 = arith.constant 0 : index
    %c64 = arith.constant 64 : index
    %104 = vector.load %arg19[%c0_42, %c64] : memref<16x128xf32, #tpu.memory_space<vmem>>, vector<8x32xf32>
    tpu.vector_store %arg19[%c0_42, %c64], %103 {strides = array<i32>} : memref<16x128xf32, #tpu.memory_space<vmem>>, vector<8x32xf32>,
    %105 = vector.extract_strided_slice %43 {offsets = [0, 0, 96], sizes = [1, 8, 32], strides = [1, 1, 1]} : vector<1x8x128xbf16> to vector<1x8x32xbf16>
    %106 = vector.extract_strided_slice %44 {offsets = [0, 0, 96], sizes = [1, 16, 32], strides = [1, 1, 1]} : vector<1x16x128xbf16> to vector<1x16x32xbf16>
    %107 = vector.extract_strided_slice %45 {offsets = [0, 0, 96], sizes = [1, 16, 32], strides = [1, 1, 1]} : vector<1x16x128xbf16> to vector<1x16x32xbf16>
    "tpu.trace_start"() <{level = 10 : i32, message = "bqd,bkd->bqk"}> : () -> ()
    %cst_43 = arith.constant dense<0.000000e+00> : vector<1x8x16xf32>
    %108 = tpu.matmul %105, %106, %cst_43 {dimension_numbers = #tpu.dot_dimension_numbers<[2], [2], [1], [1], [0, 0, 0, 1, 1, 1], [0], [0]>} : vector<1x8x32xbf16>, vector<1x16x32xbf16>, vector<1x8x16xf32> -> vector<1x8x16xf32>
    "tpu.trace_stop"() : () -> ()
    %109 = arith.addf %108, %47 : vector<1x8x16xf32>
    %cst_44 = arith.constant dense<0xFF800000> : vector<1x8xf32>
    %110 = vector.multi_reduction <maximumf>, %109, %cst_44 [2] : vector<1x8x16xf32> to vector<1x8xf32>
    %111 = vector.shape_cast %110 : vector<1x8xf32> to vector<1x8x1xf32>
    %112 = vector.broadcast %111 : vector<1x8x1xf32> to vector<1x8x16xf32>
    %113 = arith.subf %109, %112 : vector<1x8x16xf32>
    %114 = math.exp %113 : vector<1x8x16xf32>
    %cst_45 = arith.constant dense<0.000000e+00> : vector<1x8xf32>
    %115 = vector.multi_reduction <add>, %114, %cst_45 [2] : vector<1x8x16xf32> to vector<1x8xf32>
    %116 = vector.shape_cast %115 : vector<1x8xf32> to vector<1x8x1xf32>
    %117 = tpu.reciprocal %116 : vector<1x8x1xf32> -> vector<1x8x1xf32>
    %118 = vector.broadcast %117 : vector<1x8x1xf32> to vector<1x8x16xf32>
    %119 = arith.mulf %114, %118 : vector<1x8x16xf32>
    %120 = arith.truncf %119 : vector<1x8x16xf32> to vector<1x8x16xbf16>
    "tpu.trace_start"() <{level = 10 : i32, message = "bqk,bkd->bqd"}> : () -> ()
    %cst_46 = arith.constant dense<0.000000e+00> : vector<1x8x32xf32>
    %121 = tpu.matmul %120, %107, %cst_46 {dimension_numbers = #tpu.dot_dimension_numbers<[2], [1], [1], [2], [0, 0, 0, 1, 1, 2], [0], [0]>} : vector<1x8x16xbf16>, vector<1x16x32xbf16>, vector<1x8x32xf32> -> vector<1x8x32xf32>
    "tpu.trace_stop"() : () -> ()
    %122 = vector.shape_cast %121 : vector<1x8x32xf32> to vector<8x32xf32>
    %c0_47 = arith.constant 0 : index
    %c96 = arith.constant 96 : index
    %123 = vector.load %arg19[%c0_47, %c96] : memref<16x128xf32, #tpu.memory_space<vmem>>, vector<8x32xf32>
    tpu.vector_store %arg19[%c0_47, %c96], %122 {strides = array<i32>} : memref<16x128xf32, #tpu.memory_space<vmem>>, vector<8x32xf32>,
    %c0_48 = arith.constant 0 : index
    %c0_49 = arith.constant 0 : index
    %124 = vector.load %arg19[%c0_48, %c0_49] : memref<16x128xf32, #tpu.memory_space<vmem>>, vector<8x128xf32>
    %125 = arith.truncf %124 : vector<8x128xf32> to vector<8x128xbf16>
    %c0_50 = arith.constant 0 : index
    %c0_51 = arith.constant 0 : index
    %c0_52 = arith.constant 0 : index
    %c0_53 = arith.constant 0 : index
    %126 = vector.load %arg10[%c0_50, %c0_51, %c0_52, %c0_53] : memref<1x2x128x128xbf16, #tpu.memory_space<vmem>>, vector<1x1x128x128xbf16>
    %127 = vector.shape_cast %126 : vector<1x1x128x128xbf16> to vector<128x128xbf16>
    %cst_54 = arith.constant dense<0.000000e+00> : vector<8x128xf32>
    %128 = tpu.matmul %125, %127, %cst_54 {dimension_numbers = #tpu.dot_dimension_numbers<[1], [0], [0], [1], [0, 0, 1, 1], [], []>} : vector<8x128xbf16>, vector<128x128xbf16>, vector<8x128xf32> -> vector<8x128xf32>
    %129 = vector.broadcast %37 : vector<1x128xf32> to vector<8x128xf32>
    %130 = arith.addf %128, %129 : vector<8x128xf32>
    %131 = arith.addf %3, %130 : vector<8x128xf32>
    %cst_55 = arith.constant dense<0.000000e+00> : vector<8xf32>
    %132 = vector.multi_reduction <add>, %131, %cst_55 [1] : vector<8x128xf32> to vector<8xf32>
    %133 = vector.shape_cast %132 : vector<8xf32> to vector<8x1xf32>
    %cst_56 = arith.constant 1.280000e+02 : f32
    %134 = vector.broadcast %cst_56 : f32 to vector<8x1xf32>
    %135 = arith.divf %133, %134 : vector<8x1xf32>
    %136 = vector.broadcast %135 : vector<8x1xf32> to vector<8x128xf32>
    %137 = arith.subf %131, %136 : vector<8x128xf32>
    %138 = arith.mulf %137, %137 : vector<8x128xf32>
    %cst_57 = arith.constant dense<0.000000e+00> : vector<8xf32>
    %139 = vector.multi_reduction <add>, %138, %cst_57 [1] : vector<8x128xf32> to vector<8xf32>
    %140 = vector.shape_cast %139 : vector<8xf32> to vector<8x1xf32>
    %cst_58 = arith.constant 1.280000e+02 : f32
    %141 = vector.broadcast %cst_58 : f32 to vector<8x1xf32>
    %142 = arith.divf %140, %141 : vector<8x1xf32>
    %143 = vector.broadcast %135 : vector<8x1xf32> to vector<8x128xf32>
    %144 = arith.subf %131, %143 : vector<8x128xf32>
    %cst_59 = arith.constant 9.99999974E-6 : f32
    %145 = vector.broadcast %cst_59 : f32 to vector<8x1xf32>
    %146 = arith.addf %142, %145 : vector<8x1xf32>
    %147 = math.rsqrt %146 : vector<8x1xf32>
    %148 = vector.broadcast %147 : vector<8x1xf32> to vector<8x128xf32>
    %149 = arith.mulf %144, %148 : vector<8x128xf32>
    %150 = vector.broadcast %38 : vector<1x128xf32> to vector<8x128xf32>
    %151 = arith.mulf %149, %150 : vector<8x128xf32>
    %152 = vector.broadcast %39 : vector<1x128xf32> to vector<8x128xf32>
    %153 = arith.addf %151, %152 : vector<8x128xf32>
    %154 = arith.truncf %153 : vector<8x128xf32> to vector<8x128xbf16>
    %c0_60 = arith.constant 0 : index
    %c0_61 = arith.constant 0 : index
    %c0_62 = arith.constant 0 : index
    %c0_63 = arith.constant 0 : index
    %155 = vector.load %arg11[%c0_60, %c0_61, %c0_62, %c0_63] : memref<1x2x128x256xbf16, #tpu.memory_space<vmem>>, vector<1x1x128x256xbf16>
    %156 = vector.shape_cast %155 : vector<1x1x128x256xbf16> to vector<128x256xbf16>
    %cst_64 = arith.constant dense<0.000000e+00> : vector<8x256xf32>
    %157 = tpu.matmul %154, %156, %cst_64 {dimension_numbers = #tpu.dot_dimension_numbers<[1], [0], [0], [1], [0, 0, 1, 1], [], []>} : vector<8x128xbf16>, vector<128x256xbf16>, vector<8x256xf32> -> vector<8x256xf32>
    %c0_65 = arith.constant 0 : index
    %c0_66 = arith.constant 0 : index
    %c0_67 = arith.constant 0 : index
    %c0_68 = arith.constant 0 : index
    %158 = vector.load %arg13[%c0_65, %c0_66, %c0_67, %c0_68] : memref<1x2x1x256xf32, #tpu.memory_space<vmem>>, vector<1x1x1x256xf32>
    %159 = vector.shape_cast %158 : vector<1x1x1x256xf32> to vector<1x256xf32>
    %160 = vector.broadcast %159 : vector<1x256xf32> to vector<8x256xf32>
    %161 = arith.addf %157, %160 : vector<8x256xf32>
    %cst_69 = arith.constant 0.000000e+00 : f32
    %162 = vector.broadcast %cst_69 : f32 to vector<8x256xf32>
    %163 = arith.maximumf %161, %162 : vector<8x256xf32>
    %164 = arith.truncf %163 : vector<8x256xf32> to vector<8x256xbf16>
    %c0_70 = arith.constant 0 : index
    %c0_71 = arith.constant 0 : index
    %c0_72 = arith.constant 0 : index
    %c0_73 = arith.constant 0 : index
    %165 = vector.load %arg12[%c0_70, %c0_71, %c0_72, %c0_73] : memref<1x2x256x128xbf16, #tpu.memory_space<vmem>>, vector<1x1x256x128xbf16>
    %166 = vector.shape_cast %165 : vector<1x1x256x128xbf16> to vector<256x128xbf16>
    %cst_74 = arith.constant dense<0.000000e+00> : vector<8x128xf32>
    %167 = tpu.matmul %164, %166, %cst_74 {dimension_numbers = #tpu.dot_dimension_numbers<[1], [0], [0], [1], [0, 0, 1, 1], [], []>} : vector<8x256xbf16>, vector<256x128xbf16>, vector<8x128xf32> -> vector<8x128xf32>
    %168 = vector.broadcast %40 : vector<1x128xf32> to vector<8x128xf32>
    %169 = arith.addf %167, %168 : vector<8x128xf32>
    %170 = arith.addf %153, %169 : vector<8x128xf32>
    %cst_75 = arith.constant dense<0.000000e+00> : vector<8xf32>
    %171 = vector.multi_reduction <add>, %170, %cst_75 [1] : vector<8x128xf32> to vector<8xf32>
    %172 = vector.shape_cast %171 : vector<8xf32> to vector<8x1xf32>
    %cst_76 = arith.constant 1.280000e+02 : f32
    %173 = vector.broadcast %cst_76 : f32 to vector<8x1xf32>
    %174 = arith.divf %172, %173 : vector<8x1xf32>
    %175 = vector.broadcast %174 : vector<8x1xf32> to vector<8x128xf32>
    %176 = arith.subf %170, %175 : vector<8x128xf32>
    %177 = arith.mulf %176, %176 : vector<8x128xf32>
    %cst_77 = arith.constant dense<0.000000e+00> : vector<8xf32>
    %178 = vector.multi_reduction <add>, %177, %cst_77 [1] : vector<8x128xf32> to vector<8xf32>
    %179 = vector.shape_cast %178 : vector<8xf32> to vector<8x1xf32>
    %cst_78 = arith.constant 1.280000e+02 : f32
    %180 = vector.broadcast %cst_78 : f32 to vector<8x1xf32>
    %181 = arith.divf %179, %180 : vector<8x1xf32>
    %182 = vector.broadcast %174 : vector<8x1xf32> to vector<8x128xf32>
    %183 = arith.subf %170, %182 : vector<8x128xf32>
    %cst_79 = arith.constant 9.99999974E-6 : f32
    %184 = vector.broadcast %cst_79 : f32 to vector<8x1xf32>
    %185 = arith.addf %181, %184 : vector<8x1xf32>
    %186 = math.rsqrt %185 : vector<8x1xf32>
    %187 = vector.broadcast %186 : vector<8x1xf32> to vector<8x128xf32>
    %188 = arith.mulf %183, %187 : vector<8x128xf32>
    %189 = vector.broadcast %41 : vector<1x128xf32> to vector<8x128xf32>
    %190 = arith.mulf %188, %189 : vector<8x128xf32>
    %191 = vector.broadcast %42 : vector<1x128xf32> to vector<8x128xf32>
    %192 = arith.addf %190, %191 : vector<8x128xf32>
    %c0_80 = arith.constant 0 : index
    %c1 = arith.constant 1 : index
    %c0_81 = arith.constant 0 : index
    %c0_82 = arith.constant 0 : index
    %193 = vector.load %arg14[%c0_80, %c1, %c0_81, %c0_82] : memref<1x2x6x128xf32, #tpu.memory_space<vmem>>, vector<1x1x6x128xf32>
    %194 = vector.shape_cast %193 : vector<1x1x6x128xf32> to vector<6x128xf32>
    %195 = vector.extract_strided_slice %194 {offsets = [0, 0], sizes = [1, 128], strides = [1, 1]} : vector<6x128xf32> to vector<1x128xf32>
    %196 = vector.extract_strided_slice %194 {offsets = [1, 0], sizes = [1, 128], strides = [1, 1]} : vector<6x128xf32> to vector<1x128xf32>
    %197 = vector.extract_strided_slice %194 {offsets = [2, 0], sizes = [1, 128], strides = [1, 1]} : vector<6x128xf32> to vector<1x128xf32>
    %198 = vector.extract_strided_slice %194 {offsets = [3, 0], sizes = [1, 128], strides = [1, 1]} : vector<6x128xf32> to vector<1x128xf32>
    %199 = vector.extract_strided_slice %194 {offsets = [4, 0], sizes = [1, 128], strides = [1, 1]} : vector<6x128xf32> to vector<1x128xf32>
    %200 = vector.extract_strided_slice %194 {offsets = [5, 0], sizes = [1, 128], strides = [1, 1]} : vector<6x128xf32> to vector<1x128xf32>
    %201 = arith.truncf %30 : vector<1x16x128xf32> to vector<1x16x128xbf16>
    %202 = arith.truncf %26 : vector<1x8x128xf32> to vector<1x8x128xbf16>
    %203 = arith.truncf %28 : vector<1x8x128xf32> to vector<1x8x128xbf16>
    %204 = vector.shape_cast %5 : vector<1x1x8xf32> to vector<1x1x8xf32>
    %205 = vector.broadcast %204 : vector<1x1x8xf32> to vector<1x16x8xf32>
    %206 = vector.extract_strided_slice %201 {offsets = [0, 0, 0], sizes = [1, 16, 32], strides = [1, 1, 1]} : vector<1x16x128xbf16> to vector<1x16x32xbf16>
    %207 = vector.extract_strided_slice %202 {offsets = [0, 0, 0], sizes = [1, 8, 32], strides = [1, 1, 1]} : vector<1x8x128xbf16> to vector<1x8x32xbf16>
    %208 = vector.extract_strided_slice %203 {offsets = [0, 0, 0], sizes = [1, 8, 32], strides = [1, 1, 1]} : vector<1x8x128xbf16> to vector<1x8x32xbf16>
    "tpu.trace_start"() <{level = 10 : i32, message = "bqd,bkd->bqk"}> : () -> ()
    %cst_83 = arith.constant dense<0.000000e+00> : vector<1x16x8xf32>
    %209 = tpu.matmul %206, %207, %cst_83 {dimension_numbers = #tpu.dot_dimension_numbers<[2], [2], [1], [1], [0, 0, 0, 1, 1, 1], [0], [0]>} : vector<1x16x32xbf16>, vector<1x8x32xbf16>, vector<1x16x8xf32> -> vector<1x16x8xf32>
    "tpu.trace_stop"() : () -> ()
    %210 = arith.addf %209, %205 : vector<1x16x8xf32>
    %cst_84 = arith.constant dense<0xFF800000> : vector<1x16xf32>
    %211 = vector.multi_reduction <maximumf>, %210, %cst_84 [2] : vector<1x16x8xf32> to vector<1x16xf32>
    %212 = vector.shape_cast %211 : vector<1x16xf32> to vector<1x16x1xf32>
    %213 = vector.broadcast %212 : vector<1x16x1xf32> to vector<1x16x8xf32>
    %214 = arith.subf %210, %213 : vector<1x16x8xf32>
    %215 = math.exp %214 : vector<1x16x8xf32>
    %cst_85 = arith.constant dense<0.000000e+00> : vector<1x16xf32>
    %216 = vector.multi_reduction <add>, %215, %cst_85 [2] : vector<1x16x8xf32> to vector<1x16xf32>
    %217 = vector.shape_cast %216 : vector<1x16xf32> to vector<1x16x1xf32>
    %218 = tpu.reciprocal %217 : vector<1x16x1xf32> -> vector<1x16x1xf32>
    %219 = vector.broadcast %218 : vector<1x16x1xf32> to vector<1x16x8xf32>
    %220 = arith.mulf %215, %219 : vector<1x16x8xf32>
    %221 = arith.truncf %220 : vector<1x16x8xf32> to vector<1x16x8xbf16>
    "tpu.trace_start"() <{level = 10 : i32, message = "bqk,bkd->bqd"}> : () -> ()
    %cst_86 = arith.constant dense<0.000000e+00> : vector<1x16x32xf32>
    %222 = tpu.matmul %221, %208, %cst_86 {dimension_numbers = #tpu.dot_dimension_numbers<[2], [1], [1], [2], [0, 0, 0, 1, 1, 2], [0], [0]>} : vector<1x16x8xbf16>, vector<1x8x32xbf16>, vector<1x16x32xf32> -> vector<1x16x32xf32>
    "tpu.trace_stop"() : () -> ()
    %223 = vector.shape_cast %222 : vector<1x16x32xf32> to vector<16x32xf32>
    %c0_87 = arith.constant 0 : index
    %c0_88 = arith.constant 0 : index
    %224 = vector.load %arg19[%c0_87, %c0_88] : memref<16x128xf32, #tpu.memory_space<vmem>>, vector<16x32xf32>
    tpu.vector_store %arg19[%c0_87, %c0_88], %223 {strides = array<i32>} : memref<16x128xf32, #tpu.memory_space<vmem>>, vector<16x32xf32>,
    %225 = vector.extract_strided_slice %201 {offsets = [0, 0, 32], sizes = [1, 16, 32], strides = [1, 1, 1]} : vector<1x16x128xbf16> to vector<1x16x32xbf16>
    %226 = vector.extract_strided_slice %202 {offsets = [0, 0, 32], sizes = [1, 8, 32], strides = [1, 1, 1]} : vector<1x8x128xbf16> to vector<1x8x32xbf16>
    %227 = vector.extract_strided_slice %203 {offsets = [0, 0, 32], sizes = [1, 8, 32], strides = [1, 1, 1]} : vector<1x8x128xbf16> to vector<1x8x32xbf16>
    "tpu.trace_start"() <{level = 10 : i32, message = "bqd,bkd->bqk"}> : () -> ()
    %cst_89 = arith.constant dense<0.000000e+00> : vector<1x16x8xf32>
    %228 = tpu.matmul %225, %226, %cst_89 {dimension_numbers = #tpu.dot_dimension_numbers<[2], [2], [1], [1], [0, 0, 0, 1, 1, 1], [0], [0]>} : vector<1x16x32xbf16>, vector<1x8x32xbf16>, vector<1x16x8xf32> -> vector<1x16x8xf32>
    "tpu.trace_stop"() : () -> ()
    %229 = arith.addf %228, %205 : vector<1x16x8xf32>
    %cst_90 = arith.constant dense<0xFF800000> : vector<1x16xf32>
    %230 = vector.multi_reduction <maximumf>, %229, %cst_90 [2] : vector<1x16x8xf32> to vector<1x16xf32>
    %231 = vector.shape_cast %230 : vector<1x16xf32> to vector<1x16x1xf32>
    %232 = vector.broadcast %231 : vector<1x16x1xf32> to vector<1x16x8xf32>
    %233 = arith.subf %229, %232 : vector<1x16x8xf32>
    %234 = math.exp %233 : vector<1x16x8xf32>
    %cst_91 = arith.constant dense<0.000000e+00> : vector<1x16xf32>
    %235 = vector.multi_reduction <add>, %234, %cst_91 [2] : vector<1x16x8xf32> to vector<1x16xf32>
    %236 = vector.shape_cast %235 : vector<1x16xf32> to vector<1x16x1xf32>
    %237 = tpu.reciprocal %236 : vector<1x16x1xf32> -> vector<1x16x1xf32>
    %238 = vector.broadcast %237 : vector<1x16x1xf32> to vector<1x16x8xf32>
    %239 = arith.mulf %234, %238 : vector<1x16x8xf32>
    %240 = arith.truncf %239 : vector<1x16x8xf32> to vector<1x16x8xbf16>
    "tpu.trace_start"() <{level = 10 : i32, message = "bqk,bkd->bqd"}> : () -> ()
    %cst_92 = arith.constant dense<0.000000e+00> : vector<1x16x32xf32>
    %241 = tpu.matmul %240, %227, %cst_92 {dimension_numbers = #tpu.dot_dimension_numbers<[2], [1], [1], [2], [0, 0, 0, 1, 1, 2], [0], [0]>} : vector<1x16x8xbf16>, vector<1x8x32xbf16>, vector<1x16x32xf32> -> vector<1x16x32xf32>
    "tpu.trace_stop"() : () -> ()
    %242 = vector.shape_cast %241 : vector<1x16x32xf32> to vector<16x32xf32>
    %c0_93 = arith.constant 0 : index
    %c32_94 = arith.constant 32 : index
    %243 = vector.load %arg19[%c0_93, %c32_94] : memref<16x128xf32, #tpu.memory_space<vmem>>, vector<16x32xf32>
    tpu.vector_store %arg19[%c0_93, %c32_94], %242 {strides = array<i32>} : memref<16x128xf32, #tpu.memory_space<vmem>>, vector<16x32xf32>,
    %244 = vector.extract_strided_slice %201 {offsets = [0, 0, 64], sizes = [1, 16, 32], strides = [1, 1, 1]} : vector<1x16x128xbf16> to vector<1x16x32xbf16>
    %245 = vector.extract_strided_slice %202 {offsets = [0, 0, 64], sizes = [1, 8, 32], strides = [1, 1, 1]} : vector<1x8x128xbf16> to vector<1x8x32xbf16>
    %246 = vector.extract_strided_slice %203 {offsets = [0, 0, 64], sizes = [1, 8, 32], strides = [1, 1, 1]} : vector<1x8x128xbf16> to vector<1x8x32xbf16>
    "tpu.trace_start"() <{level = 10 : i32, message = "bqd,bkd->bqk"}> : () -> ()
    %cst_95 = arith.constant dense<0.000000e+00> : vector<1x16x8xf32>
    %247 = tpu.matmul %244, %245, %cst_95 {dimension_numbers = #tpu.dot_dimension_numbers<[2], [2], [1], [1], [0, 0, 0, 1, 1, 1], [0], [0]>} : vector<1x16x32xbf16>, vector<1x8x32xbf16>, vector<1x16x8xf32> -> vector<1x16x8xf32>
    "tpu.trace_stop"() : () -> ()
    %248 = arith.addf %247, %205 : vector<1x16x8xf32>
    %cst_96 = arith.constant dense<0xFF800000> : vector<1x16xf32>
    %249 = vector.multi_reduction <maximumf>, %248, %cst_96 [2] : vector<1x16x8xf32> to vector<1x16xf32>
    %250 = vector.shape_cast %249 : vector<1x16xf32> to vector<1x16x1xf32>
    %251 = vector.broadcast %250 : vector<1x16x1xf32> to vector<1x16x8xf32>
    %252 = arith.subf %248, %251 : vector<1x16x8xf32>
    %253 = math.exp %252 : vector<1x16x8xf32>
    %cst_97 = arith.constant dense<0.000000e+00> : vector<1x16xf32>
    %254 = vector.multi_reduction <add>, %253, %cst_97 [2] : vector<1x16x8xf32> to vector<1x16xf32>
    %255 = vector.shape_cast %254 : vector<1x16xf32> to vector<1x16x1xf32>
    %256 = tpu.reciprocal %255 : vector<1x16x1xf32> -> vector<1x16x1xf32>
    %257 = vector.broadcast %256 : vector<1x16x1xf32> to vector<1x16x8xf32>
    %258 = arith.mulf %253, %257 : vector<1x16x8xf32>
    %259 = arith.truncf %258 : vector<1x16x8xf32> to vector<1x16x8xbf16>
    "tpu.trace_start"() <{level = 10 : i32, message = "bqk,bkd->bqd"}> : () -> ()
    %cst_98 = arith.constant dense<0.000000e+00> : vector<1x16x32xf32>
    %260 = tpu.matmul %259, %246, %cst_98 {dimension_numbers = #tpu.dot_dimension_numbers<[2], [1], [1], [2], [0, 0, 0, 1, 1, 2], [0], [0]>} : vector<1x16x8xbf16>, vector<1x8x32xbf16>, vector<1x16x32xf32> -> vector<1x16x32xf32>
    "tpu.trace_stop"() : () -> ()
    %261 = vector.shape_cast %260 : vector<1x16x32xf32> to vector<16x32xf32>
    %c0_99 = arith.constant 0 : index
    %c64_100 = arith.constant 64 : index
    %262 = vector.load %arg19[%c0_99, %c64_100] : memref<16x128xf32, #tpu.memory_space<vmem>>, vector<16x32xf32>
    tpu.vector_store %arg19[%c0_99, %c64_100], %261 {strides = array<i32>} : memref<16x128xf32, #tpu.memory_space<vmem>>, vector<16x32xf32>,
    %263 = vector.extract_strided_slice %201 {offsets = [0, 0, 96], sizes = [1, 16, 32], strides = [1, 1, 1]} : vector<1x16x128xbf16> to vector<1x16x32xbf16>
    %264 = vector.extract_strided_slice %202 {offsets = [0, 0, 96], sizes = [1, 8, 32], strides = [1, 1, 1]} : vector<1x8x128xbf16> to vector<1x8x32xbf16>
    %265 = vector.extract_strided_slice %203 {offsets = [0, 0, 96], sizes = [1, 8, 32], strides = [1, 1, 1]} : vector<1x8x128xbf16> to vector<1x8x32xbf16>
    "tpu.trace_start"() <{level = 10 : i32, message = "bqd,bkd->bqk"}> : () -> ()
    %cst_101 = arith.constant dense<0.000000e+00> : vector<1x16x8xf32>
    %266 = tpu.matmul %263, %264, %cst_101 {dimension_numbers = #tpu.dot_dimension_numbers<[2], [2], [1], [1], [0, 0, 0, 1, 1, 1], [0], [0]>} : vector<1x16x32xbf16>, vector<1x8x32xbf16>, vector<1x16x8xf32> -> vector<1x16x8xf32>
    "tpu.trace_stop"() : () -> ()
    %267 = arith.addf %266, %205 : vector<1x16x8xf32>
    %cst_102 = arith.constant dense<0xFF800000> : vector<1x16xf32>
    %268 = vector.multi_reduction <maximumf>, %267, %cst_102 [2] : vector<1x16x8xf32> to vector<1x16xf32>
    %269 = vector.shape_cast %268 : vector<1x16xf32> to vector<1x16x1xf32>
    %270 = vector.broadcast %269 : vector<1x16x1xf32> to vector<1x16x8xf32>
    %271 = arith.subf %267, %270 : vector<1x16x8xf32>
    %272 = math.exp %271 : vector<1x16x8xf32>
    %cst_103 = arith.constant dense<0.000000e+00> : vector<1x16xf32>
    %273 = vector.multi_reduction <add>, %272, %cst_103 [2] : vector<1x16x8xf32> to vector<1x16xf32>
    %274 = vector.shape_cast %273 : vector<1x16xf32> to vector<1x16x1xf32>
    %275 = tpu.reciprocal %274 : vector<1x16x1xf32> -> vector<1x16x1xf32>
    %276 = vector.broadcast %275 : vector<1x16x1xf32> to vector<1x16x8xf32>
    %277 = arith.mulf %272, %276 : vector<1x16x8xf32>
    %278 = arith.truncf %277 : vector<1x16x8xf32> to vector<1x16x8xbf16>
    "tpu.trace_start"() <{level = 10 : i32, message = "bqk,bkd->bqd"}> : () -> ()
    %cst_104 = arith.constant dense<0.000000e+00> : vector<1x16x32xf32>
    %279 = tpu.matmul %278, %265, %cst_104 {dimension_numbers = #tpu.dot_dimension_numbers<[2], [1], [1], [2], [0, 0, 0, 1, 1, 2], [0], [0]>} : vector<1x16x8xbf16>, vector<1x8x32xbf16>, vector<1x16x32xf32> -> vector<1x16x32xf32>
    "tpu.trace_stop"() : () -> ()
    %280 = vector.shape_cast %279 : vector<1x16x32xf32> to vector<16x32xf32>
    %c0_105 = arith.constant 0 : index
    %c96_106 = arith.constant 96 : index
    %281 = vector.load %arg19[%c0_105, %c96_106] : memref<16x128xf32, #tpu.memory_space<vmem>>, vector<16x32xf32>
    tpu.vector_store %arg19[%c0_105, %c96_106], %280 {strides = array<i32>} : memref<16x128xf32, #tpu.memory_space<vmem>>, vector<16x32xf32>,
    %c0_107 = arith.constant 0 : index
    %c0_108 = arith.constant 0 : index
    %282 = vector.load %arg19[%c0_107, %c0_108] : memref<16x128xf32, #tpu.memory_space<vmem>>, vector<16x128xf32>
    %283 = arith.truncf %282 : vector<16x128xf32> to vector<16x128xbf16>
    %c0_109 = arith.constant 0 : index
    %c1_110 = arith.constant 1 : index
    %c0_111 = arith.constant 0 : index
    %c0_112 = arith.constant 0 : index
    %284 = vector.load %arg10[%c0_109, %c1_110, %c0_111, %c0_112] : memref<1x2x128x128xbf16, #tpu.memory_space<vmem>>, vector<1x1x128x128xbf16>
    %285 = vector.shape_cast %284 : vector<1x1x128x128xbf16> to vector<128x128xbf16>
    %cst_113 = arith.constant dense<0.000000e+00> : vector<16x128xf32>
    %286 = tpu.matmul %283, %285, %cst_113 {dimension_numbers = #tpu.dot_dimension_numbers<[1], [0], [0], [1], [0, 0, 1, 1], [], []>} : vector<16x128xbf16>, vector<128x128xbf16>, vector<16x128xf32> -> vector<16x128xf32>
    %287 = vector.broadcast %195 : vector<1x128xf32> to vector<16x128xf32>
    %288 = arith.addf %286, %287 : vector<16x128xf32>
    %289 = arith.addf %4, %288 : vector<16x128xf32>
    %cst_114 = arith.constant dense<0.000000e+00> : vector<16xf32>
    %290 = vector.multi_reduction <add>, %289, %cst_114 [1] : vector<16x128xf32> to vector<16xf32>
    %291 = vector.shape_cast %290 : vector<16xf32> to vector<16x1xf32>
    %cst_115 = arith.constant 1.280000e+02 : f32
    %292 = vector.broadcast %cst_115 : f32 to vector<16x1xf32>
    %293 = arith.divf %291, %292 : vector<16x1xf32>
    %294 = vector.broadcast %293 : vector<16x1xf32> to vector<16x128xf32>
    %295 = arith.subf %289, %294 : vector<16x128xf32>
    %296 = arith.mulf %295, %295 : vector<16x128xf32>
    %cst_116 = arith.constant dense<0.000000e+00> : vector<16xf32>
    %297 = vector.multi_reduction <add>, %296, %cst_116 [1] : vector<16x128xf32> to vector<16xf32>
    %298 = vector.shape_cast %297 : vector<16xf32> to vector<16x1xf32>
    %cst_117 = arith.constant 1.280000e+02 : f32
    %299 = vector.broadcast %cst_117 : f32 to vector<16x1xf32>
    %300 = arith.divf %298, %299 : vector<16x1xf32>
    %301 = vector.broadcast %293 : vector<16x1xf32> to vector<16x128xf32>
    %302 = arith.subf %289, %301 : vector<16x128xf32>
    %cst_118 = arith.constant 9.99999974E-6 : f32
    %303 = vector.broadcast %cst_118 : f32 to vector<16x1xf32>
    %304 = arith.addf %300, %303 : vector<16x1xf32>
    %305 = math.rsqrt %304 : vector<16x1xf32>
    %306 = vector.broadcast %305 : vector<16x1xf32> to vector<16x128xf32>
    %307 = arith.mulf %302, %306 : vector<16x128xf32>
    %308 = vector.broadcast %196 : vector<1x128xf32> to vector<16x128xf32>
    %309 = arith.mulf %307, %308 : vector<16x128xf32>
    %310 = vector.broadcast %197 : vector<1x128xf32> to vector<16x128xf32>
    %311 = arith.addf %309, %310 : vector<16x128xf32>
    %312 = arith.truncf %311 : vector<16x128xf32> to vector<16x128xbf16>
    %c0_119 = arith.constant 0 : index
    %c1_120 = arith.constant 1 : index
    %c0_121 = arith.constant 0 : index
    %c0_122 = arith.constant 0 : index
    %313 = vector.load %arg11[%c0_119, %c1_120, %c0_121, %c0_122] : memref<1x2x128x256xbf16, #tpu.memory_space<vmem>>, vector<1x1x128x256xbf16>
    %314 = vector.shape_cast %313 : vector<1x1x128x256xbf16> to vector<128x256xbf16>
    %cst_123 = arith.constant dense<0.000000e+00> : vector<16x256xf32>
    %315 = tpu.matmul %312, %314, %cst_123 {dimension_numbers = #tpu.dot_dimension_numbers<[1], [0], [0], [1], [0, 0, 1, 1], [], []>} : vector<16x128xbf16>, vector<128x256xbf16>, vector<16x256xf32> -> vector<16x256xf32>
    %c0_124 = arith.constant 0 : index
    %c1_125 = arith.constant 1 : index
    %c0_126 = arith.constant 0 : index
    %c0_127 = arith.constant 0 : index
    %316 = vector.load %arg13[%c0_124, %c1_125, %c0_126, %c0_127] : memref<1x2x1x256xf32, #tpu.memory_space<vmem>>, vector<1x1x1x256xf32>
    %317 = vector.shape_cast %316 : vector<1x1x1x256xf32> to vector<1x256xf32>
    %318 = vector.broadcast %317 : vector<1x256xf32> to vector<16x256xf32>
    %319 = arith.addf %315, %318 : vector<16x256xf32>
    %cst_128 = arith.constant 0.000000e+00 : f32
    %320 = vector.broadcast %cst_128 : f32 to vector<16x256xf32>
    %321 = arith.maximumf %319, %320 : vector<16x256xf32>
    %322 = arith.truncf %321 : vector<16x256xf32> to vector<16x256xbf16>
    %c0_129 = arith.constant 0 : index
    %c1_130 = arith.constant 1 : index
    %c0_131 = arith.constant 0 : index
    %c0_132 = arith.constant 0 : index
    %323 = vector.load %arg12[%c0_129, %c1_130, %c0_131, %c0_132] : memref<1x2x256x128xbf16, #tpu.memory_space<vmem>>, vector<1x1x256x128xbf16>
    %324 = vector.shape_cast %323 : vector<1x1x256x128xbf16> to vector<256x128xbf16>
    %cst_133 = arith.constant dense<0.000000e+00> : vector<16x128xf32>
    %325 = tpu.matmul %322, %324, %cst_133 {dimension_numbers = #tpu.dot_dimension_numbers<[1], [0], [0], [1], [0, 0, 1, 1], [], []>} : vector<16x256xbf16>, vector<256x128xbf16>, vector<16x128xf32> -> vector<16x128xf32>
    %326 = vector.broadcast %198 : vector<1x128xf32> to vector<16x128xf32>
    %327 = arith.addf %325, %326 : vector<16x128xf32>
    %328 = arith.addf %311, %327 : vector<16x128xf32>
    %cst_134 = arith.constant dense<0.000000e+00> : vector<16xf32>
    %329 = vector.multi_reduction <add>, %328, %cst_134 [1] : vector<16x128xf32> to vector<16xf32>
    %330 = vector.shape_cast %329 : vector<16xf32> to vector<16x1xf32>
    %cst_135 = arith.constant 1.280000e+02 : f32
    %331 = vector.broadcast %cst_135 : f32 to vector<16x1xf32>
    %332 = arith.divf %330, %331 : vector<16x1xf32>
    %333 = vector.broadcast %332 : vector<16x1xf32> to vector<16x128xf32>
    %334 = arith.subf %328, %333 : vector<16x128xf32>
    %335 = arith.mulf %334, %334 : vector<16x128xf32>
    %cst_136 = arith.constant dense<0.000000e+00> : vector<16xf32>
    %336 = vector.multi_reduction <add>, %335, %cst_136 [1] : vector<16x128xf32> to vector<16xf32>
    %337 = vector.shape_cast %336 : vector<16xf32> to vector<16x1xf32>
    %cst_137 = arith.constant 1.280000e+02 : f32
    %338 = vector.broadcast %cst_137 : f32 to vector<16x1xf32>
    %339 = arith.divf %337, %338 : vector<16x1xf32>
    %340 = vector.broadcast %332 : vector<16x1xf32> to vector<16x128xf32>
    %341 = arith.subf %328, %340 : vector<16x128xf32>
    %cst_138 = arith.constant 9.99999974E-6 : f32
    %342 = vector.broadcast %cst_138 : f32 to vector<16x1xf32>
    %343 = arith.addf %339, %342 : vector<16x1xf32>
    %344 = math.rsqrt %343 : vector<16x1xf32>
    %345 = vector.broadcast %344 : vector<16x1xf32> to vector<16x128xf32>
    %346 = arith.mulf %341, %345 : vector<16x128xf32>
    %347 = vector.broadcast %199 : vector<1x128xf32> to vector<16x128xf32>
    %348 = arith.mulf %346, %347 : vector<16x128xf32>
    %349 = vector.broadcast %200 : vector<1x128xf32> to vector<16x128xf32>
    %350 = arith.addf %348, %349 : vector<16x128xf32>
    %c0_139 = arith.constant 0 : index
    %c0_140 = arith.constant 0 : index
    %351 = vector.load %arg17[%c0_139, %c0_140] : memref<8x128xf32, #tpu.memory_space<vmem>>, vector<8x128xf32>
    tpu.vector_store %arg17[%c0_139, %c0_140], %192 {strides = array<i32>} : memref<8x128xf32, #tpu.memory_space<vmem>>, vector<8x128xf32>,
    %c0_141 = arith.constant 0 : index
    %c0_142 = arith.constant 0 : index
    %352 = vector.load %arg18[%c0_141, %c0_142] : memref<16x128xf32, #tpu.memory_space<vmem>>, vector<16x128xf32>
    tpu.vector_store %arg18[%c0_141, %c0_142], %350 {strides = array<i32>} : memref<16x128xf32, #tpu.memory_space<vmem>>, vector<16x128xf32>,
    %c1_i32 = arith.constant 1 : i32
    %353 = arith.cmpi eq, %arg1, %c1_i32 : i32
    %354 = arith.extui %353 : i1 to i32
    %c0_i32_143 = arith.constant 0 : i32
    %355 = arith.cmpi ne, %354, %c0_i32_143 : i32
    scf.if %355 {
      %c0_144 = arith.constant 0 : index
      %c0_145 = arith.constant 0 : index
      %356 = vector.load %arg15[%c0_144, %c0_145] : memref<8x128xf32, #tpu.memory_space<vmem>>, vector<8x128xf32>
      tpu.vector_store %arg15[%c0_144, %c0_145], %192 {strides = array<i32>} : memref<8x128xf32, #tpu.memory_space<vmem>>, vector<8x128xf32>,
      %c0_146 = arith.constant 0 : index
      %c0_147 = arith.constant 0 : index
      %357 = vector.load %arg16[%c0_146, %c0_147] : memref<16x128xf32, #tpu.memory_space<vmem>>, vector<16x128xf32>
      tpu.vector_store %arg16[%c0_146, %c0_147], %350 {strides = array<i32>} : memref<16x128xf32, #tpu.memory_space<vmem>>, vector<16x128xf32>,
    } else {
    }
    return
  }
  func.func @transform_2(%arg0: i32, %arg1: i32) -> (i32, i32, i32) {
    %c0_i32 = arith.constant 0 : i32
    %c0_i32_0 = arith.constant 0 : i32
    %c0_i32_1 = arith.constant 0 : i32
    return %arg0, %c0_i32, %c0_i32_0 : i32, i32, i32
  }
  func.func @transform_3(%arg0: i32, %arg1: i32) -> (i32, i32, i32) {
    %c0_i32 = arith.constant 0 : i32
    %c0_i32_0 = arith.constant 0 : i32
    %c0_i32_1 = arith.constant 0 : i32
    return %arg0, %c0_i32, %c0_i32_0 : i32, i32, i32
  }
  func.func @transform_4(%arg0: i32, %arg1: i32) -> (i32, i32, i32) {
    %c0_i32 = arith.constant 0 : i32
    %c0_i32_0 = arith.constant 0 : i32
    %c0_i32_1 = arith.constant 0 : i32
    return %arg1, %c0_i32, %c0_i32_0 : i32, i32, i32
  }
  func.func @transform_5(%arg0: i32, %arg1: i32) -> (i32, i32, i32) {
    %c0_i32 = arith.constant 0 : i32
    %c0_i32_0 = arith.constant 0 : i32
    %c0_i32_1 = arith.constant 0 : i32
    return %arg1, %c0_i32, %c0_i32_0 : i32, i32, i32
  }
  func.func @transform_6(%arg0: i32, %arg1: i32) -> (i32, i32, i32) {
    %c0_i32 = arith.constant 0 : i32
    %c0_i32_0 = arith.constant 0 : i32
    %c0_i32_1 = arith.constant 0 : i32
    return %arg1, %c0_i32, %c0_i32_0 : i32, i32, i32
  }
  func.func @transform_7(%arg0: i32, %arg1: i32) -> (i32, i32, i32) {
    %c0_i32 = arith.constant 0 : i32
    %c0_i32_0 = arith.constant 0 : i32
    %c0_i32_1 = arith.constant 0 : i32
    return %arg1, %c0_i32, %c0_i32_0 : i32, i32, i32
  }
  func.func @transform_8(%arg0: i32, %arg1: i32) -> (i32, i32, i32, i32) {
    %c0_i32 = arith.constant 0 : i32
    %c0_i32_0 = arith.constant 0 : i32
    %c0_i32_1 = arith.constant 0 : i32
    %c0_i32_2 = arith.constant 0 : i32
    return %arg1, %c0_i32, %c0_i32_0, %c0_i32_1 : i32, i32, i32, i32
  }
  func.func @transform_9(%arg0: i32, %arg1: i32) -> (i32, i32, i32, i32) {
    %c0_i32 = arith.constant 0 : i32
    %c0_i32_0 = arith.constant 0 : i32
    %c0_i32_1 = arith.constant 0 : i32
    %c0_i32_2 = arith.constant 0 : i32
    return %arg1, %c0_i32, %c0_i32_0, %c0_i32_1 : i32, i32, i32, i32
  }
  func.func @transform_10(%arg0: i32, %arg1: i32) -> (i32, i32, i32, i32) {
    %c0_i32 = arith.constant 0 : i32
    %c0_i32_0 = arith.constant 0 : i32
    %c0_i32_1 = arith.constant 0 : i32
    %c0_i32_2 = arith.constant 0 : i32
    return %arg1, %c0_i32, %c0_i32_0, %c0_i32_1 : i32, i32, i32, i32
  }
  func.func @transform_11(%arg0: i32, %arg1: i32) -> (i32, i32, i32, i32) {
    %c0_i32 = arith.constant 0 : i32
    %c0_i32_0 = arith.constant 0 : i32
    %c0_i32_1 = arith.constant 0 : i32
    %c0_i32_2 = arith.constant 0 : i32
    return %arg1, %c0_i32, %c0_i32_0, %c0_i32_1 : i32, i32, i32, i32
  }
  func.func @transform_12(%arg0: i32, %arg1: i32) -> (i32, i32, i32, i32) {
    %c0_i32 = arith.constant 0 : i32
    %c0_i32_0 = arith.constant 0 : i32
    %c0_i32_1 = arith.constant 0 : i32
    %c0_i32_2 = arith.constant 0 : i32
    return %arg1, %c0_i32, %c0_i32_0, %c0_i32_1 : i32, i32, i32, i32
  }
  func.func @transform_13(%arg0: i32, %arg1: i32) -> (i32, i32) {
    %c0_i32 = arith.constant 0 : i32
    %c0_i32_0 = arith.constant 0 : i32
    return %arg0, %c0_i32 : i32, i32
  }
  func.func @transform_14(%arg0: i32, %arg1: i32) -> (i32, i32) {
    %c0_i32 = arith.constant 0 : i32
    %c0_i32_0 = arith.constant 0 : i32
    return %arg0, %c0_i32 : i32, i32
  }
}

</mosaic_0001>

<bundles_post_ra>
// kernel: tpu_custom_call.1
= control target key start
LH: loop header
LB: loop body
LE: loop exit
PB: predicated region body
PF: predicated region fallthrough
CT: control target
= control target key end

     0   :  { %s6081_s0 = inlined_call_operand.vmem [shape: f32[16,128], index: 0, kind: input, shape index: {}]   ;;  %s6082_s1 = inlined_call_operand.vmem [shape: f32[32,128], index: 1, kind: input, shape index: {}]   ;;  %s6083_s2 = inlined_call_operand.hbm [shape: f32[2,1,8], index: 2, kind: input, shape index: {}]   ;;  %s6084_s3 = inlined_call_operand.vmem [shape: f32[2,1,16], index: 3, kind: input, shape index: {}]   ;;  %s6085_s4 = inlined_call_operand.hbm [shape: bf16[2,128,384], index: 4, kind: input, shape index: {}]   ;;  %s6086_s5 = inlined_call_operand.hbm [shape: bf16[2,128,384], index: 5, kind: input, shape index: {}]   ;;  %s6087_s6 = inlined_call_operand.vmem [shape: f32[2,1,384], index: 6, kind: input, shape index: {}]   ;;  %s6088_s7 = inlined_call_operand.vmem [shape: f32[2,1,384], index: 7, kind: input, shape index: {}]   ;;  %s6089_s8 = inlined_call_operand.hbm [shape: bf16[2,2,128,128], index: 8, kind: input, shape index: {}]   ;;  %s6090_s9 = inlined_call_operand.hbm [shape: bf16[2,2,128,256], index: 9, kind: input, shape index: {}]   ;;  %s6091_s10 = inlined_call_operand.hbm [shape: bf16[2,2,256,128], index: 10, kind: input, shape index: {}]   ;;  %s6092_s11 = inlined_call_operand.vmem [shape: f32[2,2,1,256], index: 11, kind: input, shape index: {}]   ;;  %s6093_s12 = inlined_call_operand.vmem [shape: f32[2,2,6,128], index: 12, kind: input, shape index: {}]   ;;  %s6094_s13 = inlined_call_operand.hbm [shape: f32[16,128], index: 13, kind: output, shape index: {0}]   ;;  %s6095_s14 = inlined_call_operand.hbm [shape: f32[32,128], index: 14, kind: output, shape index: {1}]  }
   0x1   :  { %6131 = sst [smem:[#allocation47_spill]] %s6081_s0 }
   0x2   :  { %6132 = sst [smem:[#allocation48_spill]] %s6082_s1 }
   0x3   :  { %6133 = sst [smem:[#allocation49_spill]] %s6083_s2 }
   0x4   :  { %6134 = sst [smem:[#allocation50_spill]] %s6084_s3 }
   0x5   :  { %6135 = sst [smem:[#allocation51_spill]] %s6085_s4 }
   0x6   :  { %6136 = sst [smem:[#allocation52_spill]] %s6086_s5 }
   0x7   :  { %6137 = sst [smem:[#allocation53_spill]] %s6087_s6 }
   0x8   :  { %6138 = sst [smem:[#allocation54_spill]] %s6088_s7 }
   0x9   :  { %6139 = sst [smem:[#allocation55_spill]] %s6089_s8 }
   0xa   :  { %6140 = sst [smem:[#allocation56_spill]] %s6090_s9 }
   0xb   :  { %6141 = sst [smem:[#allocation57_spill]] %s6091_s10 }
   0xc   :  { %6142 = sst [smem:[#allocation58_spill]] %s6092_s11 }
   0xd   :  { %6143 = sst [smem:[#allocation59_spill]] %s6093_s12 }
   0xe   :  { %6144 = sst [smem:[#allocation60_spill]] %s6094_s13 }
   0xf   :  { %6145 = sst [smem:[#allocation61_spill]] %s6095_s14 }
  0x10   :  { %20 = vsyncpa [#allocation7], 0 }
  0x11   :  { %22 = vsyncpa [#allocation7 + $0x1], 0 }
  0x12   :  { %23 = vsyncpa [#allocation10], 0 }
  0x13   :  { %25 = vsyncpa [#allocation10 + $0x1], 0 }
  0x14   :  { %26 = vsyncpa [#allocation13], 0 }
  0x15   :  { %28 = vsyncpa [#allocation13 + $0x1], 0 }
  0x16   :  { %29 = vsyncpa [#allocation16], 0 }
  0x17   :  { %31 = vsyncpa [#allocation16 + $0x1], 0 }
  0x18   :  { %32 = vsyncpa [#allocation8], 0 }
  0x19   :  { %34 = vsyncpa [#allocation8 + $0x1], 0 }
  0x1a   :  { %35 = vsyncpa [#allocation19], 0 }
  0x1b   :  { %37 = vsyncpa [#allocation19 + $0x1], 0  ;;  %s5073_s29 = smov 0   ;;  %s5075_s30 = smov 0  }
  0x1c   :  { %s5077_s15 = smov 0   ;;  %s5079_s16 = smov 0  }
  0x1d   :  { %s5081_s17 = smov 0   ;;  %s5083_s18 = smov 0  }
  0x1e   :  { %s5085_s19 = smov 0   ;;  %s5087_s20 = smov 0  }
  0x1f   :  { %s5089_s21 = smov 0   ;;  %s5091_s22 = smov 0  }
  0x20   :  { %s5093_s23 = smov 0  }
  0x21 LB: > { %6146 = sst [smem:[#allocation30_spill]] %s4938_s30  ;;  %p6101_p0 = scmp.eq.s32.totalorder %s4974_s23, 0  ;;  %s4974_s23 = sphi %s5093_s23, %s43_s23   ;;  %s4970_s22 = sphi %s5091_s22, %s6228_s22   ;;  %s4966_s21 = sphi %s5089_s21, %s6227_s21   ;;  %s4962_s20 = sphi %s5087_s20, %s6226_s20   ;;  %s4958_s19 = sphi %s5085_s19, %s6225_s19   ;;  %s4954_s18 = sphi %s5083_s18, %s6224_s18   ;;  %s4950_s17 = sphi %s5081_s17, %s6223_s17   ;;  %s4946_s16 = sphi %s5079_s16, %s6222_s16   ;;  %s4942_s15 = sphi %s5077_s15, %s6221_s15   ;;  %s4938_s30 = sphi %s5075_s30, %s6220_s30   ;;  %s4934_s29 = sphi %s5073_s29, %s6219_s29  }
  0x22   : > { %6147 = sst [smem:[#allocation31_spill]] %s4942_s15  ;;  %p121_p1 = scmp.ne.s32.totalorder %s4942_s15, %s4938_s30 }
  0x23   : > { %6148 = sst [smem:[#allocation32_spill]] %s4946_s16  ;;  %p6100_p2 = scmp.lt.s32.totalorder %s4974_s23, 4 }
  0x24   : > { %6149 = sst [smem:[#allocation33_spill]] %s4950_s17  ;;  %p123_p3 = por %p121_p1, %p6101_p0 }
  0x25   : > { %6150 = sst [smem:[#allocation34_spill]] %s4954_s18  ;;  %s5137_s26 = sand.u32 1, %s4942_s15  }
  0x26   : > { %6151 = sst [smem:[#allocation35_spill]] %s4958_s19  ;;  %s6099_s27 = smul.u32 3072, %s4966_s21 }
  0x27   : > { %6152 = sst [smem:[#allocation36_spill]] %s4962_s20  ;;  %s6098_s28 = smul.u32 192, %s5137_s26 }
  0x28   : > { %6153 = sst [smem:[#allocation37_spill]] %s4966_s21  ;;  %p5143_p4 = pnand %p6100_p2, %p123_p3 }
  0x29   : > { %6154 = sst [smem:[#allocation38_spill]] %s4970_s22  ;;  %s438_s25 = scalar_lea.vmem [#allocation9], %s6098_s28 }
  0x2a   : > { %6155 = sst [smem:[#allocation39_spill]] %s4974_s23  ;;  %s445_s0 = sshll.u32 %s438_s25, 4  ;;  %s5156_s0 = int_to_ptr.vmem [resolvable:$true] %s445_s0 }
  0x2b   : > { %s6156_s14 = scalar_select %p5143_p4, 1, 0 }
  0x2c   : > { %s6157_s4 = sld [smem:[#allocation51_spill]]  ;;  %s6158_s12 = sand.u32 1, %s4974_s23  }
  0x2d   : > { %s5161_s7 = scalar_lea.sflag [#allocation10], %s6158_s12  ;;  %p5167_p7 = pneg %p5143_p4 }
  0x32   : > { %s5152_s24 = scalar_lea.hbm %s6157_s4, %s6099_s27  ;;  %s4629_s25 = scalar_lea.hbm %s6157_s4, 6144 }
  0x33   : > { %s4624_s6 = scalar_lea.hbm %s5152_s24, 3072  ;;  %p4630_p10 = scmp.lt.u32.totalorder %s5152_s24, %s6157_s4 }
  0x34   : > { %p4625_p6 = scmp.ne.s32.totalorder %s5152_s24, %s4624_s6  ;;  %p4631_p11 = scmp.lt.u32.totalorder %s4629_s25, %s4624_s6 }
  0x35   : > { %p4633_p13 = scmp.lt.u32.totalorder %s4624_s6, %s5152_s24 }
  0x36   : > { %p4627_p8 = pnand %p5167_p7, %p4625_p6  ;;  %p4632_p12 = por %p4631_p11, %p4630_p10 }
  0x38   : > { %p4628_p9 = pneg %p4627_p8  ;;  %p4634_p1 = por %p4633_p13, %p4632_p12 }
  0x3a   : > { %p4635_p3 = pnand %p4634_p1, %p4628_p9 }
  0x3c   : > { %4638 = shalt.err (!%p4635_p3)
}
  0x3d   : > { %s4639_s12 = scalar_lea.vmem %s5156_s0, 3072  ;;  %s4976_s28 = smov [#allocation9]  }
  0x3e   : > { %p4640_p6 = scmp.ne.s32.totalorder %s5156_s0, %s4639_s12  ;;  %s4644_s13 = sshll.u32 %s4976_s28, 4  ;;  %s4645_s13 = int_to_ptr.vmem [resolvable:$false] %s4644_s13 }
  0x3f   : > { %s4646_s11 = scalar_lea.vmem %s4645_s13, 6144  ;;  %p4647_p0 = scmp.lt.s32.totalorder %s5156_s0, %s4645_s13 }
  0x40   : > { %p4642_p8 = pnand %p4640_p6, %p5167_p7  ;;  %p4648_p5 = scmp.lt.s32.totalorder %s4646_s11, %s4639_s12 }
  0x42   : > { %p4643_p2 = pneg %p4642_p8  ;;  %p4649_p10 = por %p4648_p5, %p4647_p0 }
  0x44   : > { %p4650_p11 = pnand %p4649_p10, %p4643_p2 }
  0x46   : > { %4653 = shalt.err (!%p4650_p11)
}
  0x47   : > { %s6103_s6 = smov 192   ;;  %s6104_s27 = smov 12  }
  0x48   : > { %4277 = dma.hbm_to_vmem [thread:$0]  (!%p5143_p4), %s5152_s24, 3072, %s5156_s0, %s5161_s7, %s6103_s6, %s6103_s6, %s6104_s27  }
  0x49   : > { %p566_p0 = scmp.lt.s32.totalorder %s4974_s23, 5  ;;  %s3713_s25 = sshll.u32 %s5137_s26, 7 }
  0x4a   : > { %s3956_s12 = sshll.u32 %s4966_s21, 11  ;;  %p6160_p2 = scmp.ge.s32.totalorder %s4974_s23, 1 }
  0x4b   : > { %s6162_s8 = sld [smem:[#allocation55_spill]]  ;;  %s494_s3 = scalar_lea.vmem [#allocation12], %s3713_s25 }
  0x4c   : > { %p5199_p5 = pnand %p6160_p2, %p566_p0  ;;  %s501_s19 = sshll.u32 %s494_s3, 4  ;;  %s5208_s19 = int_to_ptr.vmem [resolvable:$true] %s501_s19 }
  0x4d   : > { %s6163_s0 = sand.u32 1, %s4974_s23  }
  0x4e   : > { %s6161_s28 = scalar_select %p5199_p5, 1, 0 }
  0x4f   : > { %s5212_s24 = scalar_lea.sflag [#allocation13], %s6163_s0 }
  0x51   : > { %s5206_s4 = scalar_lea.hbm %s6162_s8, %s3956_s12  ;;  %s4659_s12 = scalar_lea.hbm %s6162_s8, 4096 }
  0x52   : > { %s4654_s6 = scalar_lea.hbm %s5206_s4, 2048  ;;  %p4660_p1 = scmp.lt.u32.totalorder %s5206_s4, %s6162_s8 }
  0x53   : > { %p4655_p9 = scmp.ne.s32.totalorder %s5206_s4, %s4654_s6  ;;  %p4661_p3 = scmp.lt.u32.totalorder %s4659_s12, %s4654_s6 }
  0x54   : > { %p4663_p8 = scmp.lt.u32.totalorder %s4654_s6, %s5206_s4 }
  0x55   : > { %p4657_p12 = pnand %p4655_p9, %p5167_p7  ;;  %p4662_p6 = por %p4661_p3, %p4660_p1 }
  0x57   : > { %p4658_p13 = pneg %p4657_p12  ;;  %p4664_p10 = por %p4663_p8, %p4662_p6 }
  0x59   : > { %p4665_p11 = pnand %p4664_p10, %p4658_p13 }
  0x5b   : > { %4668 = shalt.err (!%p4665_p11)
}
  0x5c   : > { %s4669_s3 = scalar_lea.vmem %s5208_s19, 2048  ;;  %s4979_s27 = smov [#allocation12]  }
  0x5d   : > { %p4670_p0 = scmp.ne.s32.totalorder %s5208_s19, %s4669_s3  ;;  %s4674_s25 = sshll.u32 %s4979_s27, 4  ;;  %s4675_s25 = int_to_ptr.vmem [resolvable:$false] %s4674_s25 }
  0x5e   : > { %s4676_s20 = scalar_lea.vmem %s4675_s25, 4096  ;;  %p4677_p12 = scmp.lt.s32.totalorder %s5208_s19, %s4675_s25 }
  0x5f   : > { %p4672_p2 = pnand %p4670_p0, %p5167_p7  ;;  %p4678_p5 = scmp.lt.s32.totalorder %s4676_s20, %s4669_s3 }
  0x61   : > { %p4673_p9 = pneg %p4672_p2  ;;  %p4679_p1 = por %p4678_p5, %p4677_p12 }
  0x63   : > { %p4680_p3 = pnand %p4679_p1, %p4673_p9 }
  0x65   : > { %4683 = shalt.err (!%p4680_p3)
}
  0x66   : > { %s6108_s6 = smov 64   ;;  %s6109_s0 = smov 4  }
  0x67   : > { %4283 = dma.hbm_to_vmem [thread:$0]  (!%p5143_p4), %s5206_s4, 2048, %s5208_s19, %s5212_s24, %s6108_s6, %s6108_s6, %s6109_s0  }
  0x68   : > { %s5240_s13 = sadd.s32 4294967295, %s4974_s23   ;;  %s3707_s12 = sadd.s32 4294967294, %s4974_s23  }
  0x69   : > { %s52_s11 = sadd.s32 1, %s4966_s21  ;;  %s55_s3 = sadd.s32 1, %s4970_s22 }
  0x6a   : > { %p53_p5 = scmp.ge.s32.totalorder %s52_s11, 2  ;;  %s62_s27 = sadd.s32 1, %s4954_s18 }
  0x6b   : > { %p69_p13 = scmp.ne.s32.totalorder %s4954_s18, %s4950_s17  ;;  %p6165_p6 = scmp.eq.s32.totalorder %s4974_s23, 0 }
  0x6c   : > { %s6230_s11 = smov (%p53_p5, %s52_s11), 0  ;;  %s6232_s3 = smov (!%p53_p5, %s55_s3), %s4970_s22 }
  0x6d   : > { %6164 = sst [smem:[#allocation40_spill]] %s6230_s11  ;;  %p5256_p8 = por %p6165_p6, %p69_p13 }
  0x6e   : > { %p75_p10 = scmp.ne.s32.totalorder %s4950_s17, %s4946_s16  ;;  %p57_p11 = scmp.ge.s32.totalorder %s6232_s3, 2 }
  0x6f   : > { %p76_p0 = scmp.eq.s32.totalorder %s5240_s13, 0  ;;  %s111_s19 = ssub.s32 %s4966_s21, %s6230_s11 }
  0x70   : > { %p127_p2 = scmp.ne.s32.totalorder %s4938_s30, %s4934_s29  ;;  %s6234_s3 = smov (%p57_p11, %s6232_s3), 0 }
  0x71   : > { %6167 = sst [smem:[#allocation41_spill]] %s6234_s3  ;;  %p5272_p9 = por %p76_p0, %p75_p10 }
  0x72   : > { %p112_p12 = scmp.eq.s32.totalorder %s111_s19, 0  ;;  %s59_s20 = ssub.s32 %s4970_s22, %s6234_s3 }
  0x73   : > { %s6168_s25 = scalar_select %p5272_p9, 1, 0 }
  0x74   : > { %p5278_p1 = por %p127_p2, %p76_p0  ;;  %p60_p3 = scmp.eq.s32.totalorder %s59_s20, 0 }
  0x75   : > { %p359_p5 = scmp.eq.s32.totalorder %s5240_s13, 3  ;;  %s6171_s29 = sadd.s32 1, %s4942_s15 }
  0x76   : > { %s6169_s6 = scalar_select %p5278_p1, 1, 0 }
  0x77   : > { %s5286_s0 = scalar_select %p112_p12, %s4942_s15, %s6171_s29  }
  0x78   : > { %6170 = sst [smem:[#allocation42_spill]] %s6169_s6  ;;  %p5294_p6 = por %p359_p5, %p69_p13 }
  0x79   : > { %6172 = sst [smem:[#allocation43_spill]] %s5286_s0  ;;  %p365_p11 = scmp.eq.s32.totalorder %s3707_s12, 3 }
  0x7a   : > { %s5289_s8 = scalar_select %p60_p3, %s4954_s18, %s62_s27  }
  0x7b   : > { %s6174_s11 = scalar_select %p5294_p6, 1, 0 }
  0x7c   : > { %6173 = sst [smem:[#allocation44_spill]] %s5289_s8  ;;  %s411_s19 = sand.u32 1, %s4954_s18  }
  0x7d   : > { %6175 = sst [smem:[#allocation45_spill]] %s6174_s11  ;;  %s3710_s3 = sshll.u32 %s4970_s22, 4 }
  0x7e   : > { %p5303_p0 = por %p365_p11, %p75_p10  ;;  %s6178_s2 = sld [smem:[#allocation49_spill]] }
  0x7f   : > { %s414_s27 = scalar_lea.vmem [#allocation6], %s411_s19  ;;  %p6179_p13 = scmp.lt.s32.totalorder %s4974_s23, 4 }
  0x80   : > { %s6176_s30 = scalar_select %p5303_p0, 1, 0 }
  0x81   : > { %s421_s8 = sshll.u32 %s414_s27, 4  ;;  %p5316_p2 = pnand %p6179_p13, %p5256_p8  ;;  %s5320_s8 = int_to_ptr.vmem [resolvable:$true] %s421_s8 }
  0x82   : > { %6177 = sst [smem:[#allocation46_spill]] %s6176_s30  ;;  %s6181_s22 = smul.u32 3072, %s4966_s21 }
  0x83   : > { %s6182_s5 = sld [smem:[#allocation52_spill]]  ;;  %s412_s18 = scalar_lea.sflag [#allocation7], %s411_s19 }
  0x84   : > { %s5310_s29 = scalar_lea.hbm %s6178_s2, %s3710_s3  ;;  %p4686_p12 = pneg %p5316_p2 }
  0x85   : > { %s4684_s0 = scalar_lea.hbm %s5310_s29, 16  ;;  %s4689_s15 = scalar_lea.hbm %s6178_s2, 32 }
  0x86   : > { %p4685_p10 = scmp.ne.s32.totalorder %s5310_s29, %s4684_s0  ;;  %p4690_p5 = scmp.lt.u32.totalorder %s5310_s29, %s6178_s2 }
  0x87   : > { %p4691_p11 = scmp.lt.u32.totalorder %s4689_s15, %s4684_s0  ;;  %p4693_p0 = scmp.lt.u32.totalorder %s4684_s0, %s5310_s29 }
  0x88   : > { %p4687_p8 = pnand %p4686_p12, %p4685_p10 }
  0x89   : > { %s5327_s20 = scalar_lea.hbm %s6182_s5, %s6181_s22  ;;  %p4692_p13 = por %p4691_p11, %p4690_p5 }
  0x8a   : > { %p4688_p3 = pneg %p4687_p8 }
  0x8b   : > { %p4694_p6 = por %p4693_p0, %p4692_p13 }
  0x8d   : > { %p4695_p1 = pnand %p4694_p6, %p4688_p3 }
  0x8f   : > { %4698 = shalt.err (!%p4695_p1)
}
  0x90   : > { %s4699_s22 = scalar_lea.vmem %s5320_s8, 16  ;;  %s4982_s19 = smov [#allocation6]  }
  0x91   : > { %p4700_p10 = scmp.ne.s32.totalorder %s5320_s8, %s4699_s22  ;;  %s4704_s6 = sshll.u32 %s4982_s19, 4  ;;  %s4705_s6 = int_to_ptr.vmem [resolvable:$false] %s4704_s6 }
  0x92   : > { %s4706_s30 = scalar_lea.vmem %s4705_s6, 32  ;;  %p4707_p4 = scmp.lt.s32.totalorder %s5320_s8, %s4705_s6 }
  0x93   : > { %p4702_p8 = pnand %p4700_p10, %p4686_p12  ;;  %p4708_p5 = scmp.lt.s32.totalorder %s4706_s30, %s4699_s22 }
  0x95   : > { %p4703_p9 = pneg %p4702_p8  ;;  %p4709_p11 = por %p4708_p5, %p4707_p4 }
  0x97   : > { %p4710_p0 = pnand %p4709_p11, %p4703_p9 }
  0x99   : > { %4713 = shalt.err (!%p4710_p0)
}
  0x9a   : > { %4274 = dma.hbm_to_vmem [thread:$0]  (!%p5316_p2), %s5310_s29, 16, %s5320_s8, %s412_s18  }
  0x9b   : > { %s6183_s15 = smul.u32 192, %s5137_s26  ;;  %s3716_s3 = sshll.u32 %s5137_s26, 8 }
  0x9c   : > { %s4714_s4 = scalar_lea.hbm %s5327_s20, 3072  ;;  %s4719_s22 = scalar_lea.hbm %s6182_s5, 6144 }
  0x9d   : > { %s459_s16 = scalar_lea.vmem [#allocation11], %s6183_s15  ;;  %p4715_p4 = scmp.ne.s32.totalorder %s5327_s20, %s4714_s4 }
  0x9e   : > { %s466_s0 = sshll.u32 %s459_s16, 4  ;;  %p4720_p6 = scmp.lt.u32.totalorder %s5327_s20, %s6182_s5  ;;  %s5357_s0 = int_to_ptr.vmem [resolvable:$true] %s466_s0 }
  0x9f   : > { %p4717_p9 = pnand %p4715_p4, %p5167_p7  ;;  %p4721_p2 = scmp.lt.u32.totalorder %s4719_s22, %s4714_s4 }
  0xa0   : > { %p4723_p3 = scmp.lt.u32.totalorder %s4714_s4, %s5327_s20 }
  0xa1   : > { %p4718_p1 = pneg %p4717_p9  ;;  %p4722_p12 = por %p4721_p2, %p4720_p6 }
  0xa3   : > { %p4724_p13 = por %p4723_p3, %p4722_p12 }
  0xa5   : > { %p4725_p10 = pnand %p4724_p13, %p4718_p1 }
  0xa7   : > { %4728 = shalt.err (!%p4725_p10)
}
  0xa8   : > { %s4729_s8 = scalar_lea.vmem %s5357_s0, 3072  ;;  %s4983_s18 = smov [#allocation11]  }
  0xa9   : > { %p4730_p8 = scmp.ne.s32.totalorder %s5357_s0, %s4729_s8  ;;  %s4734_s29 = sshll.u32 %s4983_s18, 4  ;;  %s4735_s29 = int_to_ptr.vmem [resolvable:$false] %s4734_s29 }
  0xaa   : > { %s4736_s30 = scalar_lea.vmem %s4735_s29, 6144  ;;  %p4737_p0 = scmp.lt.s32.totalorder %s5357_s0, %s4735_s29 }
  0xab   : > { %p4732_p5 = pnand %p4730_p8, %p5167_p7  ;;  %p4738_p4 = scmp.lt.s32.totalorder %s4736_s30, %s4729_s8 }
  0xad   : > { %p4733_p11 = pneg %p4732_p5  ;;  %p4739_p9 = por %p4738_p4, %p4737_p0 }
  0xaf   : > { %p4740_p6 = pnand %p4739_p9, %p4733_p11 }
  0xb1   : > { %4743 = shalt.err (!%p4740_p6)
}
  0xb2   : > { %p6184_p1 = scmp.ne.s32.totalorder %s6156_s14, 0  ;;  %s6185_s15 = smov 12  }
  0xb3   : > { %s6186_s16 = smov 192   ;;  %s3957_s4 = sshll.u32 %s4966_s21, 12 }
  0xb4   : > { %4280 = dma.hbm_to_vmem [thread:$0]  (!%p6184_p1), %s5327_s20, 3072, %s5357_s0, %s5161_s7, %s6186_s16, %s6186_s16, %s6185_s15  }
  0xb5   : > { %s515_s12 = scalar_lea.vmem [#allocation14], %s3716_s3  ;;  %s6187_s9 = sld [smem:[#allocation56_spill]] }
  0xb6   : > { %s522_s27 = sshll.u32 %s515_s12, 4  ;;  %s5394_s27 = int_to_ptr.vmem [resolvable:$true] %s522_s27 }
  0xbb   : > { %s5392_s6 = scalar_lea.hbm %s6187_s9, %s3957_s4  ;;  %s4749_s0 = scalar_lea.hbm %s6187_s9, 8192 }
  0xbc   : > { %s4744_s8 = scalar_lea.hbm %s5392_s6, 4096  ;;  %p4750_p13 = scmp.lt.u32.totalorder %s5392_s6, %s6187_s9 }
  0xbd   : > { %p4745_p2 = scmp.ne.s32.totalorder %s5392_s6, %s4744_s8  ;;  %p4751_p10 = scmp.lt.u32.totalorder %s4749_s0, %s4744_s8 }
  0xbe   : > { %p4753_p5 = scmp.lt.u32.totalorder %s4744_s8, %s5392_s6 }
  0xbf   : > { %p4747_p12 = pnand %p4745_p2, %p5167_p7  ;;  %p4752_p8 = por %p4751_p10, %p4750_p13 }
  0xc1   : > { %p4748_p3 = pneg %p4747_p12  ;;  %p4754_p11 = por %p4753_p5, %p4752_p8 }
  0xc3   : > { %p4755_p0 = pnand %p4754_p11, %p4748_p3 }
  0xc5   : > { %4758 = shalt.err (!%p4755_p0)
}
  0xc6   : > { %s4759_s30 = scalar_lea.vmem %s5394_s27, 4096  ;;  %s4984_s15 = smov [#allocation14]  }
  0xc7   : > { %p4760_p4 = scmp.ne.s32.totalorder %s5394_s27, %s4759_s30  ;;  %s4764_s16 = sshll.u32 %s4984_s15, 4  ;;  %s4765_s16 = int_to_ptr.vmem [resolvable:$false] %s4764_s16 }
  0xc8   : > { %s4766_s12 = scalar_lea.vmem %s4765_s16, 8192  ;;  %p4767_p2 = scmp.lt.s32.totalorder %s5394_s27, %s4765_s16 }
  0xc9   : > { %p4762_p9 = pnand %p4760_p4, %p5167_p7  ;;  %p4768_p12 = scmp.lt.s32.totalorder %s4766_s12, %s4759_s30 }
  0xcb   : > { %p4763_p6 = pneg %p4762_p9  ;;  %p4769_p13 = por %p4768_p12, %p4767_p2 }
  0xcd   : > { %p4770_p10 = pnand %p4769_p13, %p4763_p6 }
  0xcf   : > { %4773 = shalt.err (!%p4770_p10)
}
  0xd0   : > { %s4985_s22 = smov 128   ;;  %s4986_s19 = smov 8  }
  0xd1   : > { %4286 = dma.hbm_to_vmem [thread:$0]  (!%p6184_p1), %s5392_s6, 4096, %s5394_s27, %s5212_s24, %s4985_s22, %s4985_s22, %s4986_s19  }
  0xd2   : > { %s6188_s10 = sld [smem:[#allocation57_spill]]  ;;  %s536_s0 = scalar_lea.vmem [#allocation15], %s3716_s3 }
  0xd3   : > { %s543_s18 = sshll.u32 %s536_s0, 4  ;;  %s533_s29 = scalar_lea.sflag [#allocation16], %s5137_s26  ;;  %s5427_s18 = int_to_ptr.vmem [resolvable:$true] %s543_s18 }
  0xd8   : > { %s5423_s20 = scalar_lea.hbm %s6188_s10, %s3957_s4  ;;  %s4779_s4 = scalar_lea.hbm %s6188_s10, 8192 }
  0xd9   : > { %s4774_s30 = scalar_lea.hbm %s5423_s20, 4096  ;;  %p4780_p11 = scmp.lt.u32.totalorder %s5423_s20, %s6188_s10 }
  0xda   : > { %p4775_p3 = scmp.ne.s32.totalorder %s5423_s20, %s4774_s30  ;;  %p4781_p0 = scmp.lt.u32.totalorder %s4779_s4, %s4774_s30 }
  0xdb   : > { %p4783_p9 = scmp.lt.u32.totalorder %s4774_s30, %s5423_s20 }
  0xdc   : > { %p4777_p8 = pnand %p4775_p3, %p5167_p7  ;;  %p4782_p4 = por %p4781_p0, %p4780_p11 }
  0xde   : > { %p4778_p5 = pneg %p4777_p8  ;;  %p4784_p6 = por %p4783_p9, %p4782_p4 }
  0xe0   : > { %p4785_p2 = pnand %p4784_p6, %p4778_p5 }
  0xe2   : > { %4788 = shalt.err (!%p4785_p2)
}
  0xe3   : > { %s4789_s3 = scalar_lea.vmem %s5427_s18, 4096  ;;  %s4987_s16 = smov [#allocation15]  }
  0xe4   : > { %p4790_p12 = scmp.ne.s32.totalorder %s5427_s18, %s4789_s3  ;;  %s4794_s12 = sshll.u32 %s4987_s16, 4  ;;  %s4795_s12 = int_to_ptr.vmem [resolvable:$false] %s4794_s12 }
  0xe5   : > { %s4796_s22 = scalar_lea.vmem %s4795_s12, 8192  ;;  %p4797_p3 = scmp.lt.s32.totalorder %s5427_s18, %s4795_s12 }
  0xe6   : > { %p4792_p13 = pnand %p4790_p12, %p5167_p7  ;;  %p4798_p8 = scmp.lt.s32.totalorder %s4796_s22, %s4789_s3 }
  0xe8   : > { %p4793_p10 = pneg %p4792_p13  ;;  %p4799_p11 = por %p4798_p8, %p4797_p3 }
  0xea   : > { %p4800_p0 = pnand %p4799_p11, %p4793_p10 }
  0xec   : > { %4803 = shalt.err (!%p4800_p0)
}
  0xed   : > { %s6189_s19 = smov 4   ;;  %s6190_s8 = smov 64  }
  0xee   : > { %4289 = dma.hbm_to_vmem [thread:$0]  (!%p6184_p1), %s5423_s20, 4096, %s5427_s18, %s533_s29, %s6190_s8, %s6190_s8, %s6189_s19  }
  0xef   : > { %p6191_p7 = scmp.ne.s32.totalorder %s6161_s28, 0 }
  0xf0   : > { %s5459_s1 = sand.u32 (!%p6191_p7), 1, %s4950_s17   ;;  %p6192_p5 = scmp.ne.s32.totalorder (!%p6191_p7), %s6168_s25, 0 }
  0xf1   : > { %570 = sbr.rel (%p6191_p7) target bundleno = 5344 (0x14e0), region = 64  ;;  %s573_s7 = scalar_lea.sflag (!%p6191_p7), [#allocation7], %s5459_s1 }
  0xf8   : > { %4905 = dma.done.wait (%p6192_p5), %s573_s7, 16  }
  0xf9   : > { %4907 = vsyncadd (%p6192_p5), %s573_s7, 4294967280  ;;  %s6193_s14 = sld [smem:[#allocation30_spill]]  ;;  %s6194_s26 = sld [smem:[#allocation42_spill]] }
  0xfa   : > { %s580_s20 = sand.u32 1, %s5240_s13  }
  0xfb   : > { %s581_s29 = scalar_lea.sflag [#allocation10], %s580_s20 }
  0xff   : > { %s582_s18 = sand.u32 1, %s6193_s14   ;;  %p6195_p1 = scmp.ne.s32.totalorder %s6194_s26, 0 }
 0x100   : > { %s4253_s28 = smul.u32 192, %s582_s18 }
 0x102   : > { %s5469_s30 = scalar_lea.vmem [#allocation9], %s4253_s28 }
 0x103   : > { %4909 = dma.done.wait (%p6195_p1), %s581_s29, 6144  }
 0x104   : > { %4911 = vsyncadd (%p6195_p1), %s581_s29, 4294961152  ;;  %s3723_s24 = sshll.u32 %s582_s18, 7  ;;  %s5475_s27 = scalar_lea.vmem [#allocation11], %s4253_s28 }
 0x105   : > { %s599_s25 = scalar_lea.sflag [#allocation13], %s580_s20  ;;  %s5477_s4 = scalar_lea.vmem [#allocation12], %s3723_s24 }
 0x106   : > { %4913 = dma.done.wait (%p6195_p1), %s599_s25, 6144  }
 0x107   : > { %4915 = vsyncadd (%p6195_p1), %s599_s25, 4294961152  ;;  %s3724_s13 = sshll.u32 %s582_s18, 8  ;;  %s617_s15 = scalar_lea.sflag [#allocation16], %s582_s18 }
 0x108   : > { %s5483_s6 = scalar_lea.vmem [#allocation14], %s3724_s13  ;;  %s5485_s3 = scalar_lea.vmem [#allocation15], %s3724_s13 }
 0x109   : > { %4917 = dma.done.wait (%p6195_p1), %s617_s15, 4096  }
 0x10a   : > { %4919 = vsyncadd (%p6195_p1), %s617_s15, 4294963200  ;;  %s6196_s16 = sld [smem:[#allocation36_spill]]  ;;  %s6197_s12 = sld [smem:[#allocation35_spill]] }
 0x10b   : > { %s3726_s22 = sshll.u32 %s5459_s1, 3  ;;  %s3727_s19 = sshll.u32 %s5459_s1, 4 }
 0x10c   : > { %s6199_s25 = sld [smem:[#allocation58_spill]]  ;;  %s6200_s5 = sld [smem:[#allocation53_spill]] }
 0x10d   : > { %s6201_s17 = sld [smem:[#allocation54_spill]]  ;;  %s6202_s20 = sld [smem:[#allocation59_spill]] }
 0x10e   : > { %s5523_s11 = scalar_lea.vmem [#allocation17], %s3726_s22 }
 0x110   : > { %p710_p4 = scmp.lt.s32.totalorder %s6196_s16, 1  ;;  %p713_p9 = scmp.lt.s32.totalorder %s6197_s12, 1 }
 0x111   : > { %p3731_p6 = scmp.ne.s32.totalorder %s6197_s12, 0 }
 0x112   : > { %s6236_s16 = smov (!%p710_p4, %s6196_s16), 1  ;;  %s6203_s2 = sld [smem:[#allocation36_spill]] (!%p3731_p6) }
 0x113   : > { %s714_s8 = scalar_select %p713_p9, %s6197_s12, 1 }
 0x114   : > { %735 = sbr.rel (%p3731_p6) target bundleno = 305 (0x131), region = 92 }
 0x115   : > { %s4254_s26 = smul.u32 3, %s714_s8  ;;  %s3728_s28 = sshll.u32 %s714_s8, 2 }
 0x116   : > { %s5506_s13 = scalar_lea.vmem %s6199_s25, %s3728_s28  ;;  %s3959_s15 = sshll.u32 %s714_s8, 4 }
 0x117   : > { %s5511_s9 = scalar_lea.vmem %s6200_s5, %s4254_s26  ;;  %s5516_s23 = scalar_lea.vmem %s6201_s17, %s4254_s26 }
 0x118   : > { %s5521_s18 = scalar_lea.vmem %s6202_s20, %s3959_s15  ;;  %s5525_s28 = scalar_lea.vmem [#allocation18], %s3727_s19 }
 0x119   : > { %s3732_s5 = sshll.u32 (!%p3731_p6), %s6203_s2, 3  ;;  %s3733_s0 = sshll.u32 (!%p3731_p6), %s6203_s2, 4 }
 0x11a   : > { %s6204_s17 = sld [smem:[#allocation47_spill]] (!%p3731_p6) }
 0x120   : > { %s738_s21 = scalar_lea.vmem %s6204_s17, %s3732_s5 }
 0x121   : > { %v771_v0 = vld [vmem:[%s738_s21] sm:$0xff] }
 0x122   : > { %772 = vst [vmem:[#allocation2] sm:$0xff] %v771_v0 }
 0x123   : > { %780 = vsyncadd [#allocation5], 128  ;;  %s6205_s22 = sld [smem:[#allocation48_spill]] }
 0x129   : > { %s781_s24 = scalar_lea.vmem %s6205_s22, %s3733_s0 }
 0x12a   : > { %v815_v1 = vld [vmem:[%s781_s24] sm:$0xff]  ;;  %v817_v2 = vld [vmem:[%s781_s24 + $0x8] sm:$0xff] }
 0x12b   : > { %816 = vst [vmem:[#allocation3] sm:$0xff] %v815_v1  ;;  %818 = vst [vmem:[#allocation3 + $0x8] sm:$0xff] %v817_v2 }
 0x12c   : > { %826 = vsyncadd [#allocation5 + $0x1], 256 }
 0x12d   : > { %4920 = dma.done.wait [#allocation5], 128 }
 0x12e   : > { %4921 = vsyncadd [#allocation5], 4294967168 }
 0x12f   : > { %4922 = dma.done.wait [#allocation5 + $0x1], 256 }
 0x130   : > { %4923 = vsyncadd [#allocation5 + $0x1], 4294967040 }
 0x131 PF: > { %v4401_v3 = vld [vmem:[%s5469_s30 + $0x4] ss:$12 sps:$4 sm:$0xff]   ;;  %v4403_v4 = vld [vmem:[%s5469_s30] ss:$12 sps:$4 sm:$0xff]   ;;  %v4988_v5 = vmov 0   ;;  %v4989_v6 = vmov 0.0   ;;  %v873_v62 = vlaneseq }
 0x132   : > { %1048 = vmatprep.mubr.bf16.mxu0 %v4988_v5  ;;  %4073 = vmatprep.subr.bf16.mxu1 %v4989_v6  ;;  %v4404_v7 = vld [vmem:[%s5469_s30 + $0x1c] ss:$12 sps:$4 sm:$0xff]   ;;  %v4406_v8 = vld [vmem:[%s5469_s30 + $0x18] ss:$12 sps:$4 sm:$0xff]   ;;  %v4407_v9 = vld [vmem:[%s5469_s30 + $0x34] ss:$12 sps:$4 sm:$0xff]  }
 0x133   : > { %1016 = vmatprep.subr.bf16.mxu0 %v4401_v3  ;;  %v4409_v10 = vld [vmem:[%s5469_s30 + $0x30] ss:$12 sps:$4 sm:$0xff]   ;;  %v4410_v11 = vld [vmem:[%s5469_s30 + $0x4c] ss:$12 sps:$4 sm:$0xff]   ;;  %v4412_v12 = vld [vmem:[%s5469_s30 + $0x48] ss:$12 sps:$4 sm:$0xff]  }
 0x134   : > { %1017 = vmatpush1.bf16.msra.mxu0 %v4403_v4  ;;  %v4413_v13 = vld [vmem:[%s5469_s30 + $0x64] ss:$12 sps:$4 sm:$0xff]   ;;  %v4415_v14 = vld [vmem:[%s5469_s30 + $0x60] ss:$12 sps:$4 sm:$0xff]   ;;  %v4416_v15 = vld [vmem:[%s5469_s30 + $0x7c] ss:$12 sps:$4 sm:$0xff]  }
 0x135   : > { %1018 = vmatprep.subr.bf16.mxu0 %v4404_v7  ;;  %v4418_v16 = vld [vmem:[%s5469_s30 + $0x78] ss:$12 sps:$4 sm:$0xff]   ;;  %v4419_v17 = vld [vmem:[%s5469_s30 + $0x94] ss:$12 sps:$4 sm:$0xff]   ;;  %v4421_v18 = vld [vmem:[%s5469_s30 + $0x90] ss:$12 sps:$4 sm:$0xff]  }
 0x136   : > { %v4449_v19 = vld [vmem:[%s5469_s30 + $0x8] ss:$12 sps:$4 sm:$0xff]   ;;  %v4422_v20 = vld [vmem:[%s5469_s30 + $0xac] ss:$12 sps:$4 sm:$0xff]   ;;  %v4427_v24 = vld [vmem:[%s5475_s27 + $0x4] ss:$12 sps:$4 sm:$0xff]  }
 0x137   : > { %4074 = vmatpush3.bf16.msra.mxu1 %v4449_v19  ;;  %v4450_v21 = vld [vmem:[%s5469_s30 + $0x20] ss:$12 sps:$4 sm:$0xff]   ;;  %v4424_v22 = vld [vmem:[%s5469_s30 + $0xa8] ss:$12 sps:$4 sm:$0xff]   ;;  %v4451_v25 = vld [vmem:[%s5469_s30 + $0x38] ss:$12 sps:$4 sm:$0xff]  }
 0x138   : > { %1019 = vmatpush1.bf16.msra.mxu0 %v4406_v8  ;;  %4075 = vmatprep.subr.bf16.mxu1 %v4989_v6  ;;  %v5557_v23 = vld [vmem:[#allocation2] sm:$0xff]  ;;  %v4425_v27 = vld [vmem:[%s5475_s27] ss:$12 sps:$4 sm:$0xff]   ;;  %v4439_v37 = vld [vmem:[%s5475_s27 + $0x64] ss:$12 sps:$4 sm:$0xff]   ;;  %vm4990_vm0 = vmmov 0  }
 0x139   : > { %1020 = vmatprep.subr.bf16.mxu0 %v4407_v9  ;;  %v838_v26 = vpack.c.bf16 %v5557_v23, %v5557_v23  ;;  %v4430_v28 = vld [vmem:[%s5475_s27 + $0x1c] ss:$12 sps:$4 sm:$0xff]   ;;  %v4428_v30 = vld [vmem:[%s5475_s27 + $0x18] ss:$12 sps:$4 sm:$0xff]   ;;  %v4433_v31 = vld [vmem:[%s5475_s27 + $0x34] ss:$12 sps:$4 sm:$0xff]   ;;  %4089 = vmatprep.mubr.msk.bf16.mxu1 %vm4990_vm0, %v4989_v6 }
 0x13a   : > { %v4452_v29 = vld [vmem:[%s5469_s30 + $0x50] ss:$12 sps:$4 sm:$0xff]   ;;  %v4453_v32 = vld [vmem:[%s5469_s30 + $0x68] ss:$12 sps:$4 sm:$0xff]   ;;  %v4436_v34 = vld [vmem:[%s5475_s27 + $0x4c] ss:$12 sps:$4 sm:$0xff]  }
 0x13b   : > { %4076 = vmatpush3.bf16.msra.mxu1 %v4450_v21  ;;  %v4431_v33 = vld [vmem:[%s5475_s27 + $0x30] ss:$12 sps:$4 sm:$0xff]   ;;  %v4454_v35 = vld [vmem:[%s5469_s30 + $0x80] ss:$12 sps:$4 sm:$0xff]   ;;  %v4434_v36 = vld [vmem:[%s5475_s27 + $0x48] ss:$12 sps:$4 sm:$0xff]  }
 0x13c   : > { %1021 = vmatpush1.bf16.msra.mxu0 %v4409_v10  ;;  %4077 = vmatprep.subr.bf16.mxu1 %v4989_v6  ;;  %v4455_v38 = vld [vmem:[%s5469_s30 + $0x98] ss:$12 sps:$4 sm:$0xff]   ;;  %v4437_v39 = vld [vmem:[%s5475_s27 + $0x60] ss:$12 sps:$4 sm:$0xff]   ;;  %v4442_v40 = vld [vmem:[%s5475_s27 + $0x7c] ss:$12 sps:$4 sm:$0xff]  }
 0x13d   : > { %1022 = vmatprep.subr.bf16.mxu0 %v4410_v11  ;;  %v4456_v41 = vld [vmem:[%s5469_s30 + $0xb0] ss:$12 sps:$4 sm:$0xff]   ;;  %v4440_v42 = vld [vmem:[%s5475_s27 + $0x78] ss:$12 sps:$4 sm:$0xff]   ;;  %v4445_v43 = vld [vmem:[%s5475_s27 + $0x94] ss:$12 sps:$4 sm:$0xff]  }
 0x13e   : > { %v4443_v44 = vld [vmem:[%s5475_s27 + $0x90] ss:$12 sps:$4 sm:$0xff]   ;;  %v4448_v45 = vld [vmem:[%s5475_s27 + $0xac] ss:$12 sps:$4 sm:$0xff]   ;;  %v4446_v46 = vld [vmem:[%s5475_s27 + $0xa8] ss:$12 sps:$4 sm:$0xff]  }
 0x13f   : > { %4078 = vmatpush3.bf16.msra.mxu1 %v4451_v25  ;;  %v834_v47 = vld [vmem:[#allocation3] sm:$0xff]  ;;  %v835_v48 = vld [vmem:[#allocation3 + $0x8] sm:$0xff]  ;;  %v5618_v63 = vshrl.u32 %v873_v62, 7  ;;  %v1130_v0 = vld [vmem:[%s5516_s23] sm:$0x7]  ;;  %vm1369_vm1 = vcmask 261120  }
 0x140   : > { %1023 = vmatpush1.bf16.msra.mxu0 %v4412_v12  ;;  %4079 = vmatprep.subr.bf16.mxu1 %v4989_v6  ;;  %v1097_v49 = vpack.c.bf16 %v835_v48, %v834_v47  ;;  %v4457_v50 = vld [vmem:[%s5475_s27 + $0x8] ss:$12 sps:$4 sm:$0xff]   ;;  %v4458_v51 = vld [vmem:[%s5475_s27 + $0x20] ss:$12 sps:$4 sm:$0xff]   ;;  %v4459_v52 = vld [vmem:[%s5475_s27 + $0x38] ss:$12 sps:$4 sm:$0xff]  }
 0x141   : > { %1024 = vmatprep.subr.bf16.mxu0 %v4413_v13  ;;  %v4460_v53 = vld [vmem:[%s5475_s27 + $0x50] ss:$12 sps:$4 sm:$0xff]   ;;  %v4461_v54 = vld [vmem:[%s5475_s27 + $0x68] ss:$12 sps:$4 sm:$0xff]   ;;  %v4462_v55 = vld [vmem:[%s5475_s27 + $0x80] ss:$12 sps:$4 sm:$0xff]  }
 0x142   : > { %v4463_v56 = vld [vmem:[%s5475_s27 + $0x98] ss:$12 sps:$4 sm:$0xff]   ;;  %v4464_v57 = vld [vmem:[%s5475_s27 + $0xb0] ss:$12 sps:$4 sm:$0xff]   ;;  %v5622_v1 = vsub.s32 0, %v5618_v63  ;;  %v5625_v2 = vsub.s32 1, %v5618_v63 }
 0x143   : > { %4080 = vmatpush3.bf16.msra.mxu1 %v4452_v29  ;;  %v5628_v3 = vld [vmem:[%s5511_s9] sm:$0x7]  ;;  %s4991_s9 = smov 96   ;;  %s4992_s23 = smov 64   ;;  %vm1416_vm2 = vcmask 130048   ;;  %vm1588_vm3 = vcmask 523520  }
 0x144   : > { %1025 = vmatpush1.bf16.msra.mxu0 %v4415_v14  ;;  %4081 = vmatprep.subr.bf16.mxu1 %v4989_v6  ;;  %v1135_v4 = vrot.slane %v1130_v0, %v5622_v1  ;;  %v1139_v8 = vrot.slane %v1130_v0, %v5625_v2  ;;  %v876_v10 = vrot.slane %v5628_v3, %v5622_v1  ;;  %s4993_s30 = smov 32   ;;  %s6206_s19 = sld [smem:[#allocation50_spill]]  ;;  %vm1702_vm4 = vcmask 785920  }
 0x145   : > { %1026 = vmatprep.subr.bf16.mxu0 %v4416_v15  ;;  %vm1816_vm5 = vcmask 1048320   ;;  %vm2384_vm6 = vcmask 1043456   ;;  %vm2357_vm7 = vcmask 64512  }
 0x147   : > { %4082 = vmatpush3.bf16.msra.mxu1 %v4453_v32 }
 0x148   : > { %1027 = vmatpush1.bf16.msra.mxu0 %v4418_v16  ;;  %4083 = vmatprep.subr.bf16.mxu1 %v4989_v6 }
 0x149   : > { %1028 = vmatprep.subr.bf16.mxu0 %v4419_v17 }
 0x14a   : > { %s6207_s25 = scalar_lea.vmem %s6206_s19, %s6236_s16  ;;  %s6208_s16 = scalar_lea.vmem [#allocation6], %s5459_s1 }
 0x14b   : > { %4084 = vmatpush3.bf16.msra.mxu1 %v4454_v35 }
 0x14c   : > { %1029 = vmatpush1.bf16.msra.mxu0 %v4421_v18  ;;  %4085 = vmatprep.subr.bf16.mxu1 %v4989_v6 }
 0x14d   : > { %1030 = vmatprep.subr.bf16.mxu0 %v4422_v20 }
 0x14f   : > { %4086 = vmatpush3.bf16.msra.mxu1 %v4455_v38 }
 0x150   : > { %1031 = vmatpush1.bf16.msra.mxu0 %v4424_v22  ;;  %4087 = vmatprep.subr.bf16.mxu1 %v4989_v6 }
 0x151   : > { %1275 = vmatprep.subr.bf16.mxu0 %v4427_v24 }
 0x153   : > { %1049 = vmatmul.mubr.bf16.vlgmr.msra.gmra.mrb[0].mxu0 %v838_v26  ;;  %4088 = vmatpush3.bf16.msra.mxu1 %v4456_v41 }
 0x154   : > { %1276 = vmatpush1.bf16.msra.mxu0 %v4425_v27  ;;  %1307 = vmatprep.mubr.bf16.mxu0 %v4988_v5  ;;  %v5649_v27 = vsub.s32 2, %v5618_v63 }
 0x155   : > { %1277 = vmatprep.subr.bf16.mxu0 %v4430_v28  ;;  %4093 = vmatprep.subr.bf16.mxu1 %v4989_v6 }
 0x156   : > { %4090 = vmatmul.mubr.bf16.vlgmr.msra.gmra.mrb[0].mxu1 %v838_v26  ;;  %v1143_v28 = vrot.slane %v1130_v0, %v5649_v27 }
 0x157   : > { %4109 = vmatprep.mubr.msk.bf16.mxu1 %vm4990_vm0, %v4989_v6  ;;  %4094 = vmatpush3.bf16.msra.mxu1 %v4457_v50 }
 0x158   : > { %1278 = vmatpush1.bf16.msra.mxu0 %v4428_v30  ;;  %4095 = vmatprep.subr.bf16.mxu1 %v4989_v6 }
 0x159   : > { %1279 = vmatprep.subr.bf16.mxu0 %v4433_v31 }
 0x15b   : > { %4096 = vmatpush3.bf16.msra.mxu1 %v4458_v51 }
 0x15c   : > { %1280 = vmatpush1.bf16.msra.mxu0 %v4431_v33  ;;  %4097 = vmatprep.subr.bf16.mxu1 %v4989_v6 }
 0x15d   : > { %1281 = vmatprep.subr.bf16.mxu0 %v4436_v34 }
 0x15f   : > { %4098 = vmatpush3.bf16.msra.mxu1 %v4459_v52 }
 0x160   : > { %1282 = vmatpush1.bf16.msra.mxu0 %v4434_v36  ;;  %4099 = vmatprep.subr.bf16.mxu1 %v4989_v6  ;;  %v5661_v36 = vld [vmem:[%s6207_s25] ss:$0 sm:$0xff] }
 0x161   : > { %1283 = vmatprep.subr.bf16.mxu0 %v4439_v37 }
 0x163   : > { %4100 = vmatpush3.bf16.msra.mxu1 %v4460_v53 }
 0x164   : > { %1284 = vmatpush1.bf16.msra.mxu0 %v4437_v39  ;;  %4101 = vmatprep.subr.bf16.mxu1 %v4989_v6 }
 0x165   : > { %1285 = vmatprep.subr.bf16.mxu0 %v4442_v40 }
 0x167   : > { %4102 = vmatpush3.bf16.msra.mxu1 %v4461_v54 }
 0x168   : > { %1286 = vmatpush1.bf16.msra.mxu0 %v4440_v42  ;;  %4103 = vmatprep.subr.bf16.mxu1 %v4989_v6 }
 0x169   : > { %1287 = vmatprep.subr.bf16.mxu0 %v4445_v43 }
 0x16b   : > { %4104 = vmatpush3.bf16.msra.mxu1 %v4462_v55 }
 0x16c   : > { %1288 = vmatpush1.bf16.msra.mxu0 %v4443_v44  ;;  %4105 = vmatprep.subr.bf16.mxu1 %v4989_v6 }
 0x16d   : > { %1289 = vmatprep.subr.bf16.mxu0 %v4448_v45 }
 0x16f   : > { %4106 = vmatpush3.bf16.msra.mxu1 %v4463_v56 }
 0x170   : > { %1290 = vmatpush1.bf16.msra.mxu0 %v4446_v46  ;;  %4107 = vmatprep.subr.bf16.mxu1 %v4989_v6 }
 0x171   : > { %4137 = vmatprep.subr.bf16.mxu0 %v4989_v6 }
 0x173   : > { %1308 = vmatmul.mubr.bf16.vlgmr.msra.gmra.mrb[4].mxu0 %v1097_v49  ;;  %4108 = vmatpush3.bf16.msra.mxu1 %v4464_v57 }
 0x174   : > { %4139 = vmatprep.mubr.msk.bf16.mxu0 %vm4990_vm0, %v4989_v6  ;;  %4113 = vmatprep.subr.bf16.mxu1 %v4989_v6 }
 0x176   : > { %4110 = vmatmul.mubr.bf16.vlgmr.msra.gmra.mrb[4].mxu1 %v1097_v49 }
 0x177   : > { %4115 = vmatprep.mubr.msk.bf16.mxu1 %vm4990_vm0, %v4989_v6 }
 0x226   : > { %v1050_v58 = vpop.f32.mrb[0].mxu0 }
 0x227   : > { %v5616_v59 = vpop.f32.mrb[1].mxu0  ;;  %v1051_v18 = vadd.f32 %v1050_v58, %v876_v10 }
 0x228   : > { %v1054_v60 = vpop.f32.mrb[2].mxu0 }
 0x229   : > { %v1055_v61 = vpop.f32.mrb[3].mxu0  ;;  %v1360_v21 = vpack.c.bf16 %v1051_v18, %v1051_v18  ;;  %v5646_v22 = vpop.f32.mrb[0].mxu1 }
 0x22a   : > { %v4091_v24 = vpop.f32.mrb[1].mxu1 }
 0x22b   : > { %v1094_v25 = vpop.f32.mrb[2].mxu1 }
 0x22c   : > { %v4092_v26 = vpop.f32.mrb[3].mxu1 }
 0x246   : > { %v1309_v7 = vpop.f32.mrb[4].mxu0 }
 0x247   : > { %v1311_v9 = vpop.f32.mrb[5].mxu0  ;;  %v1310_v12 = vadd.f32 %v1309_v7, %v1135_v4 }
 0x248   : > { %v1313_v11 = vpop.f32.mrb[6].mxu0  ;;  %v1312_v15 = vadd.f32 %v1311_v9, %v1139_v8 }
 0x249   : > { %v1314_v13 = vadd.f32 %v1313_v11, %v1135_v4  ;;  %v1315_v14 = vpop.f32.mrb[7].mxu0  ;;  %v1352_v29 = vpop.f32.mrb[4].mxu1 }
 0x24a   : > { %v1316_v16 = vadd.f32 %v1315_v14, %v1139_v8  ;;  %v1353_v30 = vadd.f32 %v1352_v29, %v1143_v28  ;;  %v4111_v31 = vpop.f32.mrb[5].mxu1 }
 0x24b   : > { %v5634_v17 = vpack.c.bf16 %v1314_v13, %v1310_v12  ;;  %v1355_v32 = vpop.f32.mrb[6].mxu1 }
 0x24c   : > { %v1361_v19 = vpack.c.bf16 %v1316_v16, %v1312_v15  ;;  %v1356_v33 = vadd.f32 %v1355_v32, %v1143_v28  ;;  %v4112_v34 = vpop.f32.mrb[7].mxu1 }
 0x24e   : > { %1477 = vrot.lane.b32.xlu1 %v1361_v19, %s4991_s9  ;;  %v1374_v20 = vsel %vm1369_vm1, %v1361_v19, 0  ;;  %v5652_v35 = vpack.c.bf16 %v1356_v33, %v1353_v30 }
 0x24f   : > { %4114 = vmatpush3.bf16.xpose.msra.mxu1 %v1374_v20 }
 0x250   : > { %4119 = vmatprep.subr.bf16.mxu1 %v4989_v6 }
 0x252   : > { %1474 = vrot.lane.b32.xlu1 %v1360_v21, %s4991_s9 }
 0x256   : > { %1590 = vrot.lane.b32.xlu1 %v1360_v21, %s4992_s23  ;;  %4116 = vmatmul.mubr.msk.bf16.vlgmr.msra.gmra.mrb[8].mxu1 %vm1369_vm1, %v1360_v21 }
 0x257   : > { %4121 = vmatprep.mubr.msk.bf16.mxu1 %vm4990_vm0, %v4989_v6  ;;  %4120 = vmatpush3.bf16.msra.mxu1 %v5652_v35 }
 0x258   : > { %4125 = vmatprep.subr.bf16.mxu1 %v4989_v6 }
 0x25a   : > { %1706 = vrot.lane.b32.xlu1 %v1361_v19, %s4993_s30 }
 0x25e   : > { %1704 = vrot.lane.b32.xlu1 %v1360_v21, %s4993_s30 }
 0x2c0   : > { %v1478_v48 = vpop.permute.xlu1 %1477 }
 0x2c1   : > { %v1483_v60 = vsel %vm1369_vm1, %v1478_v48, 0 }
 0x2c4   : > { %v1475_v49 = vpop.permute.xlu1 %1474 }
 0x2c8   : > { %v1591_v51 = vpop.permute.xlu1 %1590 }
 0x2cc   : > { %v1707_v54 = vpop.permute.xlu1 %1706 }
 0x2cd   : > { %v1712_v57 = vsel %vm1369_vm1, %v1707_v54, 0 }
 0x2d0   : > { %v1705_v61 = vpop.permute.xlu1 %1704 }
 0x329   : > { %v1410_v37 = vpop.f32.mrb[8].mxu1 }
 0x32a   : > { %v1411_v38 = vadd.f32 %v5661_v36, %v1410_v37  ;;  %v4117_v39 = vpop.f32.mrb[9].mxu1 }
 0x32b   : > { %v1413_v40 = vpop.f32.mrb[10].mxu1 }
 0x32c   : > { %v4118_v41 = vpop.f32.mrb[11].mxu1  ;;  %v1417_v42 = vsel %vm1416_vm2, %v1411_v38, -inf }
 0x32d   : > { %1418 = vmax.xlane.f32.xlu0 %v1417_v42 }
 0x3ba   : > { %v1419_v43 = vpop.xlane.xlu0 %1418 }
 0x3bb   : > { %v1420_v44 = vsub.f32 %v1411_v38, %v1419_v43 }
 0x3bd   : > { %v1421_v45 = vmul.f32 1.442695, %v1420_v44 }
 0x3bf   : > { %4561 = vpow2.f32 %v1421_v45 }
 0x3c9   : > { %v4562_v46 = vpop.eup %4561 }
 0x3ca   : > { %v1423_v47 = vsel %vm1416_vm2, %v4562_v46, 0.0 }
 0x3cb   : > { %1424 = vadd.xlane.f32.xlu0 %v1423_v47 }
 0x3e1   : > { %1592 = vrot.lane.b32.xlu0 %v1361_v19, %s4992_s23 }
 0x458   : > { %v1425_v50 = vpop.xlane.xlu0 %1424 }
 0x459   : > { %4563 = vrcp.f32 %v1425_v50 }
 0x45c   : > { %v1593_v52 = vpop.permute.xlu0 %1592 }
 0x45d   : > { %v1598_v53 = vsel %vm1369_vm1, %v1593_v52, 0 }
 0x45e   : > { %4138 = vmatpush3.bf16.xpose.msra.mxu0 %v1598_v53 }
 0x45f   : > { %4149 = vmatprep.subr.bf16.mxu0 %v4989_v6 }
 0x463   : > { %v4564_v55 = vpop.eup %4563 }
 0x464   : > { %v1427_v56 = vmul.f32 %v4564_v55, %v4562_v46 }
 0x465   : > { %4140 = vmatmul.mubr.msk.bf16.vlgmr.msra.gmra.mrb[8].mxu0 %vm1369_vm1, %v1591_v51 }
 0x466   : > { %4150 = vmatpush3.bf16.xpose.msra.mxu0 %v1712_v57  ;;  %v1428_v58 = vpack.c.bf16 %v1427_v56, %v1427_v56  ;;  %4151 = vmatprep.mubr.msk.bf16.mxu0 %vm4990_vm0, %v4989_v6 }
 0x467   : > { %4161 = vmatprep.subr.bf16.mxu0 %v4989_v6 }
 0x468   : > { %4122 = vmatmul.mubr.msk.bf16.vlgmr.msra.gmra.mrb[12].mxu1 %vm1416_vm2, %v1428_v58 }
 0x469   : > { %4126 = vmatpush3.bf16.xpose.msra.mxu1 %v1483_v60  ;;  %4127 = vmatprep.mubr.msk.bf16.mxu1 %vm4990_vm0, %v4989_v6 }
 0x46a   : > { %4131 = vmatprep.subr.bf16.mxu1 %v4989_v6 }
 0x46d   : > { %4152 = vmatmul.mubr.msk.bf16.vlgmr.msra.gmra.mrb[12].mxu0 %vm1369_vm1, %v1705_v61  ;;  %v4465_v61 = vld [vmem:[%s5477_s4] sm:$0xff]  }
 0x46e   : > { %4177 = vmatprep.mubr.msk.bf16.mxu0 %vm4990_vm0, %v4989_v6  ;;  %4162 = vmatpush3.bf16.msra.mxu0 %v4465_v61  ;;  %v4498_v61 = vld [vmem:[%s5485_s3] sm:$0xff]  }
 0x46f   : > { %4163 = vmatprep.subr.bf16.mxu0 %v4989_v6 }
 0x470   : > { %4128 = vmatmul.mubr.msk.bf16.vlgmr.msra.gmra.mrb[16].mxu1 %vm1369_vm1, %v1475_v49 }
 0x471   : > { %4133 = vmatprep.mubr.msk.bf16.mxu1 %vm4990_vm0, %v4989_v6 }
 0x538   : > { %v1634_v62 = vpop.f32.mrb[8].mxu0 }
 0x539   : > { %v1635_v0 = vadd.f32 %v5661_v36, %v1634_v62  ;;  %v4141_v4 = vpop.f32.mrb[9].mxu0  ;;  %v4466_v62 = vld [vmem:[%s5477_s4 + $0x8] sm:$0xff]  }
 0x53a   : > { %v1637_v7 = vpop.f32.mrb[10].mxu0  ;;  %4164 = vmatpush3.bf16.msra.mxu0 %v4466_v62  ;;  %v4468_v4 = vld [vmem:[%s5477_s4 + $0x18] sm:$0xff]   ;;  %v4499_v62 = vld [vmem:[%s5485_s3 + $0x48] sm:$0xff]  }
 0x53b   : > { %v1466_v8 = vpop.f32.mrb[12].mxu1  ;;  %v4142_v9 = vpop.f32.mrb[11].mxu0  ;;  %v1640_v10 = vsel %vm1416_vm2, %v1635_v0, -inf  ;;  %4165 = vmatprep.subr.bf16.mxu0 %v4989_v6  ;;  %v4469_v7 = vld [vmem:[%s5477_s4 + $0x20] sm:$0xff]  }
 0x53c   : > { %1472 = vst.msk [vmem:[#allocation4] sm:$0xff] %vm1369_vm1, %v1466_v8  ;;  %1641 = vmax.xlane.f32.xlu0 %v1640_v10  ;;  %v4123_v11 = vpop.f32.mrb[13].mxu1  ;;  %v4470_v8 = vld [vmem:[%s5477_s4 + $0x28] sm:$0xff]  }
 0x53d   : > { %v1469_v12 = vpop.f32.mrb[14].mxu1 }
 0x53e   : > { %v4124_v13 = vpop.f32.mrb[15].mxu1 }
 0x53f   : > { %v4471_v13 = vld [vmem:[%s5477_s4 + $0x30] sm:$0xff]  }
 0x540   : > { %v1748_v14 = vpop.f32.mrb[12].mxu0 }
 0x541   : > { %v4153_v15 = vpop.f32.mrb[13].mxu0  ;;  %v1749_v25 = vadd.f32 %v5661_v36, %v1748_v14  ;;  %v4472_v14 = vld [vmem:[%s5477_s4 + $0x38] sm:$0xff]  }
 0x542   : > { %v1751_v16 = vpop.f32.mrb[14].mxu0 }
 0x543   : > { %v1519_v18 = vpop.f32.mrb[16].mxu1  ;;  %v4154_v19 = vpop.f32.mrb[15].mxu0  ;;  %v1754_v29 = vsel %vm1416_vm2, %v1749_v25, -inf }
 0x544   : > { %v1520_v20 = vadd.f32 %v5661_v36, %v1519_v18  ;;  %v4129_v21 = vpop.f32.mrb[17].mxu1 }
 0x545   : > { %v1522_v24 = vpop.f32.mrb[18].mxu1 }
 0x546   : > { %v4130_v26 = vpop.f32.mrb[19].mxu1  ;;  %v1525_v28 = vsel %vm1416_vm2, %v1520_v20, -inf }
 0x547   : > { %1526 = vmax.xlane.f32.xlu1 %v1525_v28 }
 0x54b   : > { %1755 = vmax.xlane.f32.xlu1 %v1754_v29 }
 0x5c9   : > { %v1642_v30 = vpop.xlane.xlu0 %1641 }
 0x5ca   : > { %v1643_v31 = vsub.f32 %v1635_v0, %v1642_v30  ;;  %v4467_v0 = vld [vmem:[%s5477_s4 + $0x10] sm:$0xff]  }
 0x5cb   : > { %4166 = vmatpush3.bf16.msra.mxu0 %v4467_v0  ;;  %v4500_v0 = vld [vmem:[%s5485_s3 + $0x8] sm:$0xff]  }
 0x5cc   : > { %v1644_v32 = vmul.f32 1.442695, %v1643_v31  ;;  %4167 = vmatprep.subr.bf16.mxu0 %v4989_v6 }
 0x5ce   : > { %4565 = vpow2.f32 %v1644_v32  ;;  %v5733_v32 = vld [vmem:[%s5521_s18] sm:$0x3f] }
 0x5cf   : > { %4168 = vmatpush3.bf16.msra.mxu0 %v4468_v4  ;;  %v4501_v4 = vld [vmem:[%s5485_s3 + $0x50] sm:$0xff]  }
 0x5d0   : > { %4169 = vmatprep.subr.bf16.mxu0 %v4989_v6 }
 0x5d3   : > { %4170 = vmatpush3.bf16.msra.mxu0 %v4469_v7  ;;  %v4502_v7 = vld [vmem:[%s5485_s3 + $0x10] sm:$0xff]  }
 0x5d4   : > { %v1527_v33 = vpop.xlane.xlu1 %1526  ;;  %4171 = vmatprep.subr.bf16.mxu0 %v4989_v6 }
 0x5d5   : > { %v1528_v34 = vsub.f32 %v1520_v20, %v1527_v33  ;;  %v1839_v33 = vrot.slane %v5733_v32, %v5622_v1 }
 0x5d7   : > { %v1529_v36 = vmul.f32 1.442695, %v1528_v34  ;;  %4172 = vmatpush3.bf16.msra.mxu0 %v4470_v8  ;;  %v4503_v8 = vld [vmem:[%s5485_s3 + $0x58] sm:$0xff]  }
 0x5d8   : > { %v4566_v37 = vpop.eup %4565  ;;  %v1756_v38 = vpop.xlane.xlu1 %1755  ;;  %4173 = vmatprep.subr.bf16.mxu0 %v4989_v6 }
 0x5d9   : > { %v1757_v39 = vsub.f32 %v1749_v25, %v1756_v38  ;;  %v1646_v40 = vsel %vm1416_vm2, %v4566_v37, 0.0 }
 0x5da   : > { %1647 = vadd.xlane.f32.xlu0 %v1646_v40 }
 0x5db   : > { %v1758_v41 = vmul.f32 1.442695, %v1757_v39  ;;  %4174 = vmatpush3.bf16.msra.mxu0 %v4471_v13  ;;  %v4508_v13 = vld [vmem:[%s5485_s3 + $0x28] sm:$0xff]  }
 0x5dc   : > { %4175 = vmatprep.subr.bf16.mxu0 %v4989_v6 }
 0x5dd   : > { %4567 = vpow2.f32 %v1758_v41  ;;  %v4473_v41 = vld [vmem:[%s5483_s6] ss:$8 sps:$4 sm:$0xff]  }
 0x5de   : > { %4569 = vpow2.f32 %v1529_v36 }
 0x5df   : > { %4176 = vmatpush3.bf16.msra.mxu0 %v4472_v14 }
 0x5e7   : > { %v4568_v42 = vpop.eup %4567 }
 0x5e8   : > { %v1760_v43 = vsel %vm1416_vm2, %v4568_v42, 0.0  ;;  %v4570_v44 = vpop.eup %4569 }
 0x5e9   : > { %1761 = vadd.xlane.f32.xlu1 %v1760_v43  ;;  %v1531_v45 = vsel %vm1416_vm2, %v4570_v44, 0.0  ;;  %v4478_v43 = vld [vmem:[%s5483_s6 + $0x14] ss:$8 sps:$4 sm:$0xff]  }
 0x5ed   : > { %1532 = vadd.xlane.f32.xlu1 %v1531_v45  ;;  %v4481_v45 = vld [vmem:[%s5483_s6 + $0x24] ss:$8 sps:$4 sm:$0xff]  }
 0x5f0   : > { %1538 = vrot.lane.b32.xlu0 %v5652_v35, %s4991_s9 }
 0x5fe   : > { %1652 = vrot.lane.b32.xlu1 %v5652_v35, %s4992_s23 }
 0x602   : > { %1766 = vrot.lane.b32.xlu1 %v5652_v35, %s4993_s30 }
 0x667   : > { %v1648_v46 = vpop.xlane.xlu0 %1647 }
 0x66b   : > { %v1539_v47 = vpop.permute.xlu0 %1538 }
 0x66c   : > { %4132 = vmatpush3.bf16.msra.mxu1 %v1539_v47  ;;  %v4484_v47 = vld [vmem:[%s5483_s6 + $0x34] ss:$8 sps:$4 sm:$0xff]  }
 0x66d   : > { %4143 = vmatprep.subr.bf16.mxu1 %v4989_v6 }
 0x676   : > { %v1762_v48 = vpop.xlane.xlu1 %1761 }
 0x67a   : > { %v1533_v49 = vpop.xlane.xlu1 %1532 }
 0x67b   : > { %4571 = vrcp.f32 %v1533_v49 }
 0x67c   : > { %4573 = vrcp.f32 %v1648_v46  ;;  %v4479_v46 = vld [vmem:[%s5483_s6 + $0x20] ss:$8 sps:$4 sm:$0xff]  }
 0x67d   : > { %4575 = vrcp.f32 %v1762_v48  ;;  %v4482_v48 = vld [vmem:[%s5483_s6 + $0x30] ss:$8 sps:$4 sm:$0xff]  }
 0x67e   : > { %v1653_v54 = vpop.permute.xlu1 %1652 }
 0x682   : > { %v1767_v57 = vpop.permute.xlu1 %1766 }
 0x685   : > { %v4572_v50 = vpop.eup %4571 }
 0x686   : > { %v1535_v51 = vmul.f32 %v4572_v50, %v4570_v44  ;;  %v4574_v53 = vpop.eup %4573  ;;  %v4476_v44 = vld [vmem:[%s5483_s6 + $0x10] ss:$8 sps:$4 sm:$0xff]  }
 0x687   : > { %v1650_v35 = vmul.f32 %v4574_v53, %v4566_v37  ;;  %v4576_v56 = vpop.eup %4575  ;;  %v4485_v53 = vld [vmem:[%s5483_s6 + $0x40] ss:$8 sps:$4 sm:$0xff]  }
 0x688   : > { %v1536_v52 = vpack.c.bf16 %v1535_v51, %v1535_v51  ;;  %v1764_v58 = vmul.f32 %v4576_v56, %v4568_v42  ;;  %v4475_v42 = vld [vmem:[%s5483_s6 + $0x4] ss:$8 sps:$4 sm:$0xff]   ;;  %v4491_v56 = vld [vmem:[%s5483_s6 + $0x60] ss:$8 sps:$4 sm:$0xff]  }
 0x689   : > { %v1651_v55 = vpack.c.bf16 %v1650_v35, %v1650_v35  ;;  %v4488_v35 = vld [vmem:[%s5483_s6 + $0x50] ss:$8 sps:$4 sm:$0xff]  }
 0x68a   : > { %4134 = vmatmul.mubr.msk.bf16.vlgmr.msra.gmra.mrb[20].mxu1 %vm1416_vm2, %v1536_v52  ;;  %v1765_v60 = vpack.c.bf16 %v1764_v58, %v1764_v58  ;;  %v4487_v52 = vld [vmem:[%s5483_s6 + $0x44] ss:$8 sps:$4 sm:$0xff]   ;;  %v4494_v58 = vld [vmem:[%s5483_s6 + $0x70] ss:$8 sps:$4 sm:$0xff]  }
 0x68b   : > { %4144 = vmatpush3.bf16.msra.mxu1 %v1653_v54  ;;  %4145 = vmatprep.mubr.msk.bf16.mxu1 %vm4990_vm0, %v4989_v6  ;;  %v4490_v54 = vld [vmem:[%s5483_s6 + $0x54] ss:$8 sps:$4 sm:$0xff]  }
 0x68c   : > { %4155 = vmatprep.subr.bf16.mxu1 %v4989_v6 }
 0x692   : > { %4146 = vmatmul.mubr.msk.bf16.vlgmr.msra.gmra.mrb[24].mxu1 %vm1416_vm2, %v1651_v55  ;;  %v4493_v55 = vld [vmem:[%s5483_s6 + $0x64] ss:$8 sps:$4 sm:$0xff]  }
 0x693   : > { %4156 = vmatpush3.bf16.msra.mxu1 %v1767_v57  ;;  %4157 = vmatprep.mubr.msk.bf16.mxu1 %vm4990_vm0, %v4989_v6  ;;  %v4496_v57 = vld [vmem:[%s5483_s6 + $0x74] ss:$8 sps:$4 sm:$0xff]  }
 0x694   : > { %2060 = vmatprep.subr.bf16.mxu1 %v4475_v42 }
 0x69a   : > { %4158 = vmatmul.mubr.msk.bf16.vlgmr.msra.gmra.mrb[28].mxu1 %vm1416_vm2, %v1765_v60  ;;  %v4497_v60 = vld [vmem:[%s5485_s3 + $0x40] sm:$0xff]  }
 0x69b   : > { %2092 = vmatprep.mubr.bf16.mxu1 %v4988_v5  ;;  %2061 = vmatpush1.bf16.msra.mxu1 %v4473_v41 }
 0x69c   : > { %2062 = vmatprep.subr.bf16.mxu1 %v4478_v43  ;;  %4004 = vmatprep.subr.bf16.mxu0 %v4497_v60 }
 0x69f   : > { %2063 = vmatpush1.bf16.msra.mxu1 %v4476_v44 }
 0x6a0   : > { %2064 = vmatprep.subr.bf16.mxu1 %v4481_v45 }
 0x6a3   : > { %2065 = vmatpush1.bf16.msra.mxu1 %v4479_v46 }
 0x6a4   : > { %2066 = vmatprep.subr.bf16.mxu1 %v4484_v47 }
 0x6a7   : > { %2067 = vmatpush1.bf16.msra.mxu1 %v4482_v48 }
 0x6a8   : > { %2068 = vmatprep.subr.bf16.mxu1 %v4487_v52 }
 0x6ab   : > { %2069 = vmatpush1.bf16.msra.mxu1 %v4485_v53 }
 0x6ac   : > { %2070 = vmatprep.subr.bf16.mxu1 %v4490_v54 }
 0x6af   : > { %2071 = vmatpush1.bf16.msra.mxu1 %v4488_v35 }
 0x6b0   : > { %2072 = vmatprep.subr.bf16.mxu1 %v4493_v55 }
 0x6b3   : > { %2073 = vmatpush1.bf16.msra.mxu1 %v4491_v56 }
 0x6b4   : > { %2074 = vmatprep.subr.bf16.mxu1 %v4496_v57 }
 0x6b7   : > { %2075 = vmatpush1.bf16.msra.mxu1 %v4494_v58 }
 0x6b8   : > { %4181 = vmatprep.subr.bf16.mxu1 %v4989_v6 }
 0x75d   : > { %v1578_v9 = vpop.f32.mrb[20].mxu1 }
 0x75e   : > { %1585 = vrot.lane.b32.xlu0 %v1578_v9, %s4993_s30  ;;  %v4135_v10 = vpop.f32.mrb[21].mxu1  ;;  %v4504_v9 = vld [vmem:[%s5485_s3 + $0x18] sm:$0xff]  }
 0x75f   : > { %v1581_v11 = vpop.f32.mrb[22].mxu1  ;;  %v4505_v10 = vld [vmem:[%s5485_s3 + $0x60] sm:$0xff]  }
 0x760   : > { %v4136_v12 = vpop.f32.mrb[23].mxu1  ;;  %v4506_v11 = vld [vmem:[%s5485_s3 + $0x20] sm:$0xff]  }
 0x761   : > { %v4507_v12 = vld [vmem:[%s5485_s3 + $0x68] sm:$0xff]  }
 0x765   : > { %v1692_v15 = vpop.f32.mrb[24].mxu1 }
 0x766   : > { %1699 = vrot.lane.b32.xlu1 %v1692_v15, %s4992_s23  ;;  %v4147_v16 = vpop.f32.mrb[25].mxu1 }
 0x767   : > { %v1695_v18 = vpop.f32.mrb[26].mxu1 }
 0x768   : > { %v4148_v19 = vpop.f32.mrb[27].mxu1  ;;  %v880_v18 = vrot.slane %v5628_v3, %v5625_v2 }
 0x769   : > { %v1944_v19 = vrot.slane %v5733_v32, %v5625_v2 }
 0x76d   : > { %v1806_v20 = vpop.f32.mrb[28].mxu1 }
 0x76e   : > { %1813 = vrot.lane.b32.xlu0 %v1806_v20, %s4991_s9  ;;  %v4159_v21 = vpop.f32.mrb[29].mxu1 }
 0x76f   : > { %v1809_v24 = vpop.f32.mrb[30].mxu1  ;;  %v1053_v21 = vadd.f32 %v5616_v59, %v880_v18 }
 0x770   : > { %v4160_v25 = vpop.f32.mrb[31].mxu1 }
 0x771   : > { %v1949_v25 = vrot.slane %v5733_v32, %v5649_v27 }
 0x7d0   : > { %v1586_v26 = vpop.permute.xlu0 %1585 }
 0x7d1   : > { %1589 = vst.msk [vmem:[#allocation4] sm:$0xff] %vm1588_vm3, %v1586_v26 }
 0x7d8   : > { %v1700_v28 = vpop.permute.xlu1 %1699 }
 0x7d9   : > { %1703 = vst.msk [vmem:[#allocation4] sm:$0xff] %vm1702_vm4, %v1700_v28  ;;  %v5774_v28 = vpack.c.bf16 %v1053_v21, %v1053_v21 }
 0x7db   : > { %v2314_v59 = vsel %vm1369_vm1, %v5774_v28, 0 }
 0x7e0   : > { %v1814_v29 = vpop.permute.xlu0 %1813 }
 0x7e1   : > { %1817 = vst.msk [vmem:[#allocation4] sm:$0xff] %vm1816_vm5, %v1814_v29  ;;  %v884_v29 = vrot.slane %v5628_v3, %v5649_v27 }
 0x7e8   : > { %v1818_v30 = vld [vmem:[#allocation4] sm:$0xff] }
 0x7e9   : > { %v1819_v31 = vpack.c.bf16 %v1818_v30, %v1818_v30 }
 0x7eb   : > { %4178 = vmatmul.mubr.bf16.vlgmr.msra.gmra.mrb[16].mxu0 %v1819_v31 }
 0x7ec   : > { %4005 = vmatpush3.bf16.msra.mxu0 %v4498_v61 }
 0x7ed   : > { %4006 = vmatprep.subr.bf16.mxu0 %v4499_v62 }
 0x7f0   : > { %4007 = vmatpush3.bf16.msra.mxu0 %v4500_v0 }
 0x7f1   : > { %4008 = vmatprep.subr.bf16.mxu0 %v4501_v4 }
 0x7f4   : > { %4009 = vmatpush3.bf16.msra.mxu0 %v4502_v7 }
 0x7f5   : > { %4010 = vmatprep.subr.bf16.mxu0 %v4503_v8 }
 0x7f8   : > { %4011 = vmatpush3.bf16.msra.mxu0 %v4504_v9 }
 0x7f9   : > { %4012 = vmatprep.subr.bf16.mxu0 %v4505_v10 }
 0x7fc   : > { %4013 = vmatpush3.bf16.msra.mxu0 %v4506_v11 }
 0x7fd   : > { %4014 = vmatprep.subr.bf16.mxu0 %v4507_v12 }
 0x800   : > { %4015 = vmatpush3.bf16.msra.mxu0 %v4508_v13 }
 0x8be   : > { %v1922_v34 = vpop.f32.mrb[16].mxu0 }
 0x8bf   : > { %v1923_v37 = vadd.f32 %v1922_v34, %v1839_v33  ;;  %v4179_v38 = vpop.f32.mrb[17].mxu0  ;;  %v1092_v33 = vadd.f32 %v5646_v22, %v884_v29  ;;  %v4509_v34 = vld [vmem:[%s5485_s3 + $0x70] sm:$0xff]  }
 0x8c0   : > { %v1925_v39 = vpop.f32.mrb[18].mxu0  ;;  %4016 = vmatprep.subr.bf16.mxu0 %v4509_v34  ;;  %v4511_v38 = vld [vmem:[%s5485_s3 + $0x78] sm:$0xff]  }
 0x8c1   : > { %v4180_v40 = vpop.f32.mrb[19].mxu0  ;;  %v1928_v36 = vadd.f32 %v1923_v37, %v5557_v23  ;;  %v5788_v3 = vpack.c.bf16 %v1092_v33, %v1092_v33  ;;  %v4510_v37 = vld [vmem:[%s5485_s3 + $0x30] sm:$0xff]   ;;  %v4512_v39 = vld [vmem:[%s5485_s3 + $0x38] sm:$0xff]  }
 0x8c2   : > { %4017 = vmatpush3.bf16.msra.mxu0 %v4510_v37  ;;  %v1968_v40 = vld [vmem:[%s5506_s13] sm:$0x3] }
 0x8c3   : > { %1929 = vadd.xlane.f32.xlu1 %v1928_v36  ;;  %v2386_v22 = vsel %vm2384_vm6, %v5788_v3, 0  ;;  %4018 = vmatprep.subr.bf16.mxu0 %v4511_v38  ;;  %v1977_v41 = vrot.slane %v1968_v40, %v5625_v2 }
 0x8c6   : > { %4019 = vmatpush3.bf16.msra.mxu0 %v4512_v39 }
 0x8c7   : > { %4205 = vmatprep.subr.bf16.mxu0 %v4989_v6 }
 0x950   : > { %v1930_v23 = vpop.xlane.xlu1 %1929 }
 0x951   : > { %v1932_v49 = vmul.f32 0.0078125, %v1930_v23 }
 0x953   : > { %v1933_v50 = vsub.f32 %v1928_v36, %v1932_v49  ;;  %v1973_v36 = vrot.slane %v1968_v40, %v5622_v1 }
 0x955   : > { %v1934_v51 = vmul.f32 %v1933_v50, %v1933_v50 }
 0x957   : > { %1935 = vadd.xlane.f32.xlu0 %v1934_v51 }
 0x9e4   : > { %v1936_v14 = vpop.xlane.xlu0 %1935 }
 0x9e5   : > { %v1937_v15 = vmul.f32 0.0078125, %v1936_v14 }
 0x9e7   : > { %v1938_v16 = vadd.f32 1e-05, %v1937_v15 }
 0x9e9   : > { %4577 = vrsqrt.f32 %v1938_v16 }
 0x9f3   : > { %v4578_v20 = vpop.eup %4577 }
 0x9f4   : > { %v1940_v24 = vmul.f32 %v4578_v20, %v1933_v50  ;;  %v5807_v50 = vld [vmem:[%s6208_s16] ss:$0 sm:$0xff] }
 0x9f6   : > { %v1945_v26 = vmul.f32 %v1944_v19, %v1940_v24 }
 0x9f8   : > { %v5778_v30 = vadd.f32 %v1949_v25, %v1945_v26 }
 0x9fa   : > { %v1951_v31 = vpack.c.bf16 %v5778_v30, %v5778_v30 }
 0x9fc   : > { %2093 = vmatmul.mubr.bf16.vlgmr.msra.gmra.mrb[32].mxu1 %v1951_v31 }
 0x9fd   : > { %4182 = vmatpush3.bf16.xpose.msra.mxu1 %v2314_v59  ;;  %4183 = vmatprep.mubr.msk.bf16.mxu1 %vm4990_vm0, %v4989_v6 }
 0x9fe   : > { %4187 = vmatprep.subr.bf16.mxu1 %v4989_v6 }
 0xa04   : > { %4184 = vmatmul.mubr.msk.bf16.vlgmr.msra.gmra.mrb[36].mxu1 %vm1369_vm1, %v5634_v17 }
 0xa05   : > { %4188 = vmatpush3.bf16.msra.mxu1 %v2386_v22  ;;  %4189 = vmatprep.mubr.msk.bf16.mxu1 %vm4990_vm0, %v4989_v6 }
 0xa06   : > { %4193 = vmatprep.subr.bf16.mxu1 %v4989_v6 }
 0xacf   : > { %v2094_v42 = vpop.f32.mrb[32].mxu1 }
 0xad0   : > { %v2095_v43 = vadd.f32 %v2094_v42, %v1973_v36  ;;  %v2096_v44 = vpop.f32.mrb[33].mxu1 }
 0xad1   : > { %v2097_v45 = vadd.f32 %v2096_v44, %v1977_v41  ;;  %v2098_v46 = vpop.f32.mrb[34].mxu1 }
 0xad2   : > { %v2101_v47 = vmax.f32 %v2095_v43, 0.0  ;;  %v2099_v48 = vpop.f32.mrb[35].mxu1 }
 0xad3   : > { %v2102_v23 = vmax.f32 %v2097_v45, 0.0 }
 0xad4   : > { %v2103_v51 = vpack.c.bf16 %v2101_v47, %v2101_v47 }
 0xad5   : > { %v2104_v49 = vpack.c.bf16 %v2102_v23, %v2102_v23 }
 0xad7   : > { %2269 = vmatprep.mubr.bf16.mxu0 %v2104_v49  ;;  %v2350_v52 = vpop.f32.mrb[36].mxu1 }
 0xad8   : > { %v2351_v53 = vadd.f32 %v5807_v50, %v2350_v52  ;;  %2270 = vmatmul.mubr.bf16.vlgmr.msra.gmra.mrb[20].mxu0 %v2103_v51  ;;  %v4185_v54 = vpop.f32.mrb[37].mxu1 }
 0xad9   : > { %v2353_v35 = vpop.f32.mrb[38].mxu1  ;;  %4207 = vmatprep.mubr.msk.bf16.mxu0 %vm4990_vm0, %v4989_v6 }
 0xada   : > { %v2354_v55 = vadd.f32 %v5807_v50, %v2353_v35  ;;  %v4186_v56 = vpop.f32.mrb[39].mxu1  ;;  %v2358_v57 = vsel %vm2357_vm7, %v2351_v53, -inf }
 0xadb   : > { %2359 = vmax.xlane.f32.xlu0 %v2358_v57 }
 0xadc   : > { %v2361_v58 = vsel %vm2357_vm7, %v2354_v55, -inf }
 0xadd   : > { %2362 = vmax.xlane.f32.xlu1 %v2361_v58 }
 0xb68   : > { %v2360_v60 = vpop.xlane.xlu0 %2359 }
 0xb69   : > { %v2364_v61 = vsub.f32 %v2351_v53, %v2360_v60 }
 0xb6a   : > { %v2363_v62 = vpop.xlane.xlu1 %2362 }
 0xb6b   : > { %v2366_v0 = vmul.f32 1.442695, %v2364_v61  ;;  %v2365_v4 = vsub.f32 %v2354_v55, %v2363_v62 }
 0xb6d   : > { %4579 = vpow2.f32 %v2366_v0  ;;  %v2368_v7 = vmul.f32 1.442695, %v2365_v4 }
 0xb6f   : > { %4581 = vpow2.f32 %v2368_v7 }
 0xb77   : > { %v4580_v8 = vpop.eup %4579 }
 0xb78   : > { %v2370_v9 = vsel %vm2357_vm7, %v4580_v8, 0.0 }
 0xb79   : > { %v4582_v10 = vpop.eup %4581  ;;  %2371 = vadd.xlane.f32.xlu0 %v2370_v9 }
 0xb7a   : > { %v2373_v11 = vsel %vm2357_vm7, %v4582_v10, 0.0 }
 0xb7b   : > { %2374 = vadd.xlane.f32.xlu1 %v2373_v11 }
 0xb8c   : > { %2432 = vrot.lane.b32.xlu1 %v5634_v17, %s4991_s9 }
 0xb8f   : > { %2435 = vrot.lane.b32.xlu0 %v5774_v28, %s4991_s9 }
 0xb90   : > { %2569 = vrot.lane.b32.xlu1 %v5774_v28, %s4992_s23 }
 0xb93   : > { %2567 = vrot.lane.b32.xlu0 %v5634_v17, %s4992_s23 }
 0xb94   : > { %2702 = vrot.lane.b32.xlu1 %v5774_v28, %s4993_s30 }
 0xb97   : > { %2700 = vrot.lane.b32.xlu0 %v5634_v17, %s4993_s30 }
 0xbab   : > { %v4020_v12 = vpop.f32.mrb[20].mxu0 }
 0xbac   : > { %v4021_v13 = vpop.f32.mrb[21].mxu0 }
 0xbad   : > { %v5829_v14 = vadd.f32 %v4021_v13, %v4020_v12  ;;  %v4023_v15 = vpop.f32.mrb[22].mxu0 }
 0xbae   : > { %v4024_v16 = vpop.f32.mrb[23].mxu0 }
 0xc06   : > { %v2372_v18 = vpop.xlane.xlu0 %2371 }
 0xc07   : > { %4583 = vrcp.f32 %v2372_v18 }
 0xc08   : > { %v2375_v19 = vpop.xlane.xlu1 %2374 }
 0xc09   : > { %4585 = vrcp.f32 %v2375_v19 }
 0xc0a   : > { %v2436_v26 = vpop.permute.xlu0 %2435 }
 0xc0b   : > { %v2441_v59 = vsel %vm1369_vm1, %v2436_v26, 0 }
 0xc0c   : > { %v2433_v20 = vpop.permute.xlu1 %2432 }
 0xc0e   : > { %v2568_v22 = vpop.permute.xlu0 %2567 }
 0xc10   : > { %v2570_v21 = vpop.permute.xlu1 %2569 }
 0xc11   : > { %v4584_v24 = vpop.eup %4583  ;;  %v2575_v25 = vsel %vm1369_vm1, %v2570_v21, 0 }
 0xc12   : > { %4206 = vmatpush3.bf16.xpose.msra.mxu0 %v2575_v25  ;;  %v2378_v17 = vmul.f32 %v4584_v24, %v4580_v8  ;;  %v2701_v37 = vpop.permute.xlu0 %2700 }
 0xc13   : > { %v4586_v28 = vpop.eup %4585  ;;  %4217 = vmatprep.subr.bf16.mxu0 %v4989_v6 }
 0xc14   : > { %v2379_v29 = vmul.f32 %v4586_v28, %v4582_v10  ;;  %v2703_v31 = vpop.permute.xlu1 %2702 }
 0xc15   : > { %v2708_v34 = vsel %vm1369_vm1, %v2703_v31, 0 }
 0xc16   : > { %v2380_v33 = vpack.c.bf16 %v2379_v29, %v2378_v17 }
 0xc18   : > { %4190 = vmatmul.mubr.msk.bf16.vlgmr.msra.gmra.mrb[40].mxu1 %vm2357_vm7, %v2380_v33 }
 0xc19   : > { %4194 = vmatpush3.bf16.xpose.msra.mxu1 %v2441_v59  ;;  %4208 = vmatmul.mubr.msk.bf16.vlgmr.msra.gmra.mrb[24].mxu0 %vm1369_vm1, %v2568_v22 }
 0xc1a   : > { %4218 = vmatpush3.bf16.xpose.msra.mxu0 %v2708_v34  ;;  %4195 = vmatprep.mubr.msk.bf16.mxu1 %vm4990_vm0, %v4989_v6 }
 0xc1b   : > { %4219 = vmatprep.mubr.msk.bf16.mxu0 %vm4990_vm0, %v4989_v6  ;;  %4199 = vmatprep.subr.bf16.mxu1 %v4989_v6 }
 0xc1c   : > { %4229 = vmatprep.subr.bf16.mxu0 %v4989_v6 }
 0xc20   : > { %4196 = vmatmul.mubr.msk.bf16.vlgmr.msra.gmra.mrb[44].mxu1 %vm1369_vm1, %v2433_v20 }
 0xc21   : > { %4220 = vmatmul.mubr.msk.bf16.vlgmr.msra.gmra.mrb[28].mxu0 %vm1369_vm1, %v2701_v37  ;;  %4201 = vmatprep.mubr.msk.bf16.mxu1 %vm4990_vm0, %v4989_v6 }
 0xc22   : > { %4245 = vmatprep.mubr.msk.bf16.mxu0 %vm4990_vm0, %v4989_v6 }
 0xceb   : > { %v2422_v38 = vpop.f32.mrb[40].mxu1 }
 0xcec   : > { %2429 = vst.msk [vmem:[#allocation4] sm:$0xff] %vm1369_vm1, %v2422_v38  ;;  %v4191_v39 = vpop.f32.mrb[41].mxu1  ;;  %v2611_v40 = vpop.f32.mrb[24].mxu0 }
 0xced   : > { %v2425_v36 = vpop.f32.mrb[42].mxu1  ;;  %v4209_v41 = vpop.f32.mrb[25].mxu0  ;;  %v2612_v56 = vadd.f32 %v5807_v50, %v2611_v40 }
 0xcee   : > { %2430 = vst.msk [vmem:[#allocation4 + $0x8] sm:$0xff] %vm1369_vm1, %v2425_v36  ;;  %v4192_v42 = vpop.f32.mrb[43].mxu1  ;;  %v2614_v43 = vpop.f32.mrb[26].mxu0 }
 0xcef   : > { %v4210_v44 = vpop.f32.mrb[27].mxu0  ;;  %v2615_v51 = vadd.f32 %v5807_v50, %v2614_v43  ;;  %v2618_v62 = vsel %vm2357_vm7, %v2612_v56, -inf }
 0xcf1   : > { %v2621_v60 = vsel %vm2357_vm7, %v2615_v51, -inf }
 0xcf3   : > { %v2477_v45 = vpop.f32.mrb[44].mxu1 }
 0xcf4   : > { %v2478_v46 = vadd.f32 %v5807_v50, %v2477_v45  ;;  %v4197_v47 = vpop.f32.mrb[45].mxu1  ;;  %v2744_v48 = vpop.f32.mrb[28].mxu0 }
 0xcf5   : > { %v2480_v23 = vpop.f32.mrb[46].mxu1  ;;  %v4221_v49 = vpop.f32.mrb[29].mxu0  ;;  %v2745_v61 = vadd.f32 %v5807_v50, %v2744_v48 }
 0xcf6   : > { %v2481_v52 = vadd.f32 %v5807_v50, %v2480_v23  ;;  %v4198_v53 = vpop.f32.mrb[47].mxu1  ;;  %v2747_v54 = vpop.f32.mrb[30].mxu0  ;;  %v2484_v35 = vsel %vm2357_vm7, %v2478_v46, -inf }
 0xcf7   : > { %2485 = vmax.xlane.f32.xlu1 %v2484_v35  ;;  %v4222_v55 = vpop.f32.mrb[31].mxu0  ;;  %v2748_v58 = vadd.f32 %v5807_v50, %v2747_v54  ;;  %v2751_v4 = vsel %vm2357_vm7, %v2745_v61, -inf }
 0xcf8   : > { %v2487_v57 = vsel %vm2357_vm7, %v2481_v52, -inf }
 0xcf9   : > { %2488 = vmax.xlane.f32.xlu0 %v2487_v57  ;;  %v2754_v0 = vsel %vm2357_vm7, %v2748_v58, -inf }
 0xcfb   : > { %2622 = vmax.xlane.f32.xlu1 %v2621_v60 }
 0xcfd   : > { %2619 = vmax.xlane.f32.xlu0 %v2618_v62 }
 0xcff   : > { %2755 = vmax.xlane.f32.xlu1 %v2754_v0 }
 0xd01   : > { %2752 = vmax.xlane.f32.xlu0 %v2751_v4 }
 0xd84   : > { %v2486_v7 = vpop.xlane.xlu1 %2485 }
 0xd85   : > { %v2490_v18 = vsub.f32 %v2478_v46, %v2486_v7 }
 0xd86   : > { %v2489_v8 = vpop.xlane.xlu0 %2488 }
 0xd87   : > { %v2491_v11 = vsub.f32 %v2481_v52, %v2489_v8  ;;  %v2492_v26 = vmul.f32 1.442695, %v2490_v18 }
 0xd88   : > { %v2623_v9 = vpop.xlane.xlu1 %2622 }
 0xd89   : > { %v2625_v10 = vsub.f32 %v2615_v51, %v2623_v9  ;;  %v2494_v20 = vmul.f32 1.442695, %v2491_v11  ;;  %v4513_v9 = vld [vmem:[%s5477_s4 + $0x40] sm:$0xff]   ;;  %v4515_v11 = vld [vmem:[%s5477_s4 + $0x50] sm:$0xff]  }
 0xd8a   : > { %v2620_v12 = vpop.xlane.xlu0 %2619  ;;  %4230 = vmatpush3.bf16.msra.mxu0 %v4513_v9  ;;  %v4530_v9 = vld [vmem:[%s5483_s6 + $0xb0] ss:$8 sps:$4 sm:$0xff]  }
 0xd8b   : > { %v2628_v13 = vmul.f32 1.442695, %v2625_v10  ;;  %v2624_v15 = vsub.f32 %v2612_v56, %v2620_v12  ;;  %4231 = vmatprep.subr.bf16.mxu0 %v4989_v6  ;;  %v4514_v10 = vld [vmem:[%s5477_s4 + $0x48] sm:$0xff]   ;;  %v4516_v12 = vld [vmem:[%s5477_s4 + $0x58] sm:$0xff]  }
 0xd8c   : > { %v2756_v16 = vpop.xlane.xlu1 %2755 }
 0xd8d   : > { %4587 = vpow2.f32 %v2628_v13  ;;  %v2626_v50 = vmul.f32 1.442695, %v2624_v15  ;;  %v2758_v19 = vsub.f32 %v2748_v58, %v2756_v16  ;;  %v4517_v13 = vld [vmem:[%s5477_s4 + $0x60] sm:$0xff]  }
 0xd8e   : > { %v2753_v21 = vpop.xlane.xlu0 %2752  ;;  %4232 = vmatpush3.bf16.msra.mxu0 %v4514_v10  ;;  %v4535_v10 = vld [vmem:[%s5483_s6 + $0xc4] ss:$8 sps:$4 sm:$0xff]  }
 0xd8f   : > { %4589 = vpow2.f32 %v2626_v50  ;;  %v2761_v24 = vmul.f32 1.442695, %v2758_v19  ;;  %v2757_v25 = vsub.f32 %v2745_v61, %v2753_v21  ;;  %4233 = vmatprep.subr.bf16.mxu0 %v4989_v6  ;;  %v4518_v50 = vld [vmem:[%s5477_s4 + $0x68] sm:$0xff]   ;;  %v4519_v19 = vld [vmem:[%s5477_s4 + $0x70] sm:$0xff]  }
 0xd91   : > { %4591 = vpow2.f32 %v2761_v24  ;;  %v2759_v28 = vmul.f32 1.442695, %v2757_v25  ;;  %v4520_v25 = vld [vmem:[%s5477_s4 + $0x78] sm:$0xff]   ;;  %s6209_s4 = sld [smem:[#allocation35_spill]] }
 0xd92   : > { %4593 = vpow2.f32 %v2494_v20  ;;  %4234 = vmatpush3.bf16.msra.mxu0 %v4515_v11  ;;  %v4533_v11 = vld [vmem:[%s5483_s6 + $0xc0] ss:$8 sps:$4 sm:$0xff]  }
 0xd93   : > { %4595 = vpow2.f32 %v2759_v28  ;;  %4235 = vmatprep.subr.bf16.mxu0 %v4989_v6 }
 0xd94   : > { %4597 = vpow2.f32 %v2492_v26 }
 0xd96   : > { %4236 = vmatpush3.bf16.msra.mxu0 %v4516_v12  ;;  %v4538_v12 = vld [vmem:[%s5483_s6 + $0xd4] ss:$8 sps:$4 sm:$0xff]  }
 0xd97   : > { %v4588_v17 = vpop.eup %4587  ;;  %4237 = vmatprep.subr.bf16.mxu0 %v4989_v6  ;;  %p3946_p2 = scmp.ne.s32.totalorder %s6209_s4, 1 }
 0xd98   : > { %v2633_v29 = vsel %vm2357_vm7, %v4588_v17, 0.0 }
 0xd99   : > { %v4590_v31 = vpop.eup %4589  ;;  %2634 = vadd.xlane.f32.xlu1 %v2633_v29 }
 0xd9a   : > { %v2630_v33 = vsel %vm2357_vm7, %v4590_v31, 0.0  ;;  %4238 = vmatpush3.bf16.msra.mxu0 %v4517_v13  ;;  %v4536_v13 = vld [vmem:[%s5483_s6 + $0xd0] ss:$8 sps:$4 sm:$0xff]  }
 0xd9b   : > { %v4592_v59 = vpop.eup %4591  ;;  %2631 = vadd.xlane.f32.xlu0 %v2630_v33  ;;  %4239 = vmatprep.subr.bf16.mxu0 %v4989_v6 }
 0xd9c   : > { %v4594_v22 = vpop.eup %4593  ;;  %v2766_v34 = vsel %vm2357_vm7, %v4592_v59, 0.0 }
 0xd9d   : > { %v4596_v37 = vpop.eup %4595  ;;  %2767 = vadd.xlane.f32.xlu1 %v2766_v34  ;;  %v2499_v40 = vsel %vm2357_vm7, %v4594_v22, 0.0 }
 0xd9e   : > { %v2763_v38 = vsel %vm2357_vm7, %v4596_v37, 0.0  ;;  %v4598_v39 = vpop.eup %4597  ;;  %4240 = vmatpush3.bf16.msra.mxu0 %v4518_v50  ;;  %v4545_v50 = vld [vmem:[%s5485_s3 + $0xc0] sm:$0xff]  }
 0xd9f   : > { %2764 = vadd.xlane.f32.xlu0 %v2763_v38  ;;  %v2496_v36 = vsel %vm2357_vm7, %v4598_v39, 0.0  ;;  %4241 = vmatprep.subr.bf16.mxu0 %v4989_v6 }
 0xda1   : > { %2500 = vadd.xlane.f32.xlu1 %v2499_v40 }
 0xda2   : > { %4242 = vmatpush3.bf16.msra.mxu0 %v4519_v19  ;;  %v4546_v19 = vld [vmem:[%s5485_s3 + $0x80] sm:$0xff]  }
 0xda3   : > { %2497 = vadd.xlane.f32.xlu0 %v2496_v36  ;;  %4243 = vmatprep.subr.bf16.mxu0 %v4989_v6  ;;  %v5916_v36 = vld [vmem:[%s5521_s18 + $0x8] sm:$0x3f] }
 0xda6   : > { %4244 = vmatpush3.bf16.msra.mxu0 %v4520_v25  ;;  %v4550_v25 = vld [vmem:[%s5485_s3 + $0x90] sm:$0xff]  }
 0xda7   : > { %4051 = vmatprep.subr.bf16.mxu0 %v4545_v50 }
 0xdb2   : > { %2641 = vrot.lane.b32.xlu1 %v5788_v3, %s4992_s23 }
 0xdb6   : > { %2774 = vrot.lane.b32.xlu1 %v5788_v3, %s4993_s30 }
 0xdb9   : > { %2508 = vrot.lane.b32.xlu0 %v5788_v3, %s4991_s9 }
 0xe26   : > { %v2635_v41 = vpop.xlane.xlu1 %2634 }
 0xe28   : > { %v2632_v42 = vpop.xlane.xlu0 %2631 }
 0xe2a   : > { %v2768_v43 = vpop.xlane.xlu1 %2767 }
 0xe2c   : > { %v2765_v44 = vpop.xlane.xlu0 %2764 }
 0xe2e   : > { %v2501_v45 = vpop.xlane.xlu1 %2500 }
 0xe2f   : > { %4599 = vrcp.f32 %v2501_v45 }
 0xe30   : > { %v2498_v46 = vpop.xlane.xlu0 %2497 }
 0xe31   : > { %4601 = vrcp.f32 %v2498_v46 }
 0xe32   : > { %4603 = vrcp.f32 %v2632_v42  ;;  %v2642_v52 = vpop.permute.xlu1 %2641  ;;  %v2856_v42 = vrot.slane %v5916_v36, %v5622_v1 }
 0xe33   : > { %4605 = vrcp.f32 %v2635_v41  ;;  %v2647_v35 = vsel %vm2384_vm6, %v2642_v52, 0  ;;  %v2139_v41 = vsub.s32 3, %v5618_v63  ;;  %v4622_v52 = vld [vmem:[#allocation3 + $0x8] sm:$0xff] }
 0xe34   : > { %v2509_v47 = vpop.permute.xlu0 %2508  ;;  %4607 = vrcp.f32 %v2765_v44 }
 0xe35   : > { %v2514_v48 = vsel %vm2384_vm6, %v2509_v47, 0  ;;  %4609 = vrcp.f32 %v2768_v43  ;;  %v2140_v44 = vrot.slane %v5733_v32, %v2139_v41  ;;  %v4521_v32 = vld [vmem:[%s5483_s6 + $0x80] ss:$8 sps:$4 sm:$0xff]  }
 0xe36   : > { %4200 = vmatpush3.bf16.msra.mxu1 %v2514_v48  ;;  %v2775_v58 = vpop.permute.xlu1 %2774 }
 0xe37   : > { %4211 = vmatprep.subr.bf16.mxu1 %v4989_v6  ;;  %v2780_v62 = vsel %vm2384_vm6, %v2775_v58, 0 }
 0xe39   : > { %v4600_v23 = vpop.eup %4599 }
 0xe3a   : > { %v2505_v51 = vmul.f32 %v4600_v23, %v4594_v22 }
 0xe3b   : > { %v4602_v49 = vpop.eup %4601 }
 0xe3c   : > { %v2504_v3 = vmul.f32 %v4602_v49, %v4598_v39  ;;  %v4604_v54 = vpop.eup %4603  ;;  %v4621_v49 = vld [vmem:[#allocation3] sm:$0xff] }
 0xe3d   : > { %v4606_v55 = vpop.eup %4605  ;;  %v2638_v56 = vmul.f32 %v4604_v54, %v4590_v31 }
 0xe3e   : > { %v2506_v53 = vpack.c.bf16 %v2505_v51, %v2504_v3  ;;  %v2639_v57 = vmul.f32 %v4606_v55, %v4588_v17  ;;  %v4608_v61 = vpop.eup %4607  ;;  %v2272_v3 = vadd.f32 %v5829_v14, %v2140_v44  ;;  %v4526_v55 = vld [vmem:[%s5483_s6 + $0x94] ss:$8 sps:$4 sm:$0xff]  }
 0xe3f   : > { %v4610_v0 = vpop.eup %4609  ;;  %v2771_v4 = vmul.f32 %v4608_v61, %v4596_v37 }
 0xe40   : > { %4202 = vmatmul.mubr.msk.bf16.vlgmr.msra.gmra.mrb[48].mxu1 %vm2357_vm7, %v2506_v53  ;;  %v2640_v60 = vpack.c.bf16 %v2639_v57, %v2638_v56  ;;  %v2772_v7 = vmul.f32 %v4610_v0, %v4592_v59  ;;  %v5926_v54 = vadd.f32 %v2272_v3, %v5778_v30  ;;  %v4524_v56 = vld [vmem:[%s5483_s6 + $0x90] ss:$8 sps:$4 sm:$0xff]  }
 0xe41   : > { %4212 = vmatpush3.bf16.msra.mxu1 %v2647_v35  ;;  %4213 = vmatprep.mubr.msk.bf16.mxu1 %vm4990_vm0, %v4989_v6  ;;  %v4523_v35 = vld [vmem:[%s5483_s6 + $0x84] ss:$8 sps:$4 sm:$0xff]   ;;  %v4558_v3 = vld [vmem:[%s5485_s3 + $0xb0] sm:$0xff]  }
 0xe42   : > { %4223 = vmatprep.subr.bf16.mxu1 %v4989_v6  ;;  %v2773_v8 = vpack.c.bf16 %v2772_v7, %v2771_v4  ;;  %v4529_v4 = vld [vmem:[%s5483_s6 + $0xa4] ss:$8 sps:$4 sm:$0xff]   ;;  %v4527_v7 = vld [vmem:[%s5483_s6 + $0xa0] ss:$8 sps:$4 sm:$0xff]  }
 0xe48   : > { %4214 = vmatmul.mubr.msk.bf16.vlgmr.msra.gmra.mrb[52].mxu1 %vm2357_vm7, %v2640_v60 }
 0xe49   : > { %4224 = vmatpush3.bf16.msra.mxu1 %v2780_v62  ;;  %4225 = vmatprep.mubr.msk.bf16.mxu1 %vm4990_vm0, %v4989_v6 }
 0xe4a   : > { %3093 = vmatprep.subr.bf16.mxu1 %v4523_v35 }
 0xe50   : > { %4226 = vmatmul.mubr.msk.bf16.vlgmr.msra.gmra.mrb[56].mxu1 %vm2357_vm7, %v2773_v8  ;;  %v4532_v8 = vld [vmem:[%s5483_s6 + $0xb4] ss:$8 sps:$4 sm:$0xff]  }
 0xe51   : > { %3125 = vmatprep.mubr.bf16.mxu1 %v4988_v5  ;;  %3094 = vmatpush1.bf16.msra.mxu1 %v4521_v32  ;;  %v3881_v32 = vld [vmem:[%s5506_s13 + $0x2] sm:$0x3] }
 0xe52   : > { %3095 = vmatprep.subr.bf16.mxu1 %v4526_v55  ;;  %v3006_v35 = vrot.slane %v3881_v32, %v5622_v1 }
 0xe55   : > { %3096 = vmatpush1.bf16.msra.mxu1 %v4524_v56 }
 0xe56   : > { %3097 = vmatprep.subr.bf16.mxu1 %v4529_v4 }
 0xe59   : > { %3098 = vmatpush1.bf16.msra.mxu1 %v4527_v7 }
 0xe5a   : > { %3099 = vmatprep.subr.bf16.mxu1 %v4532_v8 }
 0xe5d   : > { %3100 = vmatpush1.bf16.msra.mxu1 %v4530_v9 }
 0xe5e   : > { %3101 = vmatprep.subr.bf16.mxu1 %v4535_v10 }
 0xe61   : > { %3102 = vmatpush1.bf16.msra.mxu1 %v4533_v11 }
 0xe62   : > { %3103 = vmatprep.subr.bf16.mxu1 %v4538_v12 }
 0xe65   : > { %3104 = vmatpush1.bf16.msra.mxu1 %v4536_v13 }
 0xf13   : > { %v2550_v5 = vpop.f32.mrb[48].mxu1 }
 0xf14   : > { %2559 = vrot.lane.b32.xlu0 %v2550_v5, %s4993_s30  ;;  %v4203_v15 = vpop.f32.mrb[49].mxu1  ;;  %v4541_v5 = vld [vmem:[%s5483_s6 + $0xe4] ss:$8 sps:$4 sm:$0xff]  }
 0xf15   : > { %v2553_v16 = vpop.f32.mrb[50].mxu1  ;;  %v4539_v15 = vld [vmem:[%s5483_s6 + $0xe0] ss:$8 sps:$4 sm:$0xff]   ;;  %3105 = vmatprep.subr.bf16.mxu1 %v4541_v5 }
 0xf16   : > { %2561 = vrot.lane.b32.xlu1 %v2553_v16, %s4993_s30  ;;  %v4204_v18 = vpop.f32.mrb[51].mxu1  ;;  %v4544_v16 = vld [vmem:[%s5483_s6 + $0xf4] ss:$8 sps:$4 sm:$0xff]   ;;  %3106 = vmatpush1.bf16.msra.mxu1 %v4539_v15 }
 0xf17   : > { %v4542_v18 = vld [vmem:[%s5483_s6 + $0xf0] ss:$8 sps:$4 sm:$0xff]   ;;  %3107 = vmatprep.subr.bf16.mxu1 %v4544_v16 }
 0xf1a   : > { %3108 = vmatpush1.bf16.msra.mxu1 %v4542_v18 }
 0xf1b   : > { %v2683_v20 = vpop.f32.mrb[52].mxu1 }
 0xf1c   : > { %2692 = vrot.lane.b32.xlu0 %v2683_v20, %s4992_s23  ;;  %v4215_v21 = vpop.f32.mrb[53].mxu1  ;;  %v4547_v20 = vld [vmem:[%s5485_s3 + $0xc8] sm:$0xff]  }
 0xf1d   : > { %v2686_v24 = vpop.f32.mrb[54].mxu1  ;;  %v4548_v21 = vld [vmem:[%s5485_s3 + $0x88] sm:$0xff]  }
 0xf1e   : > { %2694 = vrot.lane.b32.xlu1 %v2686_v24, %s4992_s23  ;;  %v4216_v26 = vpop.f32.mrb[55].mxu1  ;;  %v4549_v24 = vld [vmem:[%s5485_s3 + $0xd0] sm:$0xff]  }
 0xf1f   : > { %v4551_v26 = vld [vmem:[%s5485_s3 + $0xd8] sm:$0xff]  }
 0xf23   : > { %v2816_v28 = vpop.f32.mrb[56].mxu1 }
 0xf24   : > { %2825 = vrot.lane.b32.xlu0 %v2816_v28, %s4991_s9  ;;  %v4227_v17 = vpop.f32.mrb[57].mxu1  ;;  %v4552_v28 = vld [vmem:[%s5485_s3 + $0x98] sm:$0xff]  }
 0xf25   : > { %v2819_v29 = vpop.f32.mrb[58].mxu1  ;;  %v4553_v17 = vld [vmem:[%s5485_s3 + $0xe0] sm:$0xff]  }
 0xf26   : > { %2827 = vrot.lane.b32.xlu1 %v2819_v29, %s4991_s9  ;;  %v4228_v31 = vpop.f32.mrb[59].mxu1  ;;  %v4554_v29 = vld [vmem:[%s5485_s3 + $0xa0] sm:$0xff]  }
 0xf27   : > { %v4555_v31 = vld [vmem:[%s5485_s3 + $0xe8] sm:$0xff]  }
 0xf86   : > { %v2560_v33 = vpop.permute.xlu0 %2559 }
 0xf87   : > { %2565 = vst.msk [vmem:[#allocation4] sm:$0xff] %vm1588_vm3, %v2560_v33 }
 0xf88   : > { %v2562_v59 = vpop.permute.xlu1 %2561 }
 0xf89   : > { %2566 = vst.msk [vmem:[#allocation4 + $0x8] sm:$0xff] %vm1588_vm3, %v2562_v59 }
 0xf8e   : > { %v2693_v22 = vpop.permute.xlu0 %2692 }
 0xf8f   : > { %2698 = vst.msk [vmem:[#allocation4] sm:$0xff] %vm1702_vm4, %v2693_v22 }
 0xf90   : > { %v2695_v6 = vpop.permute.xlu1 %2694 }
 0xf91   : > { %2699 = vst.msk [vmem:[#allocation4 + $0x8] sm:$0xff] %vm1702_vm4, %v2695_v6 }
 0xf96   : > { %v2826_v34 = vpop.permute.xlu0 %2825 }
 0xf97   : > { %2831 = vst.msk [vmem:[#allocation4] sm:$0xff] %vm1816_vm5, %v2826_v34 }
 0xf98   : > { %v2828_v37 = vpop.permute.xlu1 %2827 }
 0xf99   : > { %2832 = vst.msk [vmem:[#allocation4 + $0x8] sm:$0xff] %vm1816_vm5, %v2828_v37 }
 0xf9e   : > { %v2833_v38 = vld [vmem:[#allocation4] sm:$0xff] }
 0xfa0   : > { %v2834_v39 = vld [vmem:[#allocation4 + $0x8] sm:$0xff] }
 0xfa1   : > { %v2835_v40 = vpack.c.bf16 %v2834_v39, %v2833_v38 }
 0xfa3   : > { %4246 = vmatmul.mubr.bf16.vlgmr.msra.gmra.mrb[32].mxu0 %v2835_v40  ;;  %v2973_v40 = vrot.slane %v5916_v36, %v5625_v2 }
 0xfa4   : > { %4052 = vmatpush3.bf16.msra.mxu0 %v4546_v19 }
 0xfa5   : > { %4053 = vmatprep.subr.bf16.mxu0 %v4547_v20 }
 0xfa8   : > { %4054 = vmatpush3.bf16.msra.mxu0 %v4548_v21 }
 0xfa9   : > { %4055 = vmatprep.subr.bf16.mxu0 %v4549_v24 }
 0xfac   : > { %4056 = vmatpush3.bf16.msra.mxu0 %v4550_v25 }
 0xfad   : > { %4057 = vmatprep.subr.bf16.mxu0 %v4551_v26 }
 0xfb0   : > { %4058 = vmatpush3.bf16.msra.mxu0 %v4552_v28 }
 0xfb1   : > { %4059 = vmatprep.subr.bf16.mxu0 %v4553_v17 }
 0xfb4   : > { %4060 = vmatpush3.bf16.msra.mxu0 %v4554_v29 }
 0xfb5   : > { %4061 = vmatprep.subr.bf16.mxu0 %v4555_v31 }
0x1076   : > { %v2939_v43 = vpop.f32.mrb[32].mxu0 }
0x1077   : > { %v2940_v45 = vadd.f32 %v2939_v43, %v2856_v42  ;;  %v4247_v46 = vpop.f32.mrb[33].mxu0 }
0x1078   : > { %v2942_v47 = vpop.f32.mrb[34].mxu0 }
0x1079   : > { %v2943_v48 = vadd.f32 %v2942_v47, %v2856_v42  ;;  %v4248_v23 = vpop.f32.mrb[35].mxu0  ;;  %v2946_v51 = vadd.f32 %v4621_v49, %v2940_v45  ;;  %v2979_v45 = vrot.slane %v5916_v36, %v5649_v27  ;;  %v4556_v49 = vld [vmem:[%s5485_s3 + $0xa8] sm:$0xff]   ;;  %v3010_v27 = vrot.slane %v3881_v32, %v5625_v2 }
0x107a   : > { %4062 = vmatpush3.bf16.msra.mxu0 %v4556_v49  ;;  %v3178_v2 = vrot.slane %v5916_v36, %v2139_v41 }
0x107b   : > { %2948 = vadd.xlane.f32.xlu0 %v2946_v51  ;;  %v2947_v53 = vadd.f32 %v4622_v52, %v2943_v48  ;;  %v4559_v52 = vld [vmem:[%s5485_s3 + $0xf8] sm:$0xff]  }
0x107d   : > { %2950 = vadd.xlane.f32.xlu1 %v2947_v53 }
0x1081   : > { %2278 = vadd.xlane.f32.xlu1 %v5926_v54 }
0x1108   : > { %v2949_v14 = vpop.xlane.xlu0 %2948 }
0x1109   : > { %v2952_v57 = vmul.f32 0.0078125, %v2949_v14 }
0x110a   : > { %v2951_v58 = vpop.xlane.xlu1 %2950 }
0x110b   : > { %v2954_v30 = vsub.f32 %v2946_v51, %v2952_v57  ;;  %v2953_v60 = vmul.f32 0.0078125, %v2951_v58  ;;  %v4557_v51 = vld [vmem:[%s5485_s3 + $0xf0] sm:$0xff]  }
0x110c   : > { %4063 = vmatprep.subr.bf16.mxu0 %v4557_v51 }
0x110d   : > { %v5933_v61 = vsub.f32 %v2947_v53, %v2953_v60  ;;  %v2956_v62 = vmul.f32 %v2954_v30, %v2954_v30  ;;  %4064 = vmatpush3.bf16.msra.mxu0 %v4558_v3  ;;  %v4560_v53 = vld [vmem:[%s5485_s3 + $0xb8] sm:$0xff]  }
0x110e   : > { %4065 = vmatprep.subr.bf16.mxu0 %v4559_v52  ;;  %v2279_v10 = vpop.xlane.xlu1 %2278 }
0x110f   : > { %2958 = vadd.xlane.f32.xlu0 %v2956_v62  ;;  %v2957_v0 = vmul.f32 %v5933_v61, %v5933_v61  ;;  %v2280_v12 = vmul.f32 0.0078125, %v2279_v10 }
0x1111   : > { %4066 = vmatpush3.bf16.msra.mxu0 %v4560_v53  ;;  %v2281_v50 = vsub.f32 %v5926_v54, %v2280_v12 }
0x1113   : > { %2960 = vadd.xlane.f32.xlu0 %v2957_v0  ;;  %v2282_v24 = vmul.f32 %v2281_v50, %v2281_v50 }
0x119c   : > { %v2959_v33 = vpop.xlane.xlu0 %2958 }
0x119d   : > { %v2962_v59 = vmul.f32 0.0078125, %v2959_v33 }
0x119f   : > { %v2964_v22 = vadd.f32 1e-05, %v2962_v59 }
0x11a0   : > { %v2961_v6 = vpop.xlane.xlu0 %2960 }
0x11a1   : > { %4611 = vrsqrt.f32 %v2964_v22  ;;  %v2963_v34 = vmul.f32 0.0078125, %v2961_v6  ;;  %v2291_v6 = vsub.s32 4, %v5618_v63 }
0x11a3   : > { %v2965_v37 = vadd.f32 1e-05, %v2963_v34  ;;  %v2296_v34 = vsub.s32 5, %v5618_v63  ;;  %v3343_v51 = vrot.slane %v5916_v36, %v2291_v6 }
0x11a5   : > { %4613 = vrsqrt.f32 %v2965_v37  ;;  %v4623_v37 = vld [vmem:[%s5521_s18] sm:$0x3f]  ;;  %v3349_v63 = vrot.slane %v5916_v36, %v2296_v34 }
0x11ab   : > { %v4612_v38 = vpop.eup %4611 }
0x11ac   : > { %v2968_v39 = vmul.f32 %v4612_v38, %v2954_v30  ;;  %v2292_v38 = vrot.slane %v4623_v37, %v2291_v6 }
0x11ae   : > { %v2974_v44 = vmul.f32 %v2973_v40, %v2968_v39 }
0x11af   : > { %v4614_v42 = vpop.eup %4613 }
0x11b0   : > { %v2969_v43 = vmul.f32 %v4614_v42, %v5933_v61  ;;  %v2980_v47 = vadd.f32 %v2979_v45, %v2974_v44 }
0x11b2   : > { %v2975_v46 = vmul.f32 %v2973_v40, %v2969_v43  ;;  %v2297_v40 = vrot.slane %v4623_v37, %v2296_v34 }
0x11b4   : > { %v2981_v48 = vadd.f32 %v2979_v45, %v2975_v46 }
0x11b6   : > { %v2982_v23 = vpack.c.bf16 %v2981_v48, %v2980_v47 }
0x11b8   : > { %3126 = vmatmul.mubr.bf16.vlgmr.msra.gmra.mrb[60].mxu1 %v2982_v23 }
0x128b   : > { %v3127_v55 = vpop.f32.mrb[60].mxu1 }
0x128c   : > { %v3128_v56 = vadd.f32 %v3127_v55, %v3006_v35  ;;  %v3129_v14 = vpop.f32.mrb[61].mxu1 }
0x128d   : > { %v3130_v57 = vadd.f32 %v3129_v14, %v3010_v27  ;;  %v3131_v58 = vpop.f32.mrb[62].mxu1 }
0x128e   : > { %v3132_v30 = vadd.f32 %v3131_v58, %v3006_v35  ;;  %v3133_v60 = vpop.f32.mrb[63].mxu1  ;;  %v3136_v62 = vmax.f32 %v3128_v56, 0.0 }
0x128f   : > { %v3134_v61 = vadd.f32 %v3133_v60, %v3010_v27  ;;  %v3137_v4 = vmax.f32 %v3130_v57, 0.0 }
0x1290   : > { %v3138_v0 = vmax.f32 %v3132_v30, 0.0 }
0x1291   : > { %v3139_v7 = vmax.f32 %v3134_v61, 0.0 }
0x1292   : > { %v3140_v8 = vpack.c.bf16 %v3138_v0, %v3136_v62 }
0x1293   : > { %v3141_v9 = vpack.c.bf16 %v3139_v7, %v3137_v4 }
0x1295   : > { %3307 = vmatprep.mubr.bf16.mxu0 %v3141_v9 }
0x1296   : > { %3308 = vmatmul.mubr.bf16.vlgmr.msra.gmra.mrb[36].mxu0 %v3140_v8 }
0x1369   : > { %v4067_v1 = vpop.f32.mrb[36].mxu0 }
0x136a   : > { %v4068_v11 = vpop.f32.mrb[37].mxu0 }
0x136b   : > { %v4069_v13 = vadd.f32 %v4068_v11, %v4067_v1  ;;  %v4070_v5 = vpop.f32.mrb[38].mxu0 }
0x136c   : > { %v4071_v15 = vpop.f32.mrb[39].mxu0 }
0x136d   : > { %v3310_v16 = vadd.f32 %v4069_v13, %v3178_v2  ;;  %v4072_v18 = vadd.f32 %v4071_v15, %v4070_v5 }
0x136f   : > { %v3313_v19 = vadd.f32 %v4072_v18, %v3178_v2  ;;  %v3316_v20 = vadd.f32 %v3310_v16, %v2980_v47 }
0x1371   : > { %3318 = vadd.xlane.f32.xlu0 %v3316_v20  ;;  %v3317_v21 = vadd.f32 %v3313_v19, %v2981_v48 }
0x1373   : > { %3320 = vadd.xlane.f32.xlu1 %v3317_v21 }
0x1375   : > { %2283 = vadd.xlane.f32.xlu0 %v2282_v24 }
0x13fe   : > { %v3319_v25 = vpop.xlane.xlu0 %3318 }
0x13ff   : > { %v3322_v26 = vmul.f32 0.0078125, %v3319_v25 }
0x1400   : > { %v3321_v41 = vpop.xlane.xlu1 %3320 }
0x1401   : > { %v3324_v28 = vsub.f32 %v3316_v20, %v3322_v26  ;;  %v3323_v17 = vmul.f32 0.0078125, %v3321_v41 }
0x1402   : > { %v2284_v29 = vpop.xlane.xlu0 %2283 }
0x1403   : > { %v3325_v31 = vsub.f32 %v3317_v21, %v3323_v17  ;;  %v2285_v33 = vmul.f32 0.0078125, %v2284_v29  ;;  %v3326_v59 = vmul.f32 %v3324_v28, %v3324_v28 }
0x1405   : > { %v2286_v22 = vadd.f32 1e-05, %v2285_v33  ;;  %3328 = vadd.xlane.f32.xlu1 %v3326_v59  ;;  %v3327_v54 = vmul.f32 %v3325_v31, %v3325_v31 }
0x1407   : > { %4615 = vrsqrt.f32 %v2286_v22  ;;  %3330 = vadd.xlane.f32.xlu0 %v3327_v54 }
0x1411   : > { %v4616_v39 = vpop.eup %4615 }
0x1412   : > { %v2288_v42 = vmul.f32 %v4616_v39, %v2281_v50 }
0x1414   : > { %v2293_v43 = vmul.f32 %v2292_v38, %v2288_v42 }
0x1416   : > { %v2298_v44 = vadd.f32 %v2297_v40, %v2293_v43 }
0x1418   : > { %3352 = vst [vmem:[#allocation2] sm:$0xff] %v2298_v44  ;;  %3359 = vst [vmem:[%s5523_s11] sm:$0xff] (!%p3946_p2), %v2298_v44 }
0x1492   : > { %v3329_v45 = vpop.xlane.xlu1 %3328 }
0x1493   : > { %v3332_v46 = vmul.f32 0.0078125, %v3329_v45 }
0x1494   : > { %v3331_v47 = vpop.xlane.xlu0 %3330 }
0x1495   : > { %v3334_v48 = vadd.f32 1e-05, %v3332_v46  ;;  %v3333_v23 = vmul.f32 0.0078125, %v3331_v47 }
0x1497   : > { %4617 = vrsqrt.f32 %v3334_v48  ;;  %v3335_v49 = vadd.f32 1e-05, %v3333_v23 }
0x1499   : > { %4619 = vrsqrt.f32 %v3335_v49 }
0x14a1   : > { %v4618_v3 = vpop.eup %4617 }
0x14a2   : > { %v3338_v52 = vmul.f32 %v4618_v3, %v3324_v28 }
0x14a3   : > { %v4620_v53 = vpop.eup %4619 }
0x14a4   : > { %v3344_v32 = vmul.f32 %v3343_v51, %v3338_v52  ;;  %v3339_v35 = vmul.f32 %v4620_v53, %v3325_v31  ;;  %3358 = sbr.rel (%p3946_p2) target bundleno = 5291 (0x14ab), region = 164 }
0x14a6   : > { %v3350_v27 = vadd.f32 %v3349_v63, %v3344_v32  ;;  %v3345_v55 = vmul.f32 %v3343_v51, %v3339_v35 }
0x14a8   : > { %3353 = vst [vmem:[#allocation3] sm:$0xff] %v3350_v27  ;;  %v3351_v56 = vadd.f32 %v3349_v63, %v3345_v55  ;;  %3360 = vst [vmem:[%s5525_s28] sm:$0xff] (!%p3946_p2), %v3350_v27 }
0x14aa   : > { %3354 = vst [vmem:[#allocation3 + $0x8] sm:$0xff] %v3351_v56  ;;  %3361 = vst [vmem:[%s5525_s28 + $0x8] sm:$0xff] (!%p3946_p2), %v3351_v56 }
0x14ab PF: > { %s6210_s6 = sld [smem:[#allocation36_spill]]  ;;  %s6211_s3 = sld [smem:[#allocation45_spill]] }
0x14ac   : > { %s6212_s7 = sld [smem:[#allocation60_spill]]  ;;  %s3381_s20 = sshll.u32 %s5523_s11, 4  ;;  %s3382_s20 = int_to_ptr.vmem [resolvable:$true] %s3381_s20 }
0x14ad   : > { %s3363_s2 = scalar_lea.sflag [#allocation8], %s5459_s1  ;;  %s4804_s5 = scalar_lea.vmem %s3382_s20, 128 }
0x14ae   : > { %p4805_p12 = scmp.ne.s32.totalorder %s3382_s20, %s4804_s5  ;;  %s4994_s0 = smov [#allocation17]  }
0x14af   : > { %s4808_s8 = sshll.u32 %s4994_s0, 4  ;;  %s4809_s8 = int_to_ptr.vmem [resolvable:$false] %s4808_s8 }
0x14b0   : > { %s4810_s10 = scalar_lea.vmem %s4809_s8, 256  ;;  %p4811_p8 = scmp.lt.s32.totalorder %s3382_s20, %s4809_s8 }
0x14b1   : > { %s3949_s18 = sshll.u32 %s6210_s6, 7  ;;  %p6213_p13 = scmp.ne.s32.totalorder %s6211_s3, 0 }
0x14b2   : > { %s5990_s14 = scalar_lea.hbm %s6212_s7, %s3949_s18  ;;  %p4812_p11 = scmp.lt.s32.totalorder %s4810_s10, %s4804_s5 }
0x14b3   : > { %p4806_p10 = pnand %p4805_p12, %p6213_p13 }
0x14b4   : > { %p4813_p0 = por %p4812_p11, %p4811_p8 }
0x14b5   : > { %p4807_p3 = pneg %p4806_p10 }
0x14b7   : > { %p4814_p7 = pnand %p4813_p0, %p4807_p3 }
0x14b9   : > { %4817 = shalt.err (!%p4814_p7)
}
0x14ba   : > { %s4818_s11 = scalar_lea.hbm %s5990_s14, 128  ;;  %s4822_s26 = scalar_lea.hbm %s6212_s7, 256 }
0x14bb   : > { %p4819_p5 = scmp.ne.s32.totalorder %s5990_s14, %s4818_s11  ;;  %p4823_p9 = scmp.lt.u32.totalorder %s5990_s14, %s6212_s7 }
0x14bc   : > { %p4824_p6 = scmp.lt.u32.totalorder %s4822_s26, %s4818_s11  ;;  %p4826_p12 = scmp.lt.u32.totalorder %s4818_s11, %s5990_s14 }
0x14bd   : > { %p4820_p1 = pnand %p4819_p5, %p6213_p13 }
0x14be   : > { %p4825_p2 = por %p4824_p6, %p4823_p9 }
0x14bf   : > { %p4821_p4 = pneg %p4820_p1 }
0x14c0   : > { %p4827_p10 = por %p4826_p12, %p4825_p2 }
0x14c2   : > { %p4828_p3 = pnand %p4827_p10, %p4821_p4 }
0x14c4   : > { %4831 = shalt.err (!%p4828_p3)
}
0x14c5   : > { %4267 = dma.vmem_to_hbm [thread:$0]  (%p6213_p13), %s3382_s20, 128, %s5990_s14, %s3363_s2  }
0x14c6   : > { %s3960_s24 = sshll.u32 %s6210_s6, 8  ;;  %s3394_s9 = sshll.u32 %s5525_s28, 4  ;;  %s6018_s9 = int_to_ptr.vmem [resolvable:$true] %s3394_s9 }
0x14c7   : > { %s6214_s27 = sld [smem:[#allocation61_spill]]  ;;  %s3368_s19 = scalar_lea.sflag [#allocation19], %s5459_s1 }
0x14c8   : > { %s4832_s25 = scalar_lea.vmem %s6018_s9, 256  ;;  %s4995_s16 = smov [#allocation18]  }
0x14c9   : > { %p4833_p8 = scmp.ne.s32.totalorder %s6018_s9, %s4832_s25  ;;  %s4836_s4 = sshll.u32 %s4995_s16, 4  ;;  %s4837_s4 = int_to_ptr.vmem [resolvable:$false] %s4836_s4 }
0x14ca   : > { %s4838_s28 = scalar_lea.vmem %s4837_s4, 512  ;;  %p4839_p7 = scmp.lt.s32.totalorder %s6018_s9, %s4837_s4 }
0x14cb   : > { %p4834_p11 = pnand %p4833_p8, %p6213_p13  ;;  %p4840_p5 = scmp.lt.s32.totalorder %s4838_s28, %s4832_s25 }
0x14cd   : > { %s6016_s12 = scalar_lea.hbm %s6214_s27, %s3960_s24  ;;  %p4835_p0 = pneg %p4834_p11 }
0x14ce   : > { %p4841_p1 = por %p4840_p5, %p4839_p7 }
0x14d0   : > { %p4842_p4 = pnand %p4841_p1, %p4835_p0 }
0x14d2   : > { %4845 = shalt.err (!%p4842_p4)
}
0x14d3   : > { %s4846_s6 = scalar_lea.hbm %s6016_s12, 256  ;;  %s4850_s15 = scalar_lea.hbm %s6214_s27, 512 }
0x14d4   : > { %p4847_p9 = scmp.ne.s32.totalorder %s6016_s12, %s4846_s6  ;;  %p4851_p12 = scmp.lt.u32.totalorder %s6016_s12, %s6214_s27 }
0x14d5   : > { %p4852_p10 = scmp.lt.u32.totalorder %s4850_s15, %s4846_s6  ;;  %p4854_p8 = scmp.lt.u32.totalorder %s4846_s6, %s6016_s12 }
0x14d6   : > { %p4848_p6 = pnand %p4847_p9, %p6213_p13 }
0x14d7   : > { %p4853_p3 = por %p4852_p10, %p4851_p12 }
0x14d8   : > { %p4849_p2 = pneg %p4848_p6 }
0x14d9   : > { %p4855_p11 = por %p4854_p8, %p4853_p3 }
0x14db   : > { %p4856_p0 = pnand %p4855_p11, %p4849_p2 }
0x14dd   : > { %4859 = shalt.err (!%p4856_p0)
}
0x14de   : > { %s4996_s2 = smov 128   ;;  %s4997_s5 = smov 8  }
0x14df   : > { %4268 = dma.vmem_to_hbm [thread:$0]  (%p6213_p13), %s6018_s9, 256, %s6016_s12, %s3368_s19, %s4996_s2, %s4996_s2, %s4997_s5  }
0x14e0 PF: > { %s6215_s0 = sld [smem:[#allocation39_spill]]  ;;  %s6216_s8 = sld [smem:[#allocation32_spill]] }
0x14e1   : > { %s6217_s10 = sld [smem:[#allocation46_spill]] }
0x14e6   : > { %p4298_p7 = scmp.ge.s32.totalorder %s6215_s0, 2  ;;  %s3409_s11 = sand.u32 1, %s6216_s8  }
0x14e7   : > { %p6218_p5 = scmp.ne.s32.totalorder %s6217_s10, 0  ;;  %s3410_s17 = scalar_lea.sflag [#allocation8], %s3409_s11 }
0x14e9   : > { %p4291_p1 = pnand %p4298_p7, %p6218_p5 }
0x14eb   : > { %4925 = dma.done.wait (!%p4291_p1), %s3410_s17, 128  }
0x14ec   : > { %4927 = vsyncadd (!%p4291_p1), %s3410_s17, 4294967168  ;;  %s3419_s21 = scalar_lea.sflag [#allocation19], %s3409_s11 }
0x14ed   : > { %4929 = dma.done.wait (!%p4291_p1), %s3419_s21, 256  }
0x14ee   : > { %4931 = vsyncadd (!%p4291_p1), %s3419_s21, 4294967040  ;;  %s43_s23 = sadd.s32 1, %s6215_s0   ;;  %s6219_s29 = sld [smem:[#allocation30_spill]] }
0x14ef   : > { %p40_p4 = scmp.ge.s32.totalorder %s43_s23, 6   ;;  %s6220_s30 = sld [smem:[#allocation31_spill]] }
0x14f0   : > { %s6221_s15 = sld [smem:[#allocation43_spill]]  ;;  %s6222_s16 = sld [smem:[#allocation33_spill]] }
0x14f1   : > { %s6223_s17 = sld [smem:[#allocation34_spill]]  ;;  %s6224_s18 = sld [smem:[#allocation44_spill]] }
0x14f2   : > { %s6225_s19 = sld [smem:[#allocation37_spill]]  ;;  %s6226_s20 = sld [smem:[#allocation38_spill]] }
0x14f3   : > { %s6227_s21 = sld [smem:[#allocation40_spill]]  ;;  %s6228_s22 = sld [smem:[#allocation41_spill]] }
0x14f4   :  { %42 = sbr.rel (!%p40_p4) target bundleno = 33 (0x21), region = 303 }
0x14fb   :  { %3424 = vsyncpa [#allocation7], 1 }
0x14fc   :  { %3426 = vsyncpa [#allocation7 + $0x1], 1 }
0x14fd   :  { %3427 = vsyncpa [#allocation10], 1 }
0x14fe   :  { %3429 = vsyncpa [#allocation10 + $0x1], 1 }
0x14ff   :  { %3430 = vsyncpa [#allocation13], 1 }
0x1500   :  { %3432 = vsyncpa [#allocation13 + $0x1], 1 }
0x1501   :  { %3433 = vsyncpa [#allocation16], 1 }
0x1502   :  { %3435 = vsyncpa [#allocation16 + $0x1], 1 }
0x1503   :  { %3436 = vsyncpa [#allocation8], 1 }
0x1504   :  { %3438 = vsyncpa [#allocation8 + $0x1], 1 }
0x1505   :  { %3439 = vsyncpa [#allocation19], 1 }
0x1506   :  { %3441 = vsyncpa [#allocation19 + $0x1], 1 }
0x1507   :  { %3442 = vsyncmov [#allocation5] }
0x150a   :  { %s3443_s1 = vpop.sfrf %3442 }
0x150b   :  { %p3954_p13 = scmp.ne.s32.totalorder %s3443_s1, 0 }
0x150d   :  { %3447 = shalt.err (%p3954_p13)  }
0x150e   :  { %3449 = vsyncmov [#allocation5 + $0x1] }
0x1511   :  { %s3450_s3 = vpop.sfrf %3449 }
0x1512   :  { %p3955_p9 = scmp.ne.s32.totalorder %s3450_s3, 0 }
0x1514   :  { %3454 = shalt.err (%p3955_p9)  }

</bundles_post_ra>
